<compile_context>
chip_gen: v5e
topology: v5e:2x2
jax: 0.10.0
libtpu: 0.0.40
codegen_flags: <defaults>
</compile_context>

<pallas_src>
import numpy as np
import jax
import jax.numpy as jnp
from jax import lax
from jax.experimental import pallas as pl
from jax.experimental.pallas import tpu as pltpu

# ----------------------- synthetic config (small shapes) -----------------------
V = 128          # vocab size
E = 32           # word_emb_dims
H = 32           # treelstm['in_dim']
D = 32           # lstm['dims'] (decoder hidden)
B = 2            # number of graphs in the batch
NODES_PER_G = 8  # nodes per graph
N = B * NODES_PER_G
L = 3            # number of topological levels in each tree
T = 8            # max_sequence_length (test-mode decode length)
F32 = jnp.float32
BF16 = jnp.bfloat16


def _vmem():
    return pl.BlockSpec(memory_space=pltpu.MemorySpace.VMEM)


# --------------------------- fused encoder+decoder kernel ----------------------
def _fused_kernel(node_ids_ref, mask_ref, adj_ref, lvl_ref,
                  wtok_iou_ref, u_iou_ref, u_f_ref, b_f_ref,
                  ro_ref, w_hc_ref, b_hc_ref,
                  wcat_ref, bcat_ref, w_out_ref, b_out_ref,
                  hc_ref, logits_ref, mo_ref):
    n = node_ids_ref.shape[0]
    v = w_out_ref.shape[1]
    h_dim = u_f_ref.shape[0]
    b_sz = ro_ref.shape[0]
    d = w_hc_ref.shape[1] // 2
    t_len = logits_ref.shape[0]
    n_levels = lvl_ref.shape[0]

    # ---------------- encoder: ChildSum-TreeLSTM ----------------
    mask = mask_ref[...]                                            # (N, 1) f32
    adj = adj_ref[...]                                              # (N, N) bf16
    node_iota = lax.broadcasted_iota(jnp.int32, (n, v), 1)
    node_onehot = (node_iota == node_ids_ref[...]).astype(BF16)     # (N, V)

    # iou preactivations per gate (lane-aligned); embedding lookup folded into
    # the weight -> one-hot gather on the MXU.  (b_iou is all-zeros: dropped.)
    iou_pre_i = jnp.dot(node_onehot, wtok_iou_ref[0],
                        preferred_element_type=F32) * mask
    iou_pre_o = jnp.dot(node_onehot, wtok_iou_ref[1],
                        preferred_element_type=F32) * mask
    iou_pre_u = jnp.dot(node_onehot, wtok_iou_ref[2],
                        preferred_element_type=F32) * mask

    u_i = u_iou_ref[0]
    u_o = u_iou_ref[1]
    u_u = u_iou_ref[2]
    u_f = u_f_ref[...]
    b_f = b_f_ref[...]

    # h / c kept as plain values (vreg-resident) across the static level loop.
    h = jnp.zeros((n, h_dim), F32)
    c = jnp.zeros((n, h_dim), F32)
    for li in range(n_levels):                                      # static unroll
        hb = h.astype(BF16)
        # per-child forget gates f = sigmoid(U_f(h_child))
        f_gate = jax.nn.sigmoid(
            jnp.dot(hb, u_f, preferred_element_type=F32) + b_f)
        # message/reduce: sum children h, sum f*c over children
        h_tild = jnp.dot(adj, hb, preferred_element_type=F32)
        c_tild = jnp.dot(adj, (f_gate * c).astype(BF16),
                         preferred_element_type=F32)
        htb = h_tild.astype(BF16)
        i_g = jax.nn.sigmoid(iou_pre_i + jnp.dot(htb, u_i,
                                                 preferred_element_type=F32))
        o_g = jax.nn.sigmoid(iou_pre_o + jnp.dot(htb, u_o,
                                                 preferred_element_type=F32))
        u_g = jnp.tanh(iou_pre_u + jnp.dot(htb, u_u,
                                           preferred_element_type=F32))
        c_new = i_g * u_g + c_tild
        h_new = o_g * jnp.tanh(c_new)
        lm = lvl_ref[li]                                            # (N, 1) frontier mask
        h = lm * h_new + (1.0 - lm) * h
        c = lm * c_new + (1.0 - lm) * c

    # graph readout (mean) + hid_fc/cell_fc fused into one (B, 2D) projection
    feats = jnp.dot(ro_ref[...], h.astype(BF16), preferred_element_type=F32)
    hc = jnp.dot(feats.astype(BF16), w_hc_ref[...],
                 preferred_element_type=F32) + b_hc_ref[...]
    hc_ref[...] = hc
    hidden = hc[:, :d]
    cell = hc[:, d:]

    # ---------------- decoder: greedy LSTM decode ----------------
    iota_v = lax.broadcasted_iota(jnp.int32, (b_sz, v), 1)          # hoisted
    w_i = wcat_ref[0]
    w_f = wcat_ref[1]
    w_g = wcat_ref[2]
    w_o = wcat_ref[3]
    bcat = bcat_ref[...]                                            # (4, D) f32
    w_out = w_out_ref[...]
    b_out = b_out_ref[...]

    logits_ref[0] = jnp.zeros((b_sz, v), F32)                       # row 0 stays zero
    mo_ref[0] = jnp.zeros((b_sz, 1), F32)

    onehot = (iota_v == 0).astype(BF16)                             # start token 0
    for t in range(1, t_len):                                       # static unroll (T=8)
        # gates_g = [onehot, h] @ W_cat_g + b_g   (embedding + W_ih + W_hh fused)
        x = jnp.concatenate([onehot, hidden.astype(BF16)], axis=1)  # (B, V+D)
        gi = jnp.dot(x, w_i, preferred_element_type=F32) + bcat[0:1]
        gf = jnp.dot(x, w_f, preferred_element_type=F32) + bcat[1:2]
        gg = jnp.dot(x, w_g, preferred_element_type=F32) + bcat[2:3]
        go = jnp.dot(x, w_o, preferred_element_type=F32) + bcat[3:4]
        i_g = jax.nn.sigmoid(gi)
        f_g = jax.nn.sigmoid(gf)
        g_g = jnp.tanh(gg)
        o_g = jax.nn.sigmoid(go)
        cell = f_g * cell + i_g * g_g
        hidden = o_g * jnp.tanh(cell)
        out = jnp.dot(hidden.astype(BF16), w_out,
                      preferred_element_type=F32) + b_out
        logits_ref[t] = out
        # exact argmax with first-occurrence tie-break
        mx = jnp.max(out, axis=1, keepdims=True)
        cand = jnp.where(out == mx, iota_v, v)
        top1 = jnp.min(cand, axis=1, keepdims=True)                 # (B, 1) int32
        mo_ref[t] = top1.astype(F32)
        onehot = (iota_v == top1).astype(BF16)                      # next input


# ----------------------------- glue: batch + params ----------------------------
def build_tree_batch(rng):
    """Two graphs, each an 8-node tree: root 0 -> {1,2,3}; 1 -> {4,5}; 2 -> {6,7}."""
    children = {0: [1, 2, 3], 1: [4, 5], 2: [6, 7]}
    levels = [[3, 4, 5, 6, 7], [1, 2], [0]]   # leaves first (topological order)
    adj = np.zeros((N, N), np.float32)
    lvl = np.zeros((L, N, 1), np.float32)
    mask = np.zeros((N, 1), np.float32)
    readout = np.zeros((B, N), np.float32)
    for g in range(B):
        off = g * NODES_PER_G
        for p, cs in children.items():
            for c in cs:
                adj[off + p, off + c] = 1.0
        for li, nodes in enumerate(levels):
            for nd in nodes:
                lvl[li, off + nd, 0] = 1.0
        for nd in levels[0]:                  # leaf nodes carry token features
            mask[off + nd, 0] = 1.0
        readout[g, off:off + NODES_PER_G] = 1.0 / NODES_PER_G
    node_ids = jax.random.randint(rng, (N,), 0, V, dtype=jnp.int32)
    return (jnp.asarray(adj), jnp.asarray(lvl), jnp.asarray(mask),
            jnp.asarray(readout), node_ids)


def init_params(key):
    ks = jax.random.split(key, 16)
    s = 0.1
    emb_table = jax.random.normal(ks[0], (V, E), F32) * s      # token embedding
    w_iou = jax.random.normal(ks[1], (E, 3 * H), F32) * s      # W_iou (no bias)
    b_iou = jnp.zeros((1, 3 * H), F32)                          # zero param (dropped in kernel)
    u_iou = jax.random.normal(ks[2], (H, 3 * H), F32) * s      # U_iou (no bias)
    u_f = jax.random.normal(ks[3], (H, H), F32) * s            # U_f weight
    b_f = jax.random.normal(ks[4], (1, H), F32) * s            # U_f bias
    w_hid = jax.random.normal(ks[5], (H, D), F32) * s
    b_hid = jax.random.normal(ks[6], (1, D), F32) * s
    w_cell = jax.random.normal(ks[7], (H, D), F32) * s
    b_cell = jax.random.normal(ks[8], (1, D), F32) * s
    w_ih = jax.random.normal(ks[9], (E, 4 * D), F32) * s        # LSTMCell (i,f,g,o)
    w_hh = jax.random.normal(ks[10], (D, 4 * D), F32) * s
    b_ih = jax.random.normal(ks[11], (1, 4 * D), F32) * s
    b_hh = jax.random.normal(ks[12], (1, 4 * D), F32) * s
    w_out = jax.random.normal(ks[13], (D, V), F32) * s          # vocab projection
    b_out = jax.random.normal(ks[14], (1, V), F32) * s
    return dict(emb_table=emb_table, w_iou=w_iou, b_iou=b_iou, u_iou=u_iou,
                u_f=u_f, b_f=b_f, w_hid=w_hid, b_hid=b_hid, w_cell=w_cell,
                b_cell=b_cell, w_ih=w_ih, w_hh=w_hh, b_ih=b_ih, b_hh=b_hh,
                w_out=w_out, b_out=b_out)


def prepare_params(p):
    """One-time weight preprocessing: fold embedding table into gate weights,
    split fused gate weights per gate (lane-aligned), fold biases, cast to bf16."""
    hp = lax.Precision.HIGHEST
    # encoder: one-hot gather on MXU -> W_tok_iou = emb_table @ W_iou, per gate
    wtok_iou = jnp.dot(p["emb_table"], p["w_iou"], precision=hp)            # (V, 3H)
    wtok_iou3 = jnp.stack([wtok_iou[:, :H], wtok_iou[:, H:2 * H],
                           wtok_iou[:, 2 * H:]]).astype(BF16)               # (3, V, H)
    u_iou3 = jnp.stack([p["u_iou"][:, :H], p["u_iou"][:, H:2 * H],
                        p["u_iou"][:, 2 * H:]]).astype(BF16)                # (3, H, H)
    # hid_fc / cell_fc fused into one lane-dense (H, 2D) projection
    w_hc = jnp.concatenate([p["w_hid"], p["w_cell"]], axis=1).astype(BF16)  # (H, 2D)
    b_hc = jnp.concatenate([p["b_hid"], p["b_cell"]], axis=1)               # (1, 2D)
    # decoder: W_cat = [emb_table@W_ih ; W_hh], split per gate (i,f,g,o)
    wtok = jnp.dot(p["emb_table"], p["w_ih"], precision=hp)                 # (V, 4D)
    wcat = jnp.concatenate([wtok, p["w_hh"]], axis=0)                       # (V+D, 4D)
    wcat4 = jnp.stack([wcat[:, :D], wcat[:, D:2 * D],
                       wcat[:, 2 * D:3 * D], wcat[:, 3 * D:]]).astype(BF16)  # (4, V+D, D)
    bcat4 = (p["b_ih"] + p["b_hh"]).reshape(4, D)                           # (4, D) f32
    return dict(wtok_iou=wtok_iou3, u_iou=u_iou3,
                u_f=p["u_f"].astype(BF16), b_f=p["b_f"],
                w_hc=w_hc, b_hc=b_hc,
                wcat=wcat4, bcat=bcat4,
                w_out=p["w_out"].astype(BF16), b_out=p["b_out"])


@jax.jit
def forward(prep, adj, lvl, mask, readout, node_ids):
    """Mirrors TreeLSTMSummarizeModel.forward in running_mode='test'."""
    hc, logits, model_output = pl.pallas_call(
        _fused_kernel,
        out_shape=(jax.ShapeDtypeStruct((B, 2 * D), F32),
                   jax.ShapeDtypeStruct((T, B, V), F32),
                   jax.ShapeDtypeStruct((T, B, 1), F32)),
        in_specs=[_vmem() for _ in range(15)],
        out_specs=(_vmem(), _vmem(), _vmem()),
    )(node_ids[:, None].astype(jnp.int32), mask, adj.astype(BF16), lvl,
      prep["wtok_iou"], prep["u_iou"], prep["u_f"], prep["b_f"],
      readout.astype(BF16), prep["w_hc"], prep["b_hc"],
      prep["wcat"], prep["bcat"], prep["w_out"], prep["b_out"])
    hidden = hc[:, :D]
    cell = hc[:, D:]
    model_output = jnp.squeeze(model_output, -1)                # (T, B) float32
    loss = 0.0                                                  # test mode: no tgt / loss
    return hidden, cell, logits, model_output, loss


# --------------------------- pure-JAX reference ---------------------------------
def reference_encoder(params, adj, lvl, mask, readout, node_ids):
    embeds = params["emb_table"][node_ids]
    iou_pre = (embeds @ params["w_iou"]) * mask
    h = jnp.zeros((N, H), F32)
    c = jnp.zeros((N, H), F32)
    for li in range(L):
        f = jax.nn.sigmoid(h @ params["u_f"] + params["b_f"])
        h_tild = adj @ h
        c_tild = adj @ (f * c)
        iou = iou_pre + h_tild @ params["u_iou"] + params["b_iou"]
        i_g = jax.nn.sigmoid(iou[:, :H])
        o_g = jax.nn.sigmoid(iou[:, H:2 * H])
        u_g = jnp.tanh(iou[:, 2 * H:])
        c_new = i_g * u_g + c_tild
        h_new = o_g * jnp.tanh(c_new)
        lm = lvl[li]
        h = lm * h_new + (1.0 - lm) * h
        c = lm * c_new + (1.0 - lm) * c
    feats = readout @ h
    hidden = feats @ params["w_hid"] + params["b_hid"]
    cell = feats @ params["w_cell"] + params["b_cell"]
    return hidden, cell


def reference_decode_step1(params, hidden, cell):
    inp = jnp.zeros((B,), jnp.int32)
    emb = params["emb_table"][inp]
    gates = (emb @ params["w_ih"] + params["b_ih"]
             + hidden @ params["w_hh"] + params["b_hh"])
    i_g = jax.nn.sigmoid(gates[:, 0:D])
    f_g = jax.nn.sigmoid(gates[:, D:2 * D])
    g_g = jnp.tanh(gates[:, 2 * D:3 * D])
    o_g = jax.nn.sigmoid(gates[:, 3 * D:4 * D])
    c1 = f_g * cell + i_g * g_g
    h1 = o_g * jnp.tanh(c1)
    return h1 @ params["w_out"] + params["b_out"]


# ------------------------------------ main ---------------------------------------
if __name__ == "__main__":
    key = jax.random.PRNGKey(0)
    k_tree, k_params = jax.random.split(key)
    adj, lvl, mask, readout, node_ids = build_tree_batch(k_tree)
    params = init_params(k_params)
    prep = prepare_params(params)

    hidden, cell, logits, model_output, loss = forward(
        prep, adj, lvl, mask, readout, node_ids)
    jax.block_until_ready((hidden, cell, logits, model_output))

    # correctness check against a pure-JAX f32 reference (loose tol: bf16 MXU)
    ref_hidden, ref_cell = reference_encoder(params, adj, lvl, mask, readout, node_ids)
    ref_logits1 = reference_decode_step1(params, ref_hidden, ref_cell)
    np.testing.assert_allclose(np.asarray(hidden), np.asarray(ref_hidden),
                               rtol=2e-2, atol=2e-2)
    np.testing.assert_allclose(np.asarray(cell), np.asarray(ref_cell),
                               rtol=2e-2, atol=2e-2)
    np.testing.assert_allclose(np.asarray(logits[1]), np.asarray(ref_logits1),
                               rtol=2e-2, atol=2e-2)
    assert np.allclose(np.asarray(logits[0]), 0.0)
    assert np.allclose(np.asarray(model_output[0]), 0.0)

    # mirrors `return ('', model_output.transpose(1, 0).tolist(), loss)`
    _result = ("", np.asarray(model_output).T.tolist(), float(loss))

    print("KERNEL_OK")
</pallas_src>

<mosaic_0001>
module attributes {stable_mosaic.version = 11 : i64} {
  func.func @_fused_kernel(%arg0: memref<16x1xi32, #tpu.memory_space<vmem>>, %arg1: memref<16x1xf32, #tpu.memory_space<vmem>>, %arg2: memref<16x16xbf16, #tpu.memory_space<vmem>>, %arg3: memref<3x16x1xf32, #tpu.memory_space<vmem>>, %arg4: memref<3x128x32xbf16, #tpu.memory_space<vmem>>, %arg5: memref<3x32x32xbf16, #tpu.memory_space<vmem>>, %arg6: memref<32x32xbf16, #tpu.memory_space<vmem>>, %arg7: memref<1x32xf32, #tpu.memory_space<vmem>>, %arg8: memref<2x16xbf16, #tpu.memory_space<vmem>>, %arg9: memref<32x64xbf16, #tpu.memory_space<vmem>>, %arg10: memref<1x64xf32, #tpu.memory_space<vmem>>, %arg11: memref<4x160x32xbf16, #tpu.memory_space<vmem>>, %arg12: memref<4x32xf32, #tpu.memory_space<vmem>>, %arg13: memref<32x128xbf16, #tpu.memory_space<vmem>>, %arg14: memref<1x128xf32, #tpu.memory_space<vmem>>, %arg15: memref<2x64xf32, #tpu.memory_space<vmem>>, %arg16: memref<8x2x128xf32, #tpu.memory_space<vmem>>, %arg17: memref<8x2x1xf32, #tpu.memory_space<vmem>>) attributes {dimension_semantics = [], scalar_prefetch = 0 : i64, scratch_operands = 0 : i64, tpu.core_type = #tpu.core_type<tc>} {
    %c0 = arith.constant 0 : index
    %c0_0 = arith.constant 0 : index
    %0 = vector.load %arg1[%c0, %c0_0] : memref<16x1xf32, #tpu.memory_space<vmem>>, vector<16x1xf32>
    %c0_1 = arith.constant 0 : index
    %c0_2 = arith.constant 0 : index
    %1 = vector.load %arg2[%c0_1, %c0_2] : memref<16x16xbf16, #tpu.memory_space<vmem>>, vector<16x16xbf16>
    %2 = tpu.iota {dimensions = array<i32: 1>} : vector<16x128xi32>
    %c0_3 = arith.constant 0 : index
    %c0_4 = arith.constant 0 : index
    %3 = vector.load %arg0[%c0_3, %c0_4] : memref<16x1xi32, #tpu.memory_space<vmem>>, vector<16x1xi32>
    %4 = vector.broadcast %3 : vector<16x1xi32> to vector<16x128xi32>
    %5 = arith.cmpi eq, %2, %4 : vector<16x128xi32>
    %6 = arith.extui %5 : vector<16x128xi1> to vector<16x128xi32>
    %7 = arith.sitofp %6 : vector<16x128xi32> to vector<16x128xf32>
    %8 = arith.truncf %7 : vector<16x128xf32> to vector<16x128xbf16>
    %c0_5 = arith.constant 0 : index
    %c0_6 = arith.constant 0 : index
    %c0_7 = arith.constant 0 : index
    %9 = vector.load %arg4[%c0_5, %c0_6, %c0_7] : memref<3x128x32xbf16, #tpu.memory_space<vmem>>, vector<1x128x32xbf16>
    %10 = vector.shape_cast %9 : vector<1x128x32xbf16> to vector<128x32xbf16>
    %cst = arith.constant dense<0.000000e+00> : vector<16x32xf32>
    %11 = tpu.matmul %8, %10, %cst {dimension_numbers = #tpu.dot_dimension_numbers<[1], [0], [0], [1], [0, 0, 1, 1], [], []>} : vector<16x128xbf16>, vector<128x32xbf16>, vector<16x32xf32> -> vector<16x32xf32>
    %12 = vector.broadcast %0 : vector<16x1xf32> to vector<16x32xf32>
    %13 = arith.mulf %11, %12 : vector<16x32xf32>
    %c1 = arith.constant 1 : index
    %c0_8 = arith.constant 0 : index
    %c0_9 = arith.constant 0 : index
    %14 = vector.load %arg4[%c1, %c0_8, %c0_9] : memref<3x128x32xbf16, #tpu.memory_space<vmem>>, vector<1x128x32xbf16>
    %15 = vector.shape_cast %14 : vector<1x128x32xbf16> to vector<128x32xbf16>
    %cst_10 = arith.constant dense<0.000000e+00> : vector<16x32xf32>
    %16 = tpu.matmul %8, %15, %cst_10 {dimension_numbers = #tpu.dot_dimension_numbers<[1], [0], [0], [1], [0, 0, 1, 1], [], []>} : vector<16x128xbf16>, vector<128x32xbf16>, vector<16x32xf32> -> vector<16x32xf32>
    %17 = vector.broadcast %0 : vector<16x1xf32> to vector<16x32xf32>
    %18 = arith.mulf %16, %17 : vector<16x32xf32>
    %c2 = arith.constant 2 : index
    %c0_11 = arith.constant 0 : index
    %c0_12 = arith.constant 0 : index
    %19 = vector.load %arg4[%c2, %c0_11, %c0_12] : memref<3x128x32xbf16, #tpu.memory_space<vmem>>, vector<1x128x32xbf16>
    %20 = vector.shape_cast %19 : vector<1x128x32xbf16> to vector<128x32xbf16>
    %cst_13 = arith.constant dense<0.000000e+00> : vector<16x32xf32>
    %21 = tpu.matmul %8, %20, %cst_13 {dimension_numbers = #tpu.dot_dimension_numbers<[1], [0], [0], [1], [0, 0, 1, 1], [], []>} : vector<16x128xbf16>, vector<128x32xbf16>, vector<16x32xf32> -> vector<16x32xf32>
    %22 = vector.broadcast %0 : vector<16x1xf32> to vector<16x32xf32>
    %23 = arith.mulf %21, %22 : vector<16x32xf32>
    %c0_14 = arith.constant 0 : index
    %c0_15 = arith.constant 0 : index
    %c0_16 = arith.constant 0 : index
    %24 = vector.load %arg5[%c0_14, %c0_15, %c0_16] : memref<3x32x32xbf16, #tpu.memory_space<vmem>>, vector<1x32x32xbf16>
    %25 = vector.shape_cast %24 : vector<1x32x32xbf16> to vector<32x32xbf16>
    %c1_17 = arith.constant 1 : index
    %c0_18 = arith.constant 0 : index
    %c0_19 = arith.constant 0 : index
    %26 = vector.load %arg5[%c1_17, %c0_18, %c0_19] : memref<3x32x32xbf16, #tpu.memory_space<vmem>>, vector<1x32x32xbf16>
    %27 = vector.shape_cast %26 : vector<1x32x32xbf16> to vector<32x32xbf16>
    %c2_20 = arith.constant 2 : index
    %c0_21 = arith.constant 0 : index
    %c0_22 = arith.constant 0 : index
    %28 = vector.load %arg5[%c2_20, %c0_21, %c0_22] : memref<3x32x32xbf16, #tpu.memory_space<vmem>>, vector<1x32x32xbf16>
    %29 = vector.shape_cast %28 : vector<1x32x32xbf16> to vector<32x32xbf16>
    %c0_23 = arith.constant 0 : index
    %c0_24 = arith.constant 0 : index
    %30 = vector.load %arg6[%c0_23, %c0_24] : memref<32x32xbf16, #tpu.memory_space<vmem>>, vector<32x32xbf16>
    %c0_25 = arith.constant 0 : index
    %c0_26 = arith.constant 0 : index
    %31 = vector.load %arg7[%c0_25, %c0_26] : memref<1x32xf32, #tpu.memory_space<vmem>>, vector<1x32xf32>
    %cst_27 = arith.constant 0.000000e+00 : f32
    %32 = vector.broadcast %cst_27 : f32 to vector<16x32xf32>
    %cst_28 = arith.constant 0.000000e+00 : f32
    %33 = vector.broadcast %cst_28 : f32 to vector<16x32xf32>
    %34 = arith.truncf %32 : vector<16x32xf32> to vector<16x32xbf16>
    %cst_29 = arith.constant dense<0.000000e+00> : vector<16x32xf32>
    %35 = tpu.matmul %34, %30, %cst_29 {dimension_numbers = #tpu.dot_dimension_numbers<[1], [0], [0], [1], [0, 0, 1, 1], [], []>} : vector<16x32xbf16>, vector<32x32xbf16>, vector<16x32xf32> -> vector<16x32xf32>
    %36 = vector.broadcast %31 : vector<1x32xf32> to vector<16x32xf32>
    %37 = arith.addf %35, %36 : vector<16x32xf32>
    %38 = arith.negf %37 : vector<16x32xf32>
    %39 = math.exp %38 : vector<16x32xf32>
    %cst_30 = arith.constant 1.000000e+00 : f32
    %40 = vector.broadcast %cst_30 : f32 to vector<16x32xf32>
    %41 = arith.addf %40, %39 : vector<16x32xf32>
    %42 = arith.divf %40, %41 : vector<16x32xf32>
    %cst_31 = arith.constant dense<0.000000e+00> : vector<16x32xf32>
    %43 = tpu.matmul %1, %34, %cst_31 {dimension_numbers = #tpu.dot_dimension_numbers<[1], [0], [0], [1], [0, 0, 1, 1], [], []>} : vector<16x16xbf16>, vector<16x32xbf16>, vector<16x32xf32> -> vector<16x32xf32>
    %44 = arith.mulf %42, %33 : vector<16x32xf32>
    %45 = arith.truncf %44 : vector<16x32xf32> to vector<16x32xbf16>
    %cst_32 = arith.constant dense<0.000000e+00> : vector<16x32xf32>
    %46 = tpu.matmul %1, %45, %cst_32 {dimension_numbers = #tpu.dot_dimension_numbers<[1], [0], [0], [1], [0, 0, 1, 1], [], []>} : vector<16x16xbf16>, vector<16x32xbf16>, vector<16x32xf32> -> vector<16x32xf32>
    %47 = arith.truncf %43 : vector<16x32xf32> to vector<16x32xbf16>
    %cst_33 = arith.constant dense<0.000000e+00> : vector<16x32xf32>
    %48 = tpu.matmul %47, %25, %cst_33 {dimension_numbers = #tpu.dot_dimension_numbers<[1], [0], [0], [1], [0, 0, 1, 1], [], []>} : vector<16x32xbf16>, vector<32x32xbf16>, vector<16x32xf32> -> vector<16x32xf32>
    %49 = arith.addf %13, %48 : vector<16x32xf32>
    %50 = arith.negf %49 : vector<16x32xf32>
    %51 = math.exp %50 : vector<16x32xf32>
    %cst_34 = arith.constant 1.000000e+00 : f32
    %52 = vector.broadcast %cst_34 : f32 to vector<16x32xf32>
    %53 = arith.addf %52, %51 : vector<16x32xf32>
    %54 = arith.divf %52, %53 : vector<16x32xf32>
    %cst_35 = arith.constant dense<0.000000e+00> : vector<16x32xf32>
    %55 = tpu.matmul %47, %27, %cst_35 {dimension_numbers = #tpu.dot_dimension_numbers<[1], [0], [0], [1], [0, 0, 1, 1], [], []>} : vector<16x32xbf16>, vector<32x32xbf16>, vector<16x32xf32> -> vector<16x32xf32>
    %56 = arith.addf %18, %55 : vector<16x32xf32>
    %57 = arith.negf %56 : vector<16x32xf32>
    %58 = math.exp %57 : vector<16x32xf32>
    %cst_36 = arith.constant 1.000000e+00 : f32
    %59 = vector.broadcast %cst_36 : f32 to vector<16x32xf32>
    %60 = arith.addf %59, %58 : vector<16x32xf32>
    %61 = arith.divf %59, %60 : vector<16x32xf32>
    %cst_37 = arith.constant dense<0.000000e+00> : vector<16x32xf32>
    %62 = tpu.matmul %47, %29, %cst_37 {dimension_numbers = #tpu.dot_dimension_numbers<[1], [0], [0], [1], [0, 0, 1, 1], [], []>} : vector<16x32xbf16>, vector<32x32xbf16>, vector<16x32xf32> -> vector<16x32xf32>
    %63 = arith.addf %23, %62 : vector<16x32xf32>
    %64 = math.tanh %63 : vector<16x32xf32>
    %65 = arith.mulf %54, %64 : vector<16x32xf32>
    %66 = arith.addf %65, %46 : vector<16x32xf32>
    %67 = math.tanh %66 : vector<16x32xf32>
    %68 = arith.mulf %61, %67 : vector<16x32xf32>
    %c0_38 = arith.constant 0 : index
    %c0_39 = arith.constant 0 : index
    %c0_40 = arith.constant 0 : index
    %69 = vector.load %arg3[%c0_38, %c0_39, %c0_40] : memref<3x16x1xf32, #tpu.memory_space<vmem>>, vector<1x16x1xf32>
    %70 = vector.shape_cast %69 : vector<1x16x1xf32> to vector<16x1xf32>
    %71 = vector.broadcast %70 : vector<16x1xf32> to vector<16x32xf32>
    %72 = arith.mulf %71, %68 : vector<16x32xf32>
    %cst_41 = arith.constant 1.000000e+00 : f32
    %73 = vector.broadcast %cst_41 : f32 to vector<16x1xf32>
    %74 = arith.subf %73, %70 : vector<16x1xf32>
    %75 = vector.broadcast %74 : vector<16x1xf32> to vector<16x32xf32>
    %76 = arith.mulf %75, %32 : vector<16x32xf32>
    %77 = arith.addf %72, %76 : vector<16x32xf32>
    %78 = vector.broadcast %70 : vector<16x1xf32> to vector<16x32xf32>
    %79 = arith.mulf %78, %66 : vector<16x32xf32>
    %cst_42 = arith.constant 1.000000e+00 : f32
    %80 = vector.broadcast %cst_42 : f32 to vector<16x1xf32>
    %81 = arith.subf %80, %70 : vector<16x1xf32>
    %82 = vector.broadcast %81 : vector<16x1xf32> to vector<16x32xf32>
    %83 = arith.mulf %82, %33 : vector<16x32xf32>
    %84 = arith.addf %79, %83 : vector<16x32xf32>
    %85 = arith.truncf %77 : vector<16x32xf32> to vector<16x32xbf16>
    %cst_43 = arith.constant dense<0.000000e+00> : vector<16x32xf32>
    %86 = tpu.matmul %85, %30, %cst_43 {dimension_numbers = #tpu.dot_dimension_numbers<[1], [0], [0], [1], [0, 0, 1, 1], [], []>} : vector<16x32xbf16>, vector<32x32xbf16>, vector<16x32xf32> -> vector<16x32xf32>
    %87 = vector.broadcast %31 : vector<1x32xf32> to vector<16x32xf32>
    %88 = arith.addf %86, %87 : vector<16x32xf32>
    %89 = arith.negf %88 : vector<16x32xf32>
    %90 = math.exp %89 : vector<16x32xf32>
    %cst_44 = arith.constant 1.000000e+00 : f32
    %91 = vector.broadcast %cst_44 : f32 to vector<16x32xf32>
    %92 = arith.addf %91, %90 : vector<16x32xf32>
    %93 = arith.divf %91, %92 : vector<16x32xf32>
    %cst_45 = arith.constant dense<0.000000e+00> : vector<16x32xf32>
    %94 = tpu.matmul %1, %85, %cst_45 {dimension_numbers = #tpu.dot_dimension_numbers<[1], [0], [0], [1], [0, 0, 1, 1], [], []>} : vector<16x16xbf16>, vector<16x32xbf16>, vector<16x32xf32> -> vector<16x32xf32>
    %95 = arith.mulf %93, %84 : vector<16x32xf32>
    %96 = arith.truncf %95 : vector<16x32xf32> to vector<16x32xbf16>
    %cst_46 = arith.constant dense<0.000000e+00> : vector<16x32xf32>
    %97 = tpu.matmul %1, %96, %cst_46 {dimension_numbers = #tpu.dot_dimension_numbers<[1], [0], [0], [1], [0, 0, 1, 1], [], []>} : vector<16x16xbf16>, vector<16x32xbf16>, vector<16x32xf32> -> vector<16x32xf32>
    %98 = arith.truncf %94 : vector<16x32xf32> to vector<16x32xbf16>
    %cst_47 = arith.constant dense<0.000000e+00> : vector<16x32xf32>
    %99 = tpu.matmul %98, %25, %cst_47 {dimension_numbers = #tpu.dot_dimension_numbers<[1], [0], [0], [1], [0, 0, 1, 1], [], []>} : vector<16x32xbf16>, vector<32x32xbf16>, vector<16x32xf32> -> vector<16x32xf32>
    %100 = arith.addf %13, %99 : vector<16x32xf32>
    %101 = arith.negf %100 : vector<16x32xf32>
    %102 = math.exp %101 : vector<16x32xf32>
    %cst_48 = arith.constant 1.000000e+00 : f32
    %103 = vector.broadcast %cst_48 : f32 to vector<16x32xf32>
    %104 = arith.addf %103, %102 : vector<16x32xf32>
    %105 = arith.divf %103, %104 : vector<16x32xf32>
    %cst_49 = arith.constant dense<0.000000e+00> : vector<16x32xf32>
    %106 = tpu.matmul %98, %27, %cst_49 {dimension_numbers = #tpu.dot_dimension_numbers<[1], [0], [0], [1], [0, 0, 1, 1], [], []>} : vector<16x32xbf16>, vector<32x32xbf16>, vector<16x32xf32> -> vector<16x32xf32>
    %107 = arith.addf %18, %106 : vector<16x32xf32>
    %108 = arith.negf %107 : vector<16x32xf32>
    %109 = math.exp %108 : vector<16x32xf32>
    %cst_50 = arith.constant 1.000000e+00 : f32
    %110 = vector.broadcast %cst_50 : f32 to vector<16x32xf32>
    %111 = arith.addf %110, %109 : vector<16x32xf32>
    %112 = arith.divf %110, %111 : vector<16x32xf32>
    %cst_51 = arith.constant dense<0.000000e+00> : vector<16x32xf32>
    %113 = tpu.matmul %98, %29, %cst_51 {dimension_numbers = #tpu.dot_dimension_numbers<[1], [0], [0], [1], [0, 0, 1, 1], [], []>} : vector<16x32xbf16>, vector<32x32xbf16>, vector<16x32xf32> -> vector<16x32xf32>
    %114 = arith.addf %23, %113 : vector<16x32xf32>
    %115 = math.tanh %114 : vector<16x32xf32>
    %116 = arith.mulf %105, %115 : vector<16x32xf32>
    %117 = arith.addf %116, %97 : vector<16x32xf32>
    %118 = math.tanh %117 : vector<16x32xf32>
    %119 = arith.mulf %112, %118 : vector<16x32xf32>
    %c1_52 = arith.constant 1 : index
    %c0_53 = arith.constant 0 : index
    %c0_54 = arith.constant 0 : index
    %120 = vector.load %arg3[%c1_52, %c0_53, %c0_54] : memref<3x16x1xf32, #tpu.memory_space<vmem>>, vector<1x16x1xf32>
    %121 = vector.shape_cast %120 : vector<1x16x1xf32> to vector<16x1xf32>
    %122 = vector.broadcast %121 : vector<16x1xf32> to vector<16x32xf32>
    %123 = arith.mulf %122, %119 : vector<16x32xf32>
    %cst_55 = arith.constant 1.000000e+00 : f32
    %124 = vector.broadcast %cst_55 : f32 to vector<16x1xf32>
    %125 = arith.subf %124, %121 : vector<16x1xf32>
    %126 = vector.broadcast %125 : vector<16x1xf32> to vector<16x32xf32>
    %127 = arith.mulf %126, %77 : vector<16x32xf32>
    %128 = arith.addf %123, %127 : vector<16x32xf32>
    %129 = vector.broadcast %121 : vector<16x1xf32> to vector<16x32xf32>
    %130 = arith.mulf %129, %117 : vector<16x32xf32>
    %cst_56 = arith.constant 1.000000e+00 : f32
    %131 = vector.broadcast %cst_56 : f32 to vector<16x1xf32>
    %132 = arith.subf %131, %121 : vector<16x1xf32>
    %133 = vector.broadcast %132 : vector<16x1xf32> to vector<16x32xf32>
    %134 = arith.mulf %133, %84 : vector<16x32xf32>
    %135 = arith.addf %130, %134 : vector<16x32xf32>
    %136 = arith.truncf %128 : vector<16x32xf32> to vector<16x32xbf16>
    %cst_57 = arith.constant dense<0.000000e+00> : vector<16x32xf32>
    %137 = tpu.matmul %136, %30, %cst_57 {dimension_numbers = #tpu.dot_dimension_numbers<[1], [0], [0], [1], [0, 0, 1, 1], [], []>} : vector<16x32xbf16>, vector<32x32xbf16>, vector<16x32xf32> -> vector<16x32xf32>
    %138 = vector.broadcast %31 : vector<1x32xf32> to vector<16x32xf32>
    %139 = arith.addf %137, %138 : vector<16x32xf32>
    %140 = arith.negf %139 : vector<16x32xf32>
    %141 = math.exp %140 : vector<16x32xf32>
    %cst_58 = arith.constant 1.000000e+00 : f32
    %142 = vector.broadcast %cst_58 : f32 to vector<16x32xf32>
    %143 = arith.addf %142, %141 : vector<16x32xf32>
    %144 = arith.divf %142, %143 : vector<16x32xf32>
    %cst_59 = arith.constant dense<0.000000e+00> : vector<16x32xf32>
    %145 = tpu.matmul %1, %136, %cst_59 {dimension_numbers = #tpu.dot_dimension_numbers<[1], [0], [0], [1], [0, 0, 1, 1], [], []>} : vector<16x16xbf16>, vector<16x32xbf16>, vector<16x32xf32> -> vector<16x32xf32>
    %146 = arith.mulf %144, %135 : vector<16x32xf32>
    %147 = arith.truncf %146 : vector<16x32xf32> to vector<16x32xbf16>
    %cst_60 = arith.constant dense<0.000000e+00> : vector<16x32xf32>
    %148 = tpu.matmul %1, %147, %cst_60 {dimension_numbers = #tpu.dot_dimension_numbers<[1], [0], [0], [1], [0, 0, 1, 1], [], []>} : vector<16x16xbf16>, vector<16x32xbf16>, vector<16x32xf32> -> vector<16x32xf32>
    %149 = arith.truncf %145 : vector<16x32xf32> to vector<16x32xbf16>
    %cst_61 = arith.constant dense<0.000000e+00> : vector<16x32xf32>
    %150 = tpu.matmul %149, %25, %cst_61 {dimension_numbers = #tpu.dot_dimension_numbers<[1], [0], [0], [1], [0, 0, 1, 1], [], []>} : vector<16x32xbf16>, vector<32x32xbf16>, vector<16x32xf32> -> vector<16x32xf32>
    %151 = arith.addf %13, %150 : vector<16x32xf32>
    %152 = arith.negf %151 : vector<16x32xf32>
    %153 = math.exp %152 : vector<16x32xf32>
    %cst_62 = arith.constant 1.000000e+00 : f32
    %154 = vector.broadcast %cst_62 : f32 to vector<16x32xf32>
    %155 = arith.addf %154, %153 : vector<16x32xf32>
    %156 = arith.divf %154, %155 : vector<16x32xf32>
    %cst_63 = arith.constant dense<0.000000e+00> : vector<16x32xf32>
    %157 = tpu.matmul %149, %27, %cst_63 {dimension_numbers = #tpu.dot_dimension_numbers<[1], [0], [0], [1], [0, 0, 1, 1], [], []>} : vector<16x32xbf16>, vector<32x32xbf16>, vector<16x32xf32> -> vector<16x32xf32>
    %158 = arith.addf %18, %157 : vector<16x32xf32>
    %159 = arith.negf %158 : vector<16x32xf32>
    %160 = math.exp %159 : vector<16x32xf32>
    %cst_64 = arith.constant 1.000000e+00 : f32
    %161 = vector.broadcast %cst_64 : f32 to vector<16x32xf32>
    %162 = arith.addf %161, %160 : vector<16x32xf32>
    %163 = arith.divf %161, %162 : vector<16x32xf32>
    %cst_65 = arith.constant dense<0.000000e+00> : vector<16x32xf32>
    %164 = tpu.matmul %149, %29, %cst_65 {dimension_numbers = #tpu.dot_dimension_numbers<[1], [0], [0], [1], [0, 0, 1, 1], [], []>} : vector<16x32xbf16>, vector<32x32xbf16>, vector<16x32xf32> -> vector<16x32xf32>
    %165 = arith.addf %23, %164 : vector<16x32xf32>
    %166 = math.tanh %165 : vector<16x32xf32>
    %167 = arith.mulf %156, %166 : vector<16x32xf32>
    %168 = arith.addf %167, %148 : vector<16x32xf32>
    %169 = math.tanh %168 : vector<16x32xf32>
    %170 = arith.mulf %163, %169 : vector<16x32xf32>
    %c2_66 = arith.constant 2 : index
    %c0_67 = arith.constant 0 : index
    %c0_68 = arith.constant 0 : index
    %171 = vector.load %arg3[%c2_66, %c0_67, %c0_68] : memref<3x16x1xf32, #tpu.memory_space<vmem>>, vector<1x16x1xf32>
    %172 = vector.shape_cast %171 : vector<1x16x1xf32> to vector<16x1xf32>
    %173 = vector.broadcast %172 : vector<16x1xf32> to vector<16x32xf32>
    %174 = arith.mulf %173, %170 : vector<16x32xf32>
    %cst_69 = arith.constant 1.000000e+00 : f32
    %175 = vector.broadcast %cst_69 : f32 to vector<16x1xf32>
    %176 = arith.subf %175, %172 : vector<16x1xf32>
    %177 = vector.broadcast %176 : vector<16x1xf32> to vector<16x32xf32>
    %178 = arith.mulf %177, %128 : vector<16x32xf32>
    %179 = arith.addf %174, %178 : vector<16x32xf32>
    %c0_70 = arith.constant 0 : index
    %c0_71 = arith.constant 0 : index
    %180 = vector.load %arg8[%c0_70, %c0_71] : memref<2x16xbf16, #tpu.memory_space<vmem>>, vector<2x16xbf16>
    %181 = arith.truncf %179 : vector<16x32xf32> to vector<16x32xbf16>
    %cst_72 = arith.constant dense<0.000000e+00> : vector<2x32xf32>
    %182 = tpu.matmul %180, %181, %cst_72 {dimension_numbers = #tpu.dot_dimension_numbers<[1], [0], [0], [1], [0, 0, 1, 1], [], []>} : vector<2x16xbf16>, vector<16x32xbf16>, vector<2x32xf32> -> vector<2x32xf32>
    %183 = arith.truncf %182 : vector<2x32xf32> to vector<2x32xbf16>
    %c0_73 = arith.constant 0 : index
    %c0_74 = arith.constant 0 : index
    %184 = vector.load %arg9[%c0_73, %c0_74] : memref<32x64xbf16, #tpu.memory_space<vmem>>, vector<32x64xbf16>
    %cst_75 = arith.constant dense<0.000000e+00> : vector<2x64xf32>
    %185 = tpu.matmul %183, %184, %cst_75 {dimension_numbers = #tpu.dot_dimension_numbers<[1], [0], [0], [1], [0, 0, 1, 1], [], []>} : vector<2x32xbf16>, vector<32x64xbf16>, vector<2x64xf32> -> vector<2x64xf32>
    %c0_76 = arith.constant 0 : index
    %c0_77 = arith.constant 0 : index
    %186 = vector.load %arg10[%c0_76, %c0_77] : memref<1x64xf32, #tpu.memory_space<vmem>>, vector<1x64xf32>
    %187 = vector.broadcast %186 : vector<1x64xf32> to vector<2x64xf32>
    %188 = arith.addf %185, %187 : vector<2x64xf32>
    %c0_78 = arith.constant 0 : index
    %c0_79 = arith.constant 0 : index
    %189 = vector.load %arg15[%c0_78, %c0_79] : memref<2x64xf32, #tpu.memory_space<vmem>>, vector<2x64xf32>
    tpu.vector_store %arg15[%c0_78, %c0_79], %188 {strides = array<i32>} : memref<2x64xf32, #tpu.memory_space<vmem>>, vector<2x64xf32>,
    %190 = vector.extract_strided_slice %188 {offsets = [0, 0], sizes = [2, 32], strides = [1, 1]} : vector<2x64xf32> to vector<2x32xf32>
    %191 = vector.extract_strided_slice %188 {offsets = [0, 32], sizes = [2, 32], strides = [1, 1]} : vector<2x64xf32> to vector<2x32xf32>
    %192 = tpu.iota {dimensions = array<i32: 1>} : vector<2x128xi32>
    %c0_80 = arith.constant 0 : index
    %c0_81 = arith.constant 0 : index
    %c0_82 = arith.constant 0 : index
    %193 = vector.load %arg11[%c0_80, %c0_81, %c0_82] : memref<4x160x32xbf16, #tpu.memory_space<vmem>>, vector<1x160x32xbf16>
    %194 = vector.shape_cast %193 : vector<1x160x32xbf16> to vector<160x32xbf16>
    %c1_83 = arith.constant 1 : index
    %c0_84 = arith.constant 0 : index
    %c0_85 = arith.constant 0 : index
    %195 = vector.load %arg11[%c1_83, %c0_84, %c0_85] : memref<4x160x32xbf16, #tpu.memory_space<vmem>>, vector<1x160x32xbf16>
    %196 = vector.shape_cast %195 : vector<1x160x32xbf16> to vector<160x32xbf16>
    %c2_86 = arith.constant 2 : index
    %c0_87 = arith.constant 0 : index
    %c0_88 = arith.constant 0 : index
    %197 = vector.load %arg11[%c2_86, %c0_87, %c0_88] : memref<4x160x32xbf16, #tpu.memory_space<vmem>>, vector<1x160x32xbf16>
    %198 = vector.shape_cast %197 : vector<1x160x32xbf16> to vector<160x32xbf16>
    %c3 = arith.constant 3 : index
    %c0_89 = arith.constant 0 : index
    %c0_90 = arith.constant 0 : index
    %199 = vector.load %arg11[%c3, %c0_89, %c0_90] : memref<4x160x32xbf16, #tpu.memory_space<vmem>>, vector<1x160x32xbf16>
    %200 = vector.shape_cast %199 : vector<1x160x32xbf16> to vector<160x32xbf16>
    %c0_91 = arith.constant 0 : index
    %c0_92 = arith.constant 0 : index
    %201 = vector.load %arg12[%c0_91, %c0_92] : memref<4x32xf32, #tpu.memory_space<vmem>>, vector<4x32xf32>
    %c0_93 = arith.constant 0 : index
    %c0_94 = arith.constant 0 : index
    %202 = vector.load %arg13[%c0_93, %c0_94] : memref<32x128xbf16, #tpu.memory_space<vmem>>, vector<32x128xbf16>
    %c0_95 = arith.constant 0 : index
    %c0_96 = arith.constant 0 : index
    %203 = vector.load %arg14[%c0_95, %c0_96] : memref<1x128xf32, #tpu.memory_space<vmem>>, vector<1x128xf32>
    %cst_97 = arith.constant 0.000000e+00 : f32
    %204 = vector.broadcast %cst_97 : f32 to vector<2x128xf32>
    %c0_98 = arith.constant 0 : index
    %c0_99 = arith.constant 0 : index
    %c0_100 = arith.constant 0 : index
    %205 = vector.load %arg16[%c0_98, %c0_99, %c0_100] : memref<8x2x128xf32, #tpu.memory_space<vmem>>, vector<1x2x128xf32>
    %206 = vector.shape_cast %205 : vector<1x2x128xf32> to vector<2x128xf32>
    %207 = vector.shape_cast %204 : vector<2x128xf32> to vector<1x2x128xf32>
    tpu.vector_store %arg16[%c0_98, %c0_99, %c0_100], %207 {strides = array<i32>} : memref<8x2x128xf32, #tpu.memory_space<vmem>>, vector<1x2x128xf32>,
    %cst_101 = arith.constant 0.000000e+00 : f32
    %208 = vector.broadcast %cst_101 : f32 to vector<2x1xf32>
    %c0_102 = arith.constant 0 : index
    %c0_103 = arith.constant 0 : index
    %c0_104 = arith.constant 0 : index
    %209 = vector.load %arg17[%c0_102, %c0_103, %c0_104] : memref<8x2x1xf32, #tpu.memory_space<vmem>>, vector<1x2x1xf32>
    %210 = vector.shape_cast %209 : vector<1x2x1xf32> to vector<2x1xf32>
    %211 = vector.shape_cast %208 : vector<2x1xf32> to vector<1x2x1xf32>
    tpu.vector_store %arg17[%c0_102, %c0_103, %c0_104], %211 {strides = array<i32>} : memref<8x2x1xf32, #tpu.memory_space<vmem>>, vector<1x2x1xf32>,
    %c0_i32 = arith.constant 0 : i32
    %212 = vector.broadcast %c0_i32 : i32 to vector<2x128xi32>
    %213 = arith.cmpi eq, %192, %212 : vector<2x128xi32>
    %214 = arith.extui %213 : vector<2x128xi1> to vector<2x128xi32>
    %215 = arith.sitofp %214 : vector<2x128xi32> to vector<2x128xf32>
    %216 = arith.truncf %215 : vector<2x128xf32> to vector<2x128xbf16>
    %217 = arith.truncf %190 : vector<2x32xf32> to vector<2x32xbf16>
    %218 = tpu.concatenate %216, %217 in 1 : vector<2x128xbf16>, vector<2x32xbf16> -> vector<2x160xbf16>
    %cst_105 = arith.constant dense<0.000000e+00> : vector<2x32xf32>
    %219 = tpu.matmul %218, %194, %cst_105 {dimension_numbers = #tpu.dot_dimension_numbers<[1], [0], [0], [1], [0, 0, 1, 1], [], []>} : vector<2x160xbf16>, vector<160x32xbf16>, vector<2x32xf32> -> vector<2x32xf32>
    %220 = vector.extract_strided_slice %201 {offsets = [0, 0], sizes = [1, 32], strides = [1, 1]} : vector<4x32xf32> to vector<1x32xf32>
    %221 = vector.broadcast %220 : vector<1x32xf32> to vector<2x32xf32>
    %222 = arith.addf %219, %221 : vector<2x32xf32>
    %cst_106 = arith.constant dense<0.000000e+00> : vector<2x32xf32>
    %223 = tpu.matmul %218, %196, %cst_106 {dimension_numbers = #tpu.dot_dimension_numbers<[1], [0], [0], [1], [0, 0, 1, 1], [], []>} : vector<2x160xbf16>, vector<160x32xbf16>, vector<2x32xf32> -> vector<2x32xf32>
    %224 = vector.extract_strided_slice %201 {offsets = [1, 0], sizes = [1, 32], strides = [1, 1]} : vector<4x32xf32> to vector<1x32xf32>
    %225 = vector.broadcast %224 : vector<1x32xf32> to vector<2x32xf32>
    %226 = arith.addf %223, %225 : vector<2x32xf32>
    %cst_107 = arith.constant dense<0.000000e+00> : vector<2x32xf32>
    %227 = tpu.matmul %218, %198, %cst_107 {dimension_numbers = #tpu.dot_dimension_numbers<[1], [0], [0], [1], [0, 0, 1, 1], [], []>} : vector<2x160xbf16>, vector<160x32xbf16>, vector<2x32xf32> -> vector<2x32xf32>
    %228 = vector.extract_strided_slice %201 {offsets = [2, 0], sizes = [1, 32], strides = [1, 1]} : vector<4x32xf32> to vector<1x32xf32>
    %229 = vector.broadcast %228 : vector<1x32xf32> to vector<2x32xf32>
    %230 = arith.addf %227, %229 : vector<2x32xf32>
    %cst_108 = arith.constant dense<0.000000e+00> : vector<2x32xf32>
    %231 = tpu.matmul %218, %200, %cst_108 {dimension_numbers = #tpu.dot_dimension_numbers<[1], [0], [0], [1], [0, 0, 1, 1], [], []>} : vector<2x160xbf16>, vector<160x32xbf16>, vector<2x32xf32> -> vector<2x32xf32>
    %232 = vector.extract_strided_slice %201 {offsets = [3, 0], sizes = [1, 32], strides = [1, 1]} : vector<4x32xf32> to vector<1x32xf32>
    %233 = vector.broadcast %232 : vector<1x32xf32> to vector<2x32xf32>
    %234 = arith.addf %231, %233 : vector<2x32xf32>
    %235 = arith.negf %222 : vector<2x32xf32>
    %236 = math.exp %235 : vector<2x32xf32>
    %cst_109 = arith.constant 1.000000e+00 : f32
    %237 = vector.broadcast %cst_109 : f32 to vector<2x32xf32>
    %238 = arith.addf %237, %236 : vector<2x32xf32>
    %239 = arith.divf %237, %238 : vector<2x32xf32>
    %240 = arith.negf %226 : vector<2x32xf32>
    %241 = math.exp %240 : vector<2x32xf32>
    %cst_110 = arith.constant 1.000000e+00 : f32
    %242 = vector.broadcast %cst_110 : f32 to vector<2x32xf32>
    %243 = arith.addf %242, %241 : vector<2x32xf32>
    %244 = arith.divf %242, %243 : vector<2x32xf32>
    %245 = math.tanh %230 : vector<2x32xf32>
    %246 = arith.negf %234 : vector<2x32xf32>
    %247 = math.exp %246 : vector<2x32xf32>
    %cst_111 = arith.constant 1.000000e+00 : f32
    %248 = vector.broadcast %cst_111 : f32 to vector<2x32xf32>
    %249 = arith.addf %248, %247 : vector<2x32xf32>
    %250 = arith.divf %248, %249 : vector<2x32xf32>
    %251 = arith.mulf %244, %191 : vector<2x32xf32>
    %252 = arith.mulf %239, %245 : vector<2x32xf32>
    %253 = arith.addf %251, %252 : vector<2x32xf32>
    %254 = math.tanh %253 : vector<2x32xf32>
    %255 = arith.mulf %250, %254 : vector<2x32xf32>
    %256 = arith.truncf %255 : vector<2x32xf32> to vector<2x32xbf16>
    %cst_112 = arith.constant dense<0.000000e+00> : vector<2x128xf32>
    %257 = tpu.matmul %256, %202, %cst_112 {dimension_numbers = #tpu.dot_dimension_numbers<[1], [0], [0], [1], [0, 0, 1, 1], [], []>} : vector<2x32xbf16>, vector<32x128xbf16>, vector<2x128xf32> -> vector<2x128xf32>
    %258 = vector.broadcast %203 : vector<1x128xf32> to vector<2x128xf32>
    %259 = arith.addf %257, %258 : vector<2x128xf32>
    %c1_113 = arith.constant 1 : index
    %c0_114 = arith.constant 0 : index
    %c0_115 = arith.constant 0 : index
    %260 = vector.load %arg16[%c1_113, %c0_114, %c0_115] : memref<8x2x128xf32, #tpu.memory_space<vmem>>, vector<1x2x128xf32>
    %261 = vector.shape_cast %260 : vector<1x2x128xf32> to vector<2x128xf32>
    %262 = vector.shape_cast %259 : vector<2x128xf32> to vector<1x2x128xf32>
    tpu.vector_store %arg16[%c1_113, %c0_114, %c0_115], %262 {strides = array<i32>} : memref<8x2x128xf32, #tpu.memory_space<vmem>>, vector<1x2x128xf32>,
    %cst_116 = arith.constant dense<0xFF800000> : vector<2xf32>
    %263 = vector.multi_reduction <maximumf>, %259, %cst_116 [1] : vector<2x128xf32> to vector<2xf32>
    %264 = vector.shape_cast %263 : vector<2xf32> to vector<2x1xf32>
    %265 = vector.broadcast %264 : vector<2x1xf32> to vector<2x128xf32>
    %266 = arith.cmpf oeq, %259, %265 : vector<2x128xf32>
    %c128_i32 = arith.constant 128 : i32
    %267 = vector.broadcast %c128_i32 : i32 to vector<2x128xi32>
    %268 = arith.select %266, %192, %267 : vector<2x128xi1>, vector<2x128xi32>
    %cst_117 = arith.constant dense<2147483647> : vector<2xi32>
    %269 = vector.multi_reduction <minsi>, %268, %cst_117 [1] : vector<2x128xi32> to vector<2xi32>
    %270 = vector.shape_cast %269 : vector<2xi32> to vector<2x1xi32>
    %271 = arith.sitofp %270 : vector<2x1xi32> to vector<2x1xf32>
    %c1_118 = arith.constant 1 : index
    %c0_119 = arith.constant 0 : index
    %c0_120 = arith.constant 0 : index
    %272 = vector.load %arg17[%c1_118, %c0_119, %c0_120] : memref<8x2x1xf32, #tpu.memory_space<vmem>>, vector<1x2x1xf32>
    %273 = vector.shape_cast %272 : vector<1x2x1xf32> to vector<2x1xf32>
    %274 = vector.shape_cast %271 : vector<2x1xf32> to vector<1x2x1xf32>
    tpu.vector_store %arg17[%c1_118, %c0_119, %c0_120], %274 {strides = array<i32>} : memref<8x2x1xf32, #tpu.memory_space<vmem>>, vector<1x2x1xf32>,
    %275 = vector.broadcast %270 : vector<2x1xi32> to vector<2x128xi32>
    %276 = arith.cmpi eq, %192, %275 : vector<2x128xi32>
    %277 = arith.extui %276 : vector<2x128xi1> to vector<2x128xi32>
    %278 = arith.sitofp %277 : vector<2x128xi32> to vector<2x128xf32>
    %279 = arith.truncf %278 : vector<2x128xf32> to vector<2x128xbf16>
    %280 = arith.truncf %255 : vector<2x32xf32> to vector<2x32xbf16>
    %281 = tpu.concatenate %279, %280 in 1 : vector<2x128xbf16>, vector<2x32xbf16> -> vector<2x160xbf16>
    %cst_121 = arith.constant dense<0.000000e+00> : vector<2x32xf32>
    %282 = tpu.matmul %281, %194, %cst_121 {dimension_numbers = #tpu.dot_dimension_numbers<[1], [0], [0], [1], [0, 0, 1, 1], [], []>} : vector<2x160xbf16>, vector<160x32xbf16>, vector<2x32xf32> -> vector<2x32xf32>
    %283 = vector.extract_strided_slice %201 {offsets = [0, 0], sizes = [1, 32], strides = [1, 1]} : vector<4x32xf32> to vector<1x32xf32>
    %284 = vector.broadcast %283 : vector<1x32xf32> to vector<2x32xf32>
    %285 = arith.addf %282, %284 : vector<2x32xf32>
    %cst_122 = arith.constant dense<0.000000e+00> : vector<2x32xf32>
    %286 = tpu.matmul %281, %196, %cst_122 {dimension_numbers = #tpu.dot_dimension_numbers<[1], [0], [0], [1], [0, 0, 1, 1], [], []>} : vector<2x160xbf16>, vector<160x32xbf16>, vector<2x32xf32> -> vector<2x32xf32>
    %287 = vector.extract_strided_slice %201 {offsets = [1, 0], sizes = [1, 32], strides = [1, 1]} : vector<4x32xf32> to vector<1x32xf32>
    %288 = vector.broadcast %287 : vector<1x32xf32> to vector<2x32xf32>
    %289 = arith.addf %286, %288 : vector<2x32xf32>
    %cst_123 = arith.constant dense<0.000000e+00> : vector<2x32xf32>
    %290 = tpu.matmul %281, %198, %cst_123 {dimension_numbers = #tpu.dot_dimension_numbers<[1], [0], [0], [1], [0, 0, 1, 1], [], []>} : vector<2x160xbf16>, vector<160x32xbf16>, vector<2x32xf32> -> vector<2x32xf32>
    %291 = vector.extract_strided_slice %201 {offsets = [2, 0], sizes = [1, 32], strides = [1, 1]} : vector<4x32xf32> to vector<1x32xf32>
    %292 = vector.broadcast %291 : vector<1x32xf32> to vector<2x32xf32>
    %293 = arith.addf %290, %292 : vector<2x32xf32>
    %cst_124 = arith.constant dense<0.000000e+00> : vector<2x32xf32>
    %294 = tpu.matmul %281, %200, %cst_124 {dimension_numbers = #tpu.dot_dimension_numbers<[1], [0], [0], [1], [0, 0, 1, 1], [], []>} : vector<2x160xbf16>, vector<160x32xbf16>, vector<2x32xf32> -> vector<2x32xf32>
    %295 = vector.extract_strided_slice %201 {offsets = [3, 0], sizes = [1, 32], strides = [1, 1]} : vector<4x32xf32> to vector<1x32xf32>
    %296 = vector.broadcast %295 : vector<1x32xf32> to vector<2x32xf32>
    %297 = arith.addf %294, %296 : vector<2x32xf32>
    %298 = arith.negf %285 : vector<2x32xf32>
    %299 = math.exp %298 : vector<2x32xf32>
    %cst_125 = arith.constant 1.000000e+00 : f32
    %300 = vector.broadcast %cst_125 : f32 to vector<2x32xf32>
    %301 = arith.addf %300, %299 : vector<2x32xf32>
    %302 = arith.divf %300, %301 : vector<2x32xf32>
    %303 = arith.negf %289 : vector<2x32xf32>
    %304 = math.exp %303 : vector<2x32xf32>
    %cst_126 = arith.constant 1.000000e+00 : f32
    %305 = vector.broadcast %cst_126 : f32 to vector<2x32xf32>
    %306 = arith.addf %305, %304 : vector<2x32xf32>
    %307 = arith.divf %305, %306 : vector<2x32xf32>
    %308 = math.tanh %293 : vector<2x32xf32>
    %309 = arith.negf %297 : vector<2x32xf32>
    %310 = math.exp %309 : vector<2x32xf32>
    %cst_127 = arith.constant 1.000000e+00 : f32
    %311 = vector.broadcast %cst_127 : f32 to vector<2x32xf32>
    %312 = arith.addf %311, %310 : vector<2x32xf32>
    %313 = arith.divf %311, %312 : vector<2x32xf32>
    %314 = arith.mulf %307, %253 : vector<2x32xf32>
    %315 = arith.mulf %302, %308 : vector<2x32xf32>
    %316 = arith.addf %314, %315 : vector<2x32xf32>
    %317 = math.tanh %316 : vector<2x32xf32>
    %318 = arith.mulf %313, %317 : vector<2x32xf32>
    %319 = arith.truncf %318 : vector<2x32xf32> to vector<2x32xbf16>
    %cst_128 = arith.constant dense<0.000000e+00> : vector<2x128xf32>
    %320 = tpu.matmul %319, %202, %cst_128 {dimension_numbers = #tpu.dot_dimension_numbers<[1], [0], [0], [1], [0, 0, 1, 1], [], []>} : vector<2x32xbf16>, vector<32x128xbf16>, vector<2x128xf32> -> vector<2x128xf32>
    %321 = vector.broadcast %203 : vector<1x128xf32> to vector<2x128xf32>
    %322 = arith.addf %320, %321 : vector<2x128xf32>
    %c2_129 = arith.constant 2 : index
    %c0_130 = arith.constant 0 : index
    %c0_131 = arith.constant 0 : index
    %323 = vector.load %arg16[%c2_129, %c0_130, %c0_131] : memref<8x2x128xf32, #tpu.memory_space<vmem>>, vector<1x2x128xf32>
    %324 = vector.shape_cast %323 : vector<1x2x128xf32> to vector<2x128xf32>
    %325 = vector.shape_cast %322 : vector<2x128xf32> to vector<1x2x128xf32>
    tpu.vector_store %arg16[%c2_129, %c0_130, %c0_131], %325 {strides = array<i32>} : memref<8x2x128xf32, #tpu.memory_space<vmem>>, vector<1x2x128xf32>,
    %cst_132 = arith.constant dense<0xFF800000> : vector<2xf32>
    %326 = vector.multi_reduction <maximumf>, %322, %cst_132 [1] : vector<2x128xf32> to vector<2xf32>
    %327 = vector.shape_cast %326 : vector<2xf32> to vector<2x1xf32>
    %328 = vector.broadcast %327 : vector<2x1xf32> to vector<2x128xf32>
    %329 = arith.cmpf oeq, %322, %328 : vector<2x128xf32>
    %c128_i32_133 = arith.constant 128 : i32
    %330 = vector.broadcast %c128_i32_133 : i32 to vector<2x128xi32>
    %331 = arith.select %329, %192, %330 : vector<2x128xi1>, vector<2x128xi32>
    %cst_134 = arith.constant dense<2147483647> : vector<2xi32>
    %332 = vector.multi_reduction <minsi>, %331, %cst_134 [1] : vector<2x128xi32> to vector<2xi32>
    %333 = vector.shape_cast %332 : vector<2xi32> to vector<2x1xi32>
    %334 = arith.sitofp %333 : vector<2x1xi32> to vector<2x1xf32>
    %c2_135 = arith.constant 2 : index
    %c0_136 = arith.constant 0 : index
    %c0_137 = arith.constant 0 : index
    %335 = vector.load %arg17[%c2_135, %c0_136, %c0_137] : memref<8x2x1xf32, #tpu.memory_space<vmem>>, vector<1x2x1xf32>
    %336 = vector.shape_cast %335 : vector<1x2x1xf32> to vector<2x1xf32>
    %337 = vector.shape_cast %334 : vector<2x1xf32> to vector<1x2x1xf32>
    tpu.vector_store %arg17[%c2_135, %c0_136, %c0_137], %337 {strides = array<i32>} : memref<8x2x1xf32, #tpu.memory_space<vmem>>, vector<1x2x1xf32>,
    %338 = vector.broadcast %333 : vector<2x1xi32> to vector<2x128xi32>
    %339 = arith.cmpi eq, %192, %338 : vector<2x128xi32>
    %340 = arith.extui %339 : vector<2x128xi1> to vector<2x128xi32>
    %341 = arith.sitofp %340 : vector<2x128xi32> to vector<2x128xf32>
    %342 = arith.truncf %341 : vector<2x128xf32> to vector<2x128xbf16>
    %343 = arith.truncf %318 : vector<2x32xf32> to vector<2x32xbf16>
    %344 = tpu.concatenate %342, %343 in 1 : vector<2x128xbf16>, vector<2x32xbf16> -> vector<2x160xbf16>
    %cst_138 = arith.constant dense<0.000000e+00> : vector<2x32xf32>
    %345 = tpu.matmul %344, %194, %cst_138 {dimension_numbers = #tpu.dot_dimension_numbers<[1], [0], [0], [1], [0, 0, 1, 1], [], []>} : vector<2x160xbf16>, vector<160x32xbf16>, vector<2x32xf32> -> vector<2x32xf32>
    %346 = vector.extract_strided_slice %201 {offsets = [0, 0], sizes = [1, 32], strides = [1, 1]} : vector<4x32xf32> to vector<1x32xf32>
    %347 = vector.broadcast %346 : vector<1x32xf32> to vector<2x32xf32>
    %348 = arith.addf %345, %347 : vector<2x32xf32>
    %cst_139 = arith.constant dense<0.000000e+00> : vector<2x32xf32>
    %349 = tpu.matmul %344, %196, %cst_139 {dimension_numbers = #tpu.dot_dimension_numbers<[1], [0], [0], [1], [0, 0, 1, 1], [], []>} : vector<2x160xbf16>, vector<160x32xbf16>, vector<2x32xf32> -> vector<2x32xf32>
    %350 = vector.extract_strided_slice %201 {offsets = [1, 0], sizes = [1, 32], strides = [1, 1]} : vector<4x32xf32> to vector<1x32xf32>
    %351 = vector.broadcast %350 : vector<1x32xf32> to vector<2x32xf32>
    %352 = arith.addf %349, %351 : vector<2x32xf32>
    %cst_140 = arith.constant dense<0.000000e+00> : vector<2x32xf32>
    %353 = tpu.matmul %344, %198, %cst_140 {dimension_numbers = #tpu.dot_dimension_numbers<[1], [0], [0], [1], [0, 0, 1, 1], [], []>} : vector<2x160xbf16>, vector<160x32xbf16>, vector<2x32xf32> -> vector<2x32xf32>
    %354 = vector.extract_strided_slice %201 {offsets = [2, 0], sizes = [1, 32], strides = [1, 1]} : vector<4x32xf32> to vector<1x32xf32>
    %355 = vector.broadcast %354 : vector<1x32xf32> to vector<2x32xf32>
    %356 = arith.addf %353, %355 : vector<2x32xf32>
    %cst_141 = arith.constant dense<0.000000e+00> : vector<2x32xf32>
    %357 = tpu.matmul %344, %200, %cst_141 {dimension_numbers = #tpu.dot_dimension_numbers<[1], [0], [0], [1], [0, 0, 1, 1], [], []>} : vector<2x160xbf16>, vector<160x32xbf16>, vector<2x32xf32> -> vector<2x32xf32>
    %358 = vector.extract_strided_slice %201 {offsets = [3, 0], sizes = [1, 32], strides = [1, 1]} : vector<4x32xf32> to vector<1x32xf32>
    %359 = vector.broadcast %358 : vector<1x32xf32> to vector<2x32xf32>
    %360 = arith.addf %357, %359 : vector<2x32xf32>
    %361 = arith.negf %348 : vector<2x32xf32>
    %362 = math.exp %361 : vector<2x32xf32>
    %cst_142 = arith.constant 1.000000e+00 : f32
    %363 = vector.broadcast %cst_142 : f32 to vector<2x32xf32>
    %364 = arith.addf %363, %362 : vector<2x32xf32>
    %365 = arith.divf %363, %364 : vector<2x32xf32>
    %366 = arith.negf %352 : vector<2x32xf32>
    %367 = math.exp %366 : vector<2x32xf32>
    %cst_143 = arith.constant 1.000000e+00 : f32
    %368 = vector.broadcast %cst_143 : f32 to vector<2x32xf32>
    %369 = arith.addf %368, %367 : vector<2x32xf32>
    %370 = arith.divf %368, %369 : vector<2x32xf32>
    %371 = math.tanh %356 : vector<2x32xf32>
    %372 = arith.negf %360 : vector<2x32xf32>
    %373 = math.exp %372 : vector<2x32xf32>
    %cst_144 = arith.constant 1.000000e+00 : f32
    %374 = vector.broadcast %cst_144 : f32 to vector<2x32xf32>
    %375 = arith.addf %374, %373 : vector<2x32xf32>
    %376 = arith.divf %374, %375 : vector<2x32xf32>
    %377 = arith.mulf %370, %316 : vector<2x32xf32>
    %378 = arith.mulf %365, %371 : vector<2x32xf32>
    %379 = arith.addf %377, %378 : vector<2x32xf32>
    %380 = math.tanh %379 : vector<2x32xf32>
    %381 = arith.mulf %376, %380 : vector<2x32xf32>
    %382 = arith.truncf %381 : vector<2x32xf32> to vector<2x32xbf16>
    %cst_145 = arith.constant dense<0.000000e+00> : vector<2x128xf32>
    %383 = tpu.matmul %382, %202, %cst_145 {dimension_numbers = #tpu.dot_dimension_numbers<[1], [0], [0], [1], [0, 0, 1, 1], [], []>} : vector<2x32xbf16>, vector<32x128xbf16>, vector<2x128xf32> -> vector<2x128xf32>
    %384 = vector.broadcast %203 : vector<1x128xf32> to vector<2x128xf32>
    %385 = arith.addf %383, %384 : vector<2x128xf32>
    %c3_146 = arith.constant 3 : index
    %c0_147 = arith.constant 0 : index
    %c0_148 = arith.constant 0 : index
    %386 = vector.load %arg16[%c3_146, %c0_147, %c0_148] : memref<8x2x128xf32, #tpu.memory_space<vmem>>, vector<1x2x128xf32>
    %387 = vector.shape_cast %386 : vector<1x2x128xf32> to vector<2x128xf32>
    %388 = vector.shape_cast %385 : vector<2x128xf32> to vector<1x2x128xf32>
    tpu.vector_store %arg16[%c3_146, %c0_147, %c0_148], %388 {strides = array<i32>} : memref<8x2x128xf32, #tpu.memory_space<vmem>>, vector<1x2x128xf32>,
    %cst_149 = arith.constant dense<0xFF800000> : vector<2xf32>
    %389 = vector.multi_reduction <maximumf>, %385, %cst_149 [1] : vector<2x128xf32> to vector<2xf32>
    %390 = vector.shape_cast %389 : vector<2xf32> to vector<2x1xf32>
    %391 = vector.broadcast %390 : vector<2x1xf32> to vector<2x128xf32>
    %392 = arith.cmpf oeq, %385, %391 : vector<2x128xf32>
    %c128_i32_150 = arith.constant 128 : i32
    %393 = vector.broadcast %c128_i32_150 : i32 to vector<2x128xi32>
    %394 = arith.select %392, %192, %393 : vector<2x128xi1>, vector<2x128xi32>
    %cst_151 = arith.constant dense<2147483647> : vector<2xi32>
    %395 = vector.multi_reduction <minsi>, %394, %cst_151 [1] : vector<2x128xi32> to vector<2xi32>
    %396 = vector.shape_cast %395 : vector<2xi32> to vector<2x1xi32>
    %397 = arith.sitofp %396 : vector<2x1xi32> to vector<2x1xf32>
    %c3_152 = arith.constant 3 : index
    %c0_153 = arith.constant 0 : index
    %c0_154 = arith.constant 0 : index
    %398 = vector.load %arg17[%c3_152, %c0_153, %c0_154] : memref<8x2x1xf32, #tpu.memory_space<vmem>>, vector<1x2x1xf32>
    %399 = vector.shape_cast %398 : vector<1x2x1xf32> to vector<2x1xf32>
    %400 = vector.shape_cast %397 : vector<2x1xf32> to vector<1x2x1xf32>
    tpu.vector_store %arg17[%c3_152, %c0_153, %c0_154], %400 {strides = array<i32>} : memref<8x2x1xf32, #tpu.memory_space<vmem>>, vector<1x2x1xf32>,
    %401 = vector.broadcast %396 : vector<2x1xi32> to vector<2x128xi32>
    %402 = arith.cmpi eq, %192, %401 : vector<2x128xi32>
    %403 = arith.extui %402 : vector<2x128xi1> to vector<2x128xi32>
    %404 = arith.sitofp %403 : vector<2x128xi32> to vector<2x128xf32>
    %405 = arith.truncf %404 : vector<2x128xf32> to vector<2x128xbf16>
    %406 = arith.truncf %381 : vector<2x32xf32> to vector<2x32xbf16>
    %407 = tpu.concatenate %405, %406 in 1 : vector<2x128xbf16>, vector<2x32xbf16> -> vector<2x160xbf16>
    %cst_155 = arith.constant dense<0.000000e+00> : vector<2x32xf32>
    %408 = tpu.matmul %407, %194, %cst_155 {dimension_numbers = #tpu.dot_dimension_numbers<[1], [0], [0], [1], [0, 0, 1, 1], [], []>} : vector<2x160xbf16>, vector<160x32xbf16>, vector<2x32xf32> -> vector<2x32xf32>
    %409 = vector.extract_strided_slice %201 {offsets = [0, 0], sizes = [1, 32], strides = [1, 1]} : vector<4x32xf32> to vector<1x32xf32>
    %410 = vector.broadcast %409 : vector<1x32xf32> to vector<2x32xf32>
    %411 = arith.addf %408, %410 : vector<2x32xf32>
    %cst_156 = arith.constant dense<0.000000e+00> : vector<2x32xf32>
    %412 = tpu.matmul %407, %196, %cst_156 {dimension_numbers = #tpu.dot_dimension_numbers<[1], [0], [0], [1], [0, 0, 1, 1], [], []>} : vector<2x160xbf16>, vector<160x32xbf16>, vector<2x32xf32> -> vector<2x32xf32>
    %413 = vector.extract_strided_slice %201 {offsets = [1, 0], sizes = [1, 32], strides = [1, 1]} : vector<4x32xf32> to vector<1x32xf32>
    %414 = vector.broadcast %413 : vector<1x32xf32> to vector<2x32xf32>
    %415 = arith.addf %412, %414 : vector<2x32xf32>
    %cst_157 = arith.constant dense<0.000000e+00> : vector<2x32xf32>
    %416 = tpu.matmul %407, %198, %cst_157 {dimension_numbers = #tpu.dot_dimension_numbers<[1], [0], [0], [1], [0, 0, 1, 1], [], []>} : vector<2x160xbf16>, vector<160x32xbf16>, vector<2x32xf32> -> vector<2x32xf32>
    %417 = vector.extract_strided_slice %201 {offsets = [2, 0], sizes = [1, 32], strides = [1, 1]} : vector<4x32xf32> to vector<1x32xf32>
    %418 = vector.broadcast %417 : vector<1x32xf32> to vector<2x32xf32>
    %419 = arith.addf %416, %418 : vector<2x32xf32>
    %cst_158 = arith.constant dense<0.000000e+00> : vector<2x32xf32>
    %420 = tpu.matmul %407, %200, %cst_158 {dimension_numbers = #tpu.dot_dimension_numbers<[1], [0], [0], [1], [0, 0, 1, 1], [], []>} : vector<2x160xbf16>, vector<160x32xbf16>, vector<2x32xf32> -> vector<2x32xf32>
    %421 = vector.extract_strided_slice %201 {offsets = [3, 0], sizes = [1, 32], strides = [1, 1]} : vector<4x32xf32> to vector<1x32xf32>
    %422 = vector.broadcast %421 : vector<1x32xf32> to vector<2x32xf32>
    %423 = arith.addf %420, %422 : vector<2x32xf32>
    %424 = arith.negf %411 : vector<2x32xf32>
    %425 = math.exp %424 : vector<2x32xf32>
    %cst_159 = arith.constant 1.000000e+00 : f32
    %426 = vector.broadcast %cst_159 : f32 to vector<2x32xf32>
    %427 = arith.addf %426, %425 : vector<2x32xf32>
    %428 = arith.divf %426, %427 : vector<2x32xf32>
    %429 = arith.negf %415 : vector<2x32xf32>
    %430 = math.exp %429 : vector<2x32xf32>
    %cst_160 = arith.constant 1.000000e+00 : f32
    %431 = vector.broadcast %cst_160 : f32 to vector<2x32xf32>
    %432 = arith.addf %431, %430 : vector<2x32xf32>
    %433 = arith.divf %431, %432 : vector<2x32xf32>
    %434 = math.tanh %419 : vector<2x32xf32>
    %435 = arith.negf %423 : vector<2x32xf32>
    %436 = math.exp %435 : vector<2x32xf32>
    %cst_161 = arith.constant 1.000000e+00 : f32
    %437 = vector.broadcast %cst_161 : f32 to vector<2x32xf32>
    %438 = arith.addf %437, %436 : vector<2x32xf32>
    %439 = arith.divf %437, %438 : vector<2x32xf32>
    %440 = arith.mulf %433, %379 : vector<2x32xf32>
    %441 = arith.mulf %428, %434 : vector<2x32xf32>
    %442 = arith.addf %440, %441 : vector<2x32xf32>
    %443 = math.tanh %442 : vector<2x32xf32>
    %444 = arith.mulf %439, %443 : vector<2x32xf32>
    %445 = arith.truncf %444 : vector<2x32xf32> to vector<2x32xbf16>
    %cst_162 = arith.constant dense<0.000000e+00> : vector<2x128xf32>
    %446 = tpu.matmul %445, %202, %cst_162 {dimension_numbers = #tpu.dot_dimension_numbers<[1], [0], [0], [1], [0, 0, 1, 1], [], []>} : vector<2x32xbf16>, vector<32x128xbf16>, vector<2x128xf32> -> vector<2x128xf32>
    %447 = vector.broadcast %203 : vector<1x128xf32> to vector<2x128xf32>
    %448 = arith.addf %446, %447 : vector<2x128xf32>
    %c4 = arith.constant 4 : index
    %c0_163 = arith.constant 0 : index
    %c0_164 = arith.constant 0 : index
    %449 = vector.load %arg16[%c4, %c0_163, %c0_164] : memref<8x2x128xf32, #tpu.memory_space<vmem>>, vector<1x2x128xf32>
    %450 = vector.shape_cast %449 : vector<1x2x128xf32> to vector<2x128xf32>
    %451 = vector.shape_cast %448 : vector<2x128xf32> to vector<1x2x128xf32>
    tpu.vector_store %arg16[%c4, %c0_163, %c0_164], %451 {strides = array<i32>} : memref<8x2x128xf32, #tpu.memory_space<vmem>>, vector<1x2x128xf32>,
    %cst_165 = arith.constant dense<0xFF800000> : vector<2xf32>
    %452 = vector.multi_reduction <maximumf>, %448, %cst_165 [1] : vector<2x128xf32> to vector<2xf32>
    %453 = vector.shape_cast %452 : vector<2xf32> to vector<2x1xf32>
    %454 = vector.broadcast %453 : vector<2x1xf32> to vector<2x128xf32>
    %455 = arith.cmpf oeq, %448, %454 : vector<2x128xf32>
    %c128_i32_166 = arith.constant 128 : i32
    %456 = vector.broadcast %c128_i32_166 : i32 to vector<2x128xi32>
    %457 = arith.select %455, %192, %456 : vector<2x128xi1>, vector<2x128xi32>
    %cst_167 = arith.constant dense<2147483647> : vector<2xi32>
    %458 = vector.multi_reduction <minsi>, %457, %cst_167 [1] : vector<2x128xi32> to vector<2xi32>
    %459 = vector.shape_cast %458 : vector<2xi32> to vector<2x1xi32>
    %460 = arith.sitofp %459 : vector<2x1xi32> to vector<2x1xf32>
    %c4_168 = arith.constant 4 : index
    %c0_169 = arith.constant 0 : index
    %c0_170 = arith.constant 0 : index
    %461 = vector.load %arg17[%c4_168, %c0_169, %c0_170] : memref<8x2x1xf32, #tpu.memory_space<vmem>>, vector<1x2x1xf32>
    %462 = vector.shape_cast %461 : vector<1x2x1xf32> to vector<2x1xf32>
    %463 = vector.shape_cast %460 : vector<2x1xf32> to vector<1x2x1xf32>
    tpu.vector_store %arg17[%c4_168, %c0_169, %c0_170], %463 {strides = array<i32>} : memref<8x2x1xf32, #tpu.memory_space<vmem>>, vector<1x2x1xf32>,
    %464 = vector.broadcast %459 : vector<2x1xi32> to vector<2x128xi32>
    %465 = arith.cmpi eq, %192, %464 : vector<2x128xi32>
    %466 = arith.extui %465 : vector<2x128xi1> to vector<2x128xi32>
    %467 = arith.sitofp %466 : vector<2x128xi32> to vector<2x128xf32>
    %468 = arith.truncf %467 : vector<2x128xf32> to vector<2x128xbf16>
    %469 = arith.truncf %444 : vector<2x32xf32> to vector<2x32xbf16>
    %470 = tpu.concatenate %468, %469 in 1 : vector<2x128xbf16>, vector<2x32xbf16> -> vector<2x160xbf16>
    %cst_171 = arith.constant dense<0.000000e+00> : vector<2x32xf32>
    %471 = tpu.matmul %470, %194, %cst_171 {dimension_numbers = #tpu.dot_dimension_numbers<[1], [0], [0], [1], [0, 0, 1, 1], [], []>} : vector<2x160xbf16>, vector<160x32xbf16>, vector<2x32xf32> -> vector<2x32xf32>
    %472 = vector.extract_strided_slice %201 {offsets = [0, 0], sizes = [1, 32], strides = [1, 1]} : vector<4x32xf32> to vector<1x32xf32>
    %473 = vector.broadcast %472 : vector<1x32xf32> to vector<2x32xf32>
    %474 = arith.addf %471, %473 : vector<2x32xf32>
    %cst_172 = arith.constant dense<0.000000e+00> : vector<2x32xf32>
    %475 = tpu.matmul %470, %196, %cst_172 {dimension_numbers = #tpu.dot_dimension_numbers<[1], [0], [0], [1], [0, 0, 1, 1], [], []>} : vector<2x160xbf16>, vector<160x32xbf16>, vector<2x32xf32> -> vector<2x32xf32>
    %476 = vector.extract_strided_slice %201 {offsets = [1, 0], sizes = [1, 32], strides = [1, 1]} : vector<4x32xf32> to vector<1x32xf32>
    %477 = vector.broadcast %476 : vector<1x32xf32> to vector<2x32xf32>
    %478 = arith.addf %475, %477 : vector<2x32xf32>
    %cst_173 = arith.constant dense<0.000000e+00> : vector<2x32xf32>
    %479 = tpu.matmul %470, %198, %cst_173 {dimension_numbers = #tpu.dot_dimension_numbers<[1], [0], [0], [1], [0, 0, 1, 1], [], []>} : vector<2x160xbf16>, vector<160x32xbf16>, vector<2x32xf32> -> vector<2x32xf32>
    %480 = vector.extract_strided_slice %201 {offsets = [2, 0], sizes = [1, 32], strides = [1, 1]} : vector<4x32xf32> to vector<1x32xf32>
    %481 = vector.broadcast %480 : vector<1x32xf32> to vector<2x32xf32>
    %482 = arith.addf %479, %481 : vector<2x32xf32>
    %cst_174 = arith.constant dense<0.000000e+00> : vector<2x32xf32>
    %483 = tpu.matmul %470, %200, %cst_174 {dimension_numbers = #tpu.dot_dimension_numbers<[1], [0], [0], [1], [0, 0, 1, 1], [], []>} : vector<2x160xbf16>, vector<160x32xbf16>, vector<2x32xf32> -> vector<2x32xf32>
    %484 = vector.extract_strided_slice %201 {offsets = [3, 0], sizes = [1, 32], strides = [1, 1]} : vector<4x32xf32> to vector<1x32xf32>
    %485 = vector.broadcast %484 : vector<1x32xf32> to vector<2x32xf32>
    %486 = arith.addf %483, %485 : vector<2x32xf32>
    %487 = arith.negf %474 : vector<2x32xf32>
    %488 = math.exp %487 : vector<2x32xf32>
    %cst_175 = arith.constant 1.000000e+00 : f32
    %489 = vector.broadcast %cst_175 : f32 to vector<2x32xf32>
    %490 = arith.addf %489, %488 : vector<2x32xf32>
    %491 = arith.divf %489, %490 : vector<2x32xf32>
    %492 = arith.negf %478 : vector<2x32xf32>
    %493 = math.exp %492 : vector<2x32xf32>
    %cst_176 = arith.constant 1.000000e+00 : f32
    %494 = vector.broadcast %cst_176 : f32 to vector<2x32xf32>
    %495 = arith.addf %494, %493 : vector<2x32xf32>
    %496 = arith.divf %494, %495 : vector<2x32xf32>
    %497 = math.tanh %482 : vector<2x32xf32>
    %498 = arith.negf %486 : vector<2x32xf32>
    %499 = math.exp %498 : vector<2x32xf32>
    %cst_177 = arith.constant 1.000000e+00 : f32
    %500 = vector.broadcast %cst_177 : f32 to vector<2x32xf32>
    %501 = arith.addf %500, %499 : vector<2x32xf32>
    %502 = arith.divf %500, %501 : vector<2x32xf32>
    %503 = arith.mulf %496, %442 : vector<2x32xf32>
    %504 = arith.mulf %491, %497 : vector<2x32xf32>
    %505 = arith.addf %503, %504 : vector<2x32xf32>
    %506 = math.tanh %505 : vector<2x32xf32>
    %507 = arith.mulf %502, %506 : vector<2x32xf32>
    %508 = arith.truncf %507 : vector<2x32xf32> to vector<2x32xbf16>
    %cst_178 = arith.constant dense<0.000000e+00> : vector<2x128xf32>
    %509 = tpu.matmul %508, %202, %cst_178 {dimension_numbers = #tpu.dot_dimension_numbers<[1], [0], [0], [1], [0, 0, 1, 1], [], []>} : vector<2x32xbf16>, vector<32x128xbf16>, vector<2x128xf32> -> vector<2x128xf32>
    %510 = vector.broadcast %203 : vector<1x128xf32> to vector<2x128xf32>
    %511 = arith.addf %509, %510 : vector<2x128xf32>
    %c5 = arith.constant 5 : index
    %c0_179 = arith.constant 0 : index
    %c0_180 = arith.constant 0 : index
    %512 = vector.load %arg16[%c5, %c0_179, %c0_180] : memref<8x2x128xf32, #tpu.memory_space<vmem>>, vector<1x2x128xf32>
    %513 = vector.shape_cast %512 : vector<1x2x128xf32> to vector<2x128xf32>
    %514 = vector.shape_cast %511 : vector<2x128xf32> to vector<1x2x128xf32>
    tpu.vector_store %arg16[%c5, %c0_179, %c0_180], %514 {strides = array<i32>} : memref<8x2x128xf32, #tpu.memory_space<vmem>>, vector<1x2x128xf32>,
    %cst_181 = arith.constant dense<0xFF800000> : vector<2xf32>
    %515 = vector.multi_reduction <maximumf>, %511, %cst_181 [1] : vector<2x128xf32> to vector<2xf32>
    %516 = vector.shape_cast %515 : vector<2xf32> to vector<2x1xf32>
    %517 = vector.broadcast %516 : vector<2x1xf32> to vector<2x128xf32>
    %518 = arith.cmpf oeq, %511, %517 : vector<2x128xf32>
    %c128_i32_182 = arith.constant 128 : i32
    %519 = vector.broadcast %c128_i32_182 : i32 to vector<2x128xi32>
    %520 = arith.select %518, %192, %519 : vector<2x128xi1>, vector<2x128xi32>
    %cst_183 = arith.constant dense<2147483647> : vector<2xi32>
    %521 = vector.multi_reduction <minsi>, %520, %cst_183 [1] : vector<2x128xi32> to vector<2xi32>
    %522 = vector.shape_cast %521 : vector<2xi32> to vector<2x1xi32>
    %523 = arith.sitofp %522 : vector<2x1xi32> to vector<2x1xf32>
    %c5_184 = arith.constant 5 : index
    %c0_185 = arith.constant 0 : index
    %c0_186 = arith.constant 0 : index
    %524 = vector.load %arg17[%c5_184, %c0_185, %c0_186] : memref<8x2x1xf32, #tpu.memory_space<vmem>>, vector<1x2x1xf32>
    %525 = vector.shape_cast %524 : vector<1x2x1xf32> to vector<2x1xf32>
    %526 = vector.shape_cast %523 : vector<2x1xf32> to vector<1x2x1xf32>
    tpu.vector_store %arg17[%c5_184, %c0_185, %c0_186], %526 {strides = array<i32>} : memref<8x2x1xf32, #tpu.memory_space<vmem>>, vector<1x2x1xf32>,
    %527 = vector.broadcast %522 : vector<2x1xi32> to vector<2x128xi32>
    %528 = arith.cmpi eq, %192, %527 : vector<2x128xi32>
    %529 = arith.extui %528 : vector<2x128xi1> to vector<2x128xi32>
    %530 = arith.sitofp %529 : vector<2x128xi32> to vector<2x128xf32>
    %531 = arith.truncf %530 : vector<2x128xf32> to vector<2x128xbf16>
    %532 = arith.truncf %507 : vector<2x32xf32> to vector<2x32xbf16>
    %533 = tpu.concatenate %531, %532 in 1 : vector<2x128xbf16>, vector<2x32xbf16> -> vector<2x160xbf16>
    %cst_187 = arith.constant dense<0.000000e+00> : vector<2x32xf32>
    %534 = tpu.matmul %533, %194, %cst_187 {dimension_numbers = #tpu.dot_dimension_numbers<[1], [0], [0], [1], [0, 0, 1, 1], [], []>} : vector<2x160xbf16>, vector<160x32xbf16>, vector<2x32xf32> -> vector<2x32xf32>
    %535 = vector.extract_strided_slice %201 {offsets = [0, 0], sizes = [1, 32], strides = [1, 1]} : vector<4x32xf32> to vector<1x32xf32>
    %536 = vector.broadcast %535 : vector<1x32xf32> to vector<2x32xf32>
    %537 = arith.addf %534, %536 : vector<2x32xf32>
    %cst_188 = arith.constant dense<0.000000e+00> : vector<2x32xf32>
    %538 = tpu.matmul %533, %196, %cst_188 {dimension_numbers = #tpu.dot_dimension_numbers<[1], [0], [0], [1], [0, 0, 1, 1], [], []>} : vector<2x160xbf16>, vector<160x32xbf16>, vector<2x32xf32> -> vector<2x32xf32>
    %539 = vector.extract_strided_slice %201 {offsets = [1, 0], sizes = [1, 32], strides = [1, 1]} : vector<4x32xf32> to vector<1x32xf32>
    %540 = vector.broadcast %539 : vector<1x32xf32> to vector<2x32xf32>
    %541 = arith.addf %538, %540 : vector<2x32xf32>
    %cst_189 = arith.constant dense<0.000000e+00> : vector<2x32xf32>
    %542 = tpu.matmul %533, %198, %cst_189 {dimension_numbers = #tpu.dot_dimension_numbers<[1], [0], [0], [1], [0, 0, 1, 1], [], []>} : vector<2x160xbf16>, vector<160x32xbf16>, vector<2x32xf32> -> vector<2x32xf32>
    %543 = vector.extract_strided_slice %201 {offsets = [2, 0], sizes = [1, 32], strides = [1, 1]} : vector<4x32xf32> to vector<1x32xf32>
    %544 = vector.broadcast %543 : vector<1x32xf32> to vector<2x32xf32>
    %545 = arith.addf %542, %544 : vector<2x32xf32>
    %cst_190 = arith.constant dense<0.000000e+00> : vector<2x32xf32>
    %546 = tpu.matmul %533, %200, %cst_190 {dimension_numbers = #tpu.dot_dimension_numbers<[1], [0], [0], [1], [0, 0, 1, 1], [], []>} : vector<2x160xbf16>, vector<160x32xbf16>, vector<2x32xf32> -> vector<2x32xf32>
    %547 = vector.extract_strided_slice %201 {offsets = [3, 0], sizes = [1, 32], strides = [1, 1]} : vector<4x32xf32> to vector<1x32xf32>
    %548 = vector.broadcast %547 : vector<1x32xf32> to vector<2x32xf32>
    %549 = arith.addf %546, %548 : vector<2x32xf32>
    %550 = arith.negf %537 : vector<2x32xf32>
    %551 = math.exp %550 : vector<2x32xf32>
    %cst_191 = arith.constant 1.000000e+00 : f32
    %552 = vector.broadcast %cst_191 : f32 to vector<2x32xf32>
    %553 = arith.addf %552, %551 : vector<2x32xf32>
    %554 = arith.divf %552, %553 : vector<2x32xf32>
    %555 = arith.negf %541 : vector<2x32xf32>
    %556 = math.exp %555 : vector<2x32xf32>
    %cst_192 = arith.constant 1.000000e+00 : f32
    %557 = vector.broadcast %cst_192 : f32 to vector<2x32xf32>
    %558 = arith.addf %557, %556 : vector<2x32xf32>
    %559 = arith.divf %557, %558 : vector<2x32xf32>
    %560 = math.tanh %545 : vector<2x32xf32>
    %561 = arith.negf %549 : vector<2x32xf32>
    %562 = math.exp %561 : vector<2x32xf32>
    %cst_193 = arith.constant 1.000000e+00 : f32
    %563 = vector.broadcast %cst_193 : f32 to vector<2x32xf32>
    %564 = arith.addf %563, %562 : vector<2x32xf32>
    %565 = arith.divf %563, %564 : vector<2x32xf32>
    %566 = arith.mulf %559, %505 : vector<2x32xf32>
    %567 = arith.mulf %554, %560 : vector<2x32xf32>
    %568 = arith.addf %566, %567 : vector<2x32xf32>
    %569 = math.tanh %568 : vector<2x32xf32>
    %570 = arith.mulf %565, %569 : vector<2x32xf32>
    %571 = arith.truncf %570 : vector<2x32xf32> to vector<2x32xbf16>
    %cst_194 = arith.constant dense<0.000000e+00> : vector<2x128xf32>
    %572 = tpu.matmul %571, %202, %cst_194 {dimension_numbers = #tpu.dot_dimension_numbers<[1], [0], [0], [1], [0, 0, 1, 1], [], []>} : vector<2x32xbf16>, vector<32x128xbf16>, vector<2x128xf32> -> vector<2x128xf32>
    %573 = vector.broadcast %203 : vector<1x128xf32> to vector<2x128xf32>
    %574 = arith.addf %572, %573 : vector<2x128xf32>
    %c6 = arith.constant 6 : index
    %c0_195 = arith.constant 0 : index
    %c0_196 = arith.constant 0 : index
    %575 = vector.load %arg16[%c6, %c0_195, %c0_196] : memref<8x2x128xf32, #tpu.memory_space<vmem>>, vector<1x2x128xf32>
    %576 = vector.shape_cast %575 : vector<1x2x128xf32> to vector<2x128xf32>
    %577 = vector.shape_cast %574 : vector<2x128xf32> to vector<1x2x128xf32>
    tpu.vector_store %arg16[%c6, %c0_195, %c0_196], %577 {strides = array<i32>} : memref<8x2x128xf32, #tpu.memory_space<vmem>>, vector<1x2x128xf32>,
    %cst_197 = arith.constant dense<0xFF800000> : vector<2xf32>
    %578 = vector.multi_reduction <maximumf>, %574, %cst_197 [1] : vector<2x128xf32> to vector<2xf32>
    %579 = vector.shape_cast %578 : vector<2xf32> to vector<2x1xf32>
    %580 = vector.broadcast %579 : vector<2x1xf32> to vector<2x128xf32>
    %581 = arith.cmpf oeq, %574, %580 : vector<2x128xf32>
    %c128_i32_198 = arith.constant 128 : i32
    %582 = vector.broadcast %c128_i32_198 : i32 to vector<2x128xi32>
    %583 = arith.select %581, %192, %582 : vector<2x128xi1>, vector<2x128xi32>
    %cst_199 = arith.constant dense<2147483647> : vector<2xi32>
    %584 = vector.multi_reduction <minsi>, %583, %cst_199 [1] : vector<2x128xi32> to vector<2xi32>
    %585 = vector.shape_cast %584 : vector<2xi32> to vector<2x1xi32>
    %586 = arith.sitofp %585 : vector<2x1xi32> to vector<2x1xf32>
    %c6_200 = arith.constant 6 : index
    %c0_201 = arith.constant 0 : index
    %c0_202 = arith.constant 0 : index
    %587 = vector.load %arg17[%c6_200, %c0_201, %c0_202] : memref<8x2x1xf32, #tpu.memory_space<vmem>>, vector<1x2x1xf32>
    %588 = vector.shape_cast %587 : vector<1x2x1xf32> to vector<2x1xf32>
    %589 = vector.shape_cast %586 : vector<2x1xf32> to vector<1x2x1xf32>
    tpu.vector_store %arg17[%c6_200, %c0_201, %c0_202], %589 {strides = array<i32>} : memref<8x2x1xf32, #tpu.memory_space<vmem>>, vector<1x2x1xf32>,
    %590 = vector.broadcast %585 : vector<2x1xi32> to vector<2x128xi32>
    %591 = arith.cmpi eq, %192, %590 : vector<2x128xi32>
    %592 = arith.extui %591 : vector<2x128xi1> to vector<2x128xi32>
    %593 = arith.sitofp %592 : vector<2x128xi32> to vector<2x128xf32>
    %594 = arith.truncf %593 : vector<2x128xf32> to vector<2x128xbf16>
    %595 = arith.truncf %570 : vector<2x32xf32> to vector<2x32xbf16>
    %596 = tpu.concatenate %594, %595 in 1 : vector<2x128xbf16>, vector<2x32xbf16> -> vector<2x160xbf16>
    %cst_203 = arith.constant dense<0.000000e+00> : vector<2x32xf32>
    %597 = tpu.matmul %596, %194, %cst_203 {dimension_numbers = #tpu.dot_dimension_numbers<[1], [0], [0], [1], [0, 0, 1, 1], [], []>} : vector<2x160xbf16>, vector<160x32xbf16>, vector<2x32xf32> -> vector<2x32xf32>
    %598 = vector.extract_strided_slice %201 {offsets = [0, 0], sizes = [1, 32], strides = [1, 1]} : vector<4x32xf32> to vector<1x32xf32>
    %599 = vector.broadcast %598 : vector<1x32xf32> to vector<2x32xf32>
    %600 = arith.addf %597, %599 : vector<2x32xf32>
    %cst_204 = arith.constant dense<0.000000e+00> : vector<2x32xf32>
    %601 = tpu.matmul %596, %196, %cst_204 {dimension_numbers = #tpu.dot_dimension_numbers<[1], [0], [0], [1], [0, 0, 1, 1], [], []>} : vector<2x160xbf16>, vector<160x32xbf16>, vector<2x32xf32> -> vector<2x32xf32>
    %602 = vector.extract_strided_slice %201 {offsets = [1, 0], sizes = [1, 32], strides = [1, 1]} : vector<4x32xf32> to vector<1x32xf32>
    %603 = vector.broadcast %602 : vector<1x32xf32> to vector<2x32xf32>
    %604 = arith.addf %601, %603 : vector<2x32xf32>
    %cst_205 = arith.constant dense<0.000000e+00> : vector<2x32xf32>
    %605 = tpu.matmul %596, %198, %cst_205 {dimension_numbers = #tpu.dot_dimension_numbers<[1], [0], [0], [1], [0, 0, 1, 1], [], []>} : vector<2x160xbf16>, vector<160x32xbf16>, vector<2x32xf32> -> vector<2x32xf32>
    %606 = vector.extract_strided_slice %201 {offsets = [2, 0], sizes = [1, 32], strides = [1, 1]} : vector<4x32xf32> to vector<1x32xf32>
    %607 = vector.broadcast %606 : vector<1x32xf32> to vector<2x32xf32>
    %608 = arith.addf %605, %607 : vector<2x32xf32>
    %cst_206 = arith.constant dense<0.000000e+00> : vector<2x32xf32>
    %609 = tpu.matmul %596, %200, %cst_206 {dimension_numbers = #tpu.dot_dimension_numbers<[1], [0], [0], [1], [0, 0, 1, 1], [], []>} : vector<2x160xbf16>, vector<160x32xbf16>, vector<2x32xf32> -> vector<2x32xf32>
    %610 = vector.extract_strided_slice %201 {offsets = [3, 0], sizes = [1, 32], strides = [1, 1]} : vector<4x32xf32> to vector<1x32xf32>
    %611 = vector.broadcast %610 : vector<1x32xf32> to vector<2x32xf32>
    %612 = arith.addf %609, %611 : vector<2x32xf32>
    %613 = arith.negf %600 : vector<2x32xf32>
    %614 = math.exp %613 : vector<2x32xf32>
    %cst_207 = arith.constant 1.000000e+00 : f32
    %615 = vector.broadcast %cst_207 : f32 to vector<2x32xf32>
    %616 = arith.addf %615, %614 : vector<2x32xf32>
    %617 = arith.divf %615, %616 : vector<2x32xf32>
    %618 = arith.negf %604 : vector<2x32xf32>
    %619 = math.exp %618 : vector<2x32xf32>
    %cst_208 = arith.constant 1.000000e+00 : f32
    %620 = vector.broadcast %cst_208 : f32 to vector<2x32xf32>
    %621 = arith.addf %620, %619 : vector<2x32xf32>
    %622 = arith.divf %620, %621 : vector<2x32xf32>
    %623 = math.tanh %608 : vector<2x32xf32>
    %624 = arith.negf %612 : vector<2x32xf32>
    %625 = math.exp %624 : vector<2x32xf32>
    %cst_209 = arith.constant 1.000000e+00 : f32
    %626 = vector.broadcast %cst_209 : f32 to vector<2x32xf32>
    %627 = arith.addf %626, %625 : vector<2x32xf32>
    %628 = arith.divf %626, %627 : vector<2x32xf32>
    %629 = arith.mulf %622, %568 : vector<2x32xf32>
    %630 = arith.mulf %617, %623 : vector<2x32xf32>
    %631 = arith.addf %629, %630 : vector<2x32xf32>
    %632 = math.tanh %631 : vector<2x32xf32>
    %633 = arith.mulf %628, %632 : vector<2x32xf32>
    %634 = arith.truncf %633 : vector<2x32xf32> to vector<2x32xbf16>
    %cst_210 = arith.constant dense<0.000000e+00> : vector<2x128xf32>
    %635 = tpu.matmul %634, %202, %cst_210 {dimension_numbers = #tpu.dot_dimension_numbers<[1], [0], [0], [1], [0, 0, 1, 1], [], []>} : vector<2x32xbf16>, vector<32x128xbf16>, vector<2x128xf32> -> vector<2x128xf32>
    %636 = vector.broadcast %203 : vector<1x128xf32> to vector<2x128xf32>
    %637 = arith.addf %635, %636 : vector<2x128xf32>
    %c7 = arith.constant 7 : index
    %c0_211 = arith.constant 0 : index
    %c0_212 = arith.constant 0 : index
    %638 = vector.load %arg16[%c7, %c0_211, %c0_212] : memref<8x2x128xf32, #tpu.memory_space<vmem>>, vector<1x2x128xf32>
    %639 = vector.shape_cast %638 : vector<1x2x128xf32> to vector<2x128xf32>
    %640 = vector.shape_cast %637 : vector<2x128xf32> to vector<1x2x128xf32>
    tpu.vector_store %arg16[%c7, %c0_211, %c0_212], %640 {strides = array<i32>} : memref<8x2x128xf32, #tpu.memory_space<vmem>>, vector<1x2x128xf32>,
    %cst_213 = arith.constant dense<0xFF800000> : vector<2xf32>
    %641 = vector.multi_reduction <maximumf>, %637, %cst_213 [1] : vector<2x128xf32> to vector<2xf32>
    %642 = vector.shape_cast %641 : vector<2xf32> to vector<2x1xf32>
    %643 = vector.broadcast %642 : vector<2x1xf32> to vector<2x128xf32>
    %644 = arith.cmpf oeq, %637, %643 : vector<2x128xf32>
    %c128_i32_214 = arith.constant 128 : i32
    %645 = vector.broadcast %c128_i32_214 : i32 to vector<2x128xi32>
    %646 = arith.select %644, %192, %645 : vector<2x128xi1>, vector<2x128xi32>
    %cst_215 = arith.constant dense<2147483647> : vector<2xi32>
    %647 = vector.multi_reduction <minsi>, %646, %cst_215 [1] : vector<2x128xi32> to vector<2xi32>
    %648 = vector.shape_cast %647 : vector<2xi32> to vector<2x1xi32>
    %649 = arith.sitofp %648 : vector<2x1xi32> to vector<2x1xf32>
    %c7_216 = arith.constant 7 : index
    %c0_217 = arith.constant 0 : index
    %c0_218 = arith.constant 0 : index
    %650 = vector.load %arg17[%c7_216, %c0_217, %c0_218] : memref<8x2x1xf32, #tpu.memory_space<vmem>>, vector<1x2x1xf32>
    %651 = vector.shape_cast %650 : vector<1x2x1xf32> to vector<2x1xf32>
    %652 = vector.shape_cast %649 : vector<2x1xf32> to vector<1x2x1xf32>
    tpu.vector_store %arg17[%c7_216, %c0_217, %c0_218], %652 {strides = array<i32>} : memref<8x2x1xf32, #tpu.memory_space<vmem>>, vector<1x2x1xf32>,
    return
  }
}

</mosaic_0001>

<bundles_post_ra>
// kernel: forward.1
= control target key start
LH: loop header
LB: loop body
LE: loop exit
PB: predicated region body
PF: predicated region fallthrough
CT: control target
= control target key end

     0   :  { %s5577_s0 = inlined_call_operand.vmem [shape: s32[16,1], index: 0, kind: input, shape index: {}]   ;;  %s5578_s1 = inlined_call_operand.vmem [shape: f32[16,1], index: 1, kind: input, shape index: {}]   ;;  %s5579_s2 = inlined_call_operand.vmem [shape: bf16[16,16], index: 2, kind: input, shape index: {}]   ;;  %s5580_s3 = inlined_call_operand.vmem [shape: f32[3,16,1], index: 3, kind: input, shape index: {}]   ;;  %s5581_s4 = inlined_call_operand.vmem [shape: bf16[3,128,32], index: 4, kind: input, shape index: {}]   ;;  %s5582_s5 = inlined_call_operand.vmem [shape: bf16[3,32,32], index: 5, kind: input, shape index: {}]   ;;  %s5583_s6 = inlined_call_operand.vmem [shape: bf16[32,32], index: 6, kind: input, shape index: {}]   ;;  %s5584_s7 = inlined_call_operand.vmem [shape: f32[1,32], index: 7, kind: input, shape index: {}]   ;;  %s5585_s8 = inlined_call_operand.vmem [shape: bf16[2,16], index: 8, kind: input, shape index: {}]   ;;  %s5586_s9 = inlined_call_operand.vmem [shape: bf16[32,64], index: 9, kind: input, shape index: {}]   ;;  %s5587_s10 = inlined_call_operand.vmem [shape: f32[1,64], index: 10, kind: input, shape index: {}]   ;;  %s5588_s11 = inlined_call_operand.vmem [shape: bf16[4,160,32], index: 11, kind: input, shape index: {}]   ;;  %s5589_s12 = inlined_call_operand.vmem [shape: f32[4,32], index: 12, kind: input, shape index: {}]   ;;  %s5590_s13 = inlined_call_operand.vmem [shape: bf16[32,128], index: 13, kind: input, shape index: {}]   ;;  %s5591_s14 = inlined_call_operand.vmem [shape: f32[1,128], index: 14, kind: input, shape index: {}]   ;;  %s5592_s15 = inlined_call_operand.vmem [shape: f32[2,64], index: 15, kind: output, shape index: {0}]   ;;  %s5593_s16 = inlined_call_operand.hbm [shape: f32[8,2,128], index: 16, kind: output, shape index: {1}]   ;;  %s5594_s17 = inlined_call_operand.vmem [shape: f32[8,2,1], index: 17, kind: output, shape index: {2}]  }
   0x1   :  { %5630 = sst [smem:[#allocation16_spill]] %s5577_s0 }
   0x2   :  { %5631 = sst [smem:[#allocation17_spill]] %s5578_s1 }
   0x3   :  { %s5632_s26 = sld [smem:[#allocation16_spill]]  ;;  %v4172_v1 = vld [vmem:[%s5583_s6 + $0x8] sm:$0xff]  ;;  %v4069_v2 = vmov 0   ;;  %v4178_v3 = vld [vmem:[%s5583_s6] sm:$0xff] }
   0x4   :  { %3785 = vset.pattern.permute.xlu0 %v4069_v2  ;;  %3786 = vset.pattern.permute.xlu1 %v4069_v2  ;;  %v632_v4 = vld [vmem:[%s5580_s3] sm:$0xff] }
   0x5   :  { %372 = vmatpush.bf16.msra.mxu3 %v4172_v1  ;;  %3787 = vset.pattern.permute.xlu2 %v4069_v2 }
   0x6   :  { %636 = vperm.xlu2 %3787, %v632_v4  }
   0x9   :  { %v61_v0 = vld [vmem:[%s5632_s26] sm:$0xff] }
   0xa   :  { %64 = vperm.xlu0 %3785, %v61_v0  }
   0xb   :  { %23 = vsyncpa [#allocation3], 0  ;;  %373 = vmatpush.bf16.msra.mxu3 %v4178_v3  ;;  %v62_v5 = vld [vmem:[%s5632_s26 + $0x8] sm:$0xff]  ;;  %v3709_v6 = vld [vmem:[%s5581_s4 + $0x38] sm:$0xff]  ;;  %v646_v12 = vsub.f32 1.0, %v632_v4  ;;  %vm423_vm0 = vcmask 130048   ;;  %v59_v37 = vlaneseq }
   0xc   :  { %v3717_v7 = vld [vmem:[%s5581_s4 + $0x78] sm:$0xff]  ;;  %140 = vmatpush.bf16.msra.mxu0 %v3709_v6  ;;  %v3708_v9 = vld [vmem:[%s5581_s4 + $0x30] sm:$0xff]  ;;  %v3707_v13 = vld [vmem:[%s5581_s4 + $0x28] sm:$0xff]  ;;  %s5633_s29 = sld [smem:[#allocation17_spill]]  ;;  %v5597_v46 = vmov 1.0|1.0  }
   0xd   :  { %v3725_v8 = vld [vmem:[%s5581_s4 + $0xb8] sm:$0xff]  ;;  %231 = vmatpush.bf16.msra.mxu1 %v3717_v7  ;;  %v3716_v10 = vld [vmem:[%s5581_s4 + $0x70] sm:$0xff]  ;;  %v3715_v14 = vld [vmem:[%s5581_s4 + $0x68] sm:$0xff]  ;;  %v4287_v39 = vand.u32 127, %v59_v37  ;;  %vm362_vm4 = vcmask 261120   ;;  %s4074_s18 = smov 32  }
   0xe   :  { %374 = vmatmul.bf16.vlgmr.msra.gmra.mxu3 %v4069_v2  ;;  %312 = vmatpush.bf16.msra.mxu2 %v3725_v8  ;;  %v3724_v11 = vld [vmem:[%s5581_s4 + $0xb0] sm:$0xff]  ;;  %v3723_v15 = vld [vmem:[%s5581_s4 + $0xa8] sm:$0xff]  ;;  %v4217_v16 = vld [vmem:[%s5579_s2] sm:$0xff]  ;;  %s4075_s19 = smov 2  }
   0xf   :  { %434 = vmatpush.bf16.msrb.mxu3 %v4069_v2  ;;  %v4222_v17 = vld [vmem:[%s5580_s3 + $0x18] sm:$0xff]  ;;  %v4230_v18 = vld [vmem:[%s5580_s3 + $0x20] sm:$0xff]  ;;  %v4236_v19 = vld [vmem:[%s5580_s3 + $0x28] sm:$0xff] }
  0x10   :  { %141 = vmatpush.bf16.msra.mxu0 %v3708_v9  ;;  %v1169_v20 = vsub.f32 1.0, %v4236_v19  ;;  %v3706_v21 = vld [vmem:[%s5581_s4 + $0x20] sm:$0xff]  ;;  %v3705_v24 = vld [vmem:[%s5581_s4 + $0x18] sm:$0xff]  ;;  %v3704_v27 = vld [vmem:[%s5581_s4 + $0x10] sm:$0xff]  ;;  %v907_v54 = vsub.f32 1.0, %v4222_v17  ;;  %v1168_v58 = vsub.f32 1.0, %v4230_v18 }
  0x11   :  { %232 = vmatpush.bf16.msra.mxu1 %v3716_v10  ;;  %v3714_v22 = vld [vmem:[%s5581_s4 + $0x60] sm:$0xff]  ;;  %v3713_v25 = vld [vmem:[%s5581_s4 + $0x58] sm:$0xff]  ;;  %v3712_v28 = vld [vmem:[%s5581_s4 + $0x50] sm:$0xff] }
  0x12   :  { %67 = vperm.xlu0 %3785, %v62_v5   ;;  %313 = vmatpush.bf16.msra.mxu2 %v3724_v11  ;;  %v3722_v23 = vld [vmem:[%s5581_s4 + $0xa0] sm:$0xff]  ;;  %v3721_v26 = vld [vmem:[%s5581_s4 + $0x98] sm:$0xff]  ;;  %v3720_v29 = vld [vmem:[%s5581_s4 + $0x90] sm:$0xff] }
  0x13   :  { %v3703_v30 = vld [vmem:[%s5581_s4 + $0x8] sm:$0xff]  ;;  %v3702_v33 = vld [vmem:[%s5581_s4] sm:$0xff]  ;;  %v4305_v44 = vld [vmem:[%s5582_s5 + $0x18] sm:$0xff] }
  0x14   :  { %142 = vmatpush.bf16.msra.mxu0 %v3707_v13  ;;  %v3711_v31 = vld [vmem:[%s5581_s4 + $0x48] sm:$0xff]  ;;  %v3710_v34 = vld [vmem:[%s5581_s4 + $0x40] sm:$0xff]  ;;  %v4326_v49 = vld [vmem:[%s5582_s5 + $0x10] sm:$0xff] }
  0x15   :  { %233 = vmatpush.bf16.msra.mxu1 %v3715_v14  ;;  %v3719_v32 = vld [vmem:[%s5581_s4 + $0x88] sm:$0xff]  ;;  %v3718_v35 = vld [vmem:[%s5581_s4 + $0x80] sm:$0xff]  ;;  %v3321_v51 = vld [vmem:[%s5580_s3 + $0x10] sm:$0xff] }
  0x16   :  { %314 = vmatpush.bf16.msra.mxu2 %v3723_v15  ;;  %v55_v36 = vld [vmem:[%s5633_s29] sm:$0xff]  ;;  %v56_v40 = vld [vmem:[%s5633_s29 + $0x8] sm:$0xff]  ;;  %v906_v52 = vsub.f32 1.0, %v3321_v51 }
  0x17   :  { %156 = vperm.xlu1 %3786, %v55_v36   ;;  %v633_v42 = vld [vmem:[%s5580_s3 + $0x8] sm:$0xff]  ;;  %v4321_v48 = vld [vmem:[%s5582_s5] sm:$0xff]  ;;  %s4071_s3 = smov 96  }
  0x18   :  { %143 = vmatpush.bf16.msra.mxu0 %v3706_v21  ;;  %v4300_v43 = vld [vmem:[%s5582_s5 + $0x8] sm:$0xff]  ;;  %v647_v45 = vsub.f32 1.0, %v633_v42  ;;  %641 = vperm.xlu2 %3787, %v633_v42   ;;  %v4331_v50 = vld [vmem:[%s5582_s5 + $0x20] sm:$0xff] }
  0x19   :  { %234 = vmatpush.bf16.msra.mxu1 %v3714_v22  ;;  %v4312_v47 = vld [vmem:[%s5582_s5 + $0x28] sm:$0xff]  ;;  %v4343_v53 = vld [vmem:[%s5584_s7] ss:$0 sm:$0xff]  ;;  %s3100_s5 = sshll.u32 %s5593_s16, 4  ;;  %s3101_s5 = int_to_ptr.hbm [resolvable:$true] %s3100_s5 }
  0x1a   :  { %650 = vperm.xlu0 %3785, %v646_v12   ;;  %315 = vmatpush.bf16.msra.mxu2 %v3722_v23 }
  0x1c   :  { %144 = vmatpush.bf16.msra.mxu0 %v3705_v24 }
  0x1d   :  { %235 = vmatpush.bf16.msra.mxu1 %v3713_v25 }
  0x1e   :  { %3276 = vmatmul.msk.bf16.vlgmr.msrb.gmra.mxu3 %vm423_vm0, %v4217_v16  ;;  %316 = vmatpush.bf16.msra.mxu2 %v3721_v26 }
  0x1f   :  { %161 = vperm.xlu1 %3786, %v56_v40  }
  0x20   :  { %145 = vmatpush.bf16.msra.mxu0 %v3704_v27  ;;  %896 = vperm.xlu2 %3787, %v3321_v51  }
  0x21   :  { %236 = vmatpush.bf16.msra.mxu1 %v3712_v28 }
  0x22   :  { %901 = vperm.xlu0 %3785, %v4222_v17   ;;  %317 = vmatpush.bf16.msra.mxu2 %v3720_v29 }
  0x24   :  { %146 = vmatpush.bf16.msra.mxu0 %v3703_v30 }
  0x25   :  { %237 = vmatpush.bf16.msra.mxu1 %v3711_v31 }
  0x26   :  { %318 = vmatpush.bf16.msra.mxu2 %v3719_v32 }
  0x27   :  { %655 = vperm.xlu1 %3786, %v647_v45  }
  0x28   :  { %147 = vmatpush.bf16.msra.mxu0 %v3702_v33  ;;  %915 = vperm.xlu2 %3787, %v907_v54  }
  0x29   :  { %238 = vmatpush.bf16.msra.mxu1 %v3710_v34 }
  0x2a   :  { %1158 = vperm.xlu0 %3785, %v4230_v18   ;;  %319 = vmatpush.bf16.msra.mxu2 %v3718_v35 }
  0x2c   :  { %480 = vmatpush.bf16.msrb.mxu0 %v4300_v43 }
  0x2d   :  { %546 = vmatpush.bf16.msrb.mxu1 %v4305_v44 }
  0x2e   :  { %612 = vmatpush.bf16.msrb.mxu2 %v4312_v47 }
  0x2f   :  { %910 = vperm.xlu1 %3786, %v906_v52  }
  0x30   :  { %481 = vmatpush.bf16.msrb.mxu0 %v4321_v48  ;;  %1172 = vperm.xlu2 %3787, %v1168_v58  }
  0x31   :  { %547 = vmatpush.bf16.msrb.mxu1 %v4326_v49 }
  0x32   :  { %1177 = vperm.xlu0 %3785, %v1169_v20   ;;  %613 = vmatpush.bf16.msrb.mxu2 %v4331_v50 }
  0x37   :  { %1163 = vperm.xlu1 %3786, %v4236_v19  }
  0x7c   :  { %v65_v38 = vpop.permute.xlu0 %64 }
  0x7d   :  { %vm69_vm1 = vcmp.eq.s32.totalorder %v4287_v39, %v65_v38 }
  0x84   :  { %v68_v41 = vpop.permute.xlu0 %67 }
  0x85   :  { %vm70_vm2 = vcmp.eq.s32.totalorder %v4287_v39, %v68_v41 }
  0x86   :  { %vm3152_vm3 = vmpackc.low %vm70_vm2, %vm69_vm1 }
  0x87   :  { %3153 = vmatmul.msk.bf16.vlgmr.msra.gmra.mxu0 %vm3152_vm3, %v5597_v46  ;;  %3203 = vmatmul.msk.bf16.vlgmr.msra.gmra.mxu1 %vm3152_vm3, %v5597_v46 }
  0x88   :  { %3253 = vmatmul.msk.bf16.vlgmr.msra.gmra.mxu2 %vm3152_vm3, %v5597_v46 }
  0x89   :  { %763 = vmatpush.bf16.msra.mxu2 %v4300_v43  ;;  %v157_v35 = vpop.permute.xlu1 %156 }
  0x8d   :  { %764 = vmatpush.bf16.msra.mxu2 %v4321_v48 }
  0x91   :  { %v375_v55 = vpop.f32.mrf.mxu3  ;;  %v162_v54 = vpop.permute.xlu1 %161 }
  0x92   :  { %v376_v56 = vadd.f32 %v4343_v53, %v375_v55 }
  0x94   :  { %v3270_v57 = vmul.f32 -1.442695, %v376_v56 }
  0x96   :  { %3791 = vpow2.f32 %v3270_v57 }
  0x99   :  { %v377_v59 = vpop.f32.mrf.mxu3 }
  0x9a   :  { %v378_v60 = vadd.f32 %v4343_v53, %v377_v59 }
  0x9c   :  { %v3792_v61 = vpop.eup %3791  ;;  %v3271_v62 = vmul.f32 -1.442695, %v378_v60 }
  0x9d   :  { %v386_v63 = vadd.f32 1.0, %v3792_v61 }
  0x9e   :  { %3793 = vpow2.f32 %v3271_v62 }
  0x9f   :  { %3795 = vrcp.f32 %v386_v63  ;;  %v399_v14 = vand.u32 2147483648, %v386_v63  ;;  %vm393_vm6 = vweird.f32 %v386_v63  ;;  %v397_v17 = vand.u32 2147483647, %v386_v63 }
  0xa1   :  { %v436_v0 = vpop.f32.mrf.mxu3  ;;  %v400_v22 = vor.u32 1.1754944e-38, %v399_v14  ;;  %vm398_vm9 = vcmp.eq.f32.partialorder %v397_v17, 8.507059e+37 }
  0xa4   :  { %v3794_v2 = vpop.eup %3793 }
  0xa5   :  { %v3796_v4 = vpop.eup %3795  ;;  %v387_v5 = vadd.f32 1.0, %v3794_v2 }
  0xa6   :  { %v389_v6 = vmul.f32 %v3796_v4, %v386_v63  ;;  %vm394_vm5 = vweird.f32 %v3796_v4 }
  0xa7   :  { %3797 = vrcp.f32 %v387_v5  ;;  %vm395_vm7 = vmor %vm393_vm6, %vm394_vm5  ;;  %v414_v18 = vand.u32 2147483648, %v387_v5  ;;  %v412_v21 = vand.u32 2147483647, %v387_v5  ;;  %vm408_vm10 = vweird.f32 %v387_v5 }
  0xa8   :  { %v390_v7 = vsub.f32 1.0, %v389_v6 }
  0xa9   :  { %v438_v8 = vpop.f32.mrf.mxu3  ;;  %v415_v25 = vor.u32 1.1754944e-38, %v414_v18  ;;  %vm413_vm12 = vcmp.eq.f32.partialorder %v412_v21, 8.507059e+37 }
  0xaa   :  { %v391_v9 = vmul.f32 %v3796_v4, %v390_v7  ;;  %v458_v10 = vpack.c.bf16 %v438_v8, %v436_v0 }
  0xac   :  { %3286 = vmatmul.msk.bf16.vlgmr.msrb.gmra.mxu0 %vm362_vm4, %v458_v10  ;;  %3297 = vmatmul.msk.bf16.vlgmr.msrb.gmra.mxu1 %vm362_vm4, %v458_v10  ;;  %v392_v13 = vadd.f32 %v3796_v4, %v391_v9 }
  0xad   :  { %v3798_v11 = vpop.eup %3797  ;;  %3308 = vmatmul.msk.bf16.vlgmr.msrb.gmra.mxu2 %vm362_vm4, %v458_v10 }
  0xae   :  { %v404_v12 = vmul.f32 %v3798_v11, %v387_v5  ;;  %v396_v19 = vsel %vm395_vm7, %v3796_v4, %v392_v13  ;;  %vm409_vm8 = vweird.f32 %v3798_v11 }
  0xaf   :  { %v401_v24 = vsel %vm398_vm9, %v400_v22, %v396_v19  ;;  %vm410_vm11 = vmor %vm408_vm10, %vm409_vm8 }
  0xb0   :  { %v405_v15 = vsub.f32 1.0, %v404_v12  ;;  %v441_v28 = vmul.f32 0.0, %v401_v24 }
  0xb2   :  { %v406_v20 = vmul.f32 %v3798_v11, %v405_v15 }
  0xb4   :  { %v407_v23 = vadd.f32 %v3798_v11, %v406_v20 }
  0xb6   :  { %v411_v26 = vsel %vm410_vm11, %v3798_v11, %v407_v23 }
  0xb7   :  { %v416_v27 = vsel %vm413_vm12, %v415_v25, %v411_v26 }
  0xb8   :  { %v442_v29 = vmul.f32 0.0, %v416_v27 }
  0xba   :  { %v443_v30 = vpack.c.bf16 %v442_v29, %v441_v28 }
  0xbc   :  { %451 = vmatpush.bf16.msra.mxu3 %v443_v30 }
  0xbf   :  { %3277 = vmatmul.msk.bf16.vlgmr.msra.gmra.mxu3 %vm423_vm0, %v4217_v16 }
  0xc0   :  { %676 = vmatpush.bf16.msrb.mxu3 %v4172_v1 }
  0xc4   :  { %677 = vmatpush.bf16.msrb.mxu3 %v4178_v3 }
  0xc8   :  { %817 = vmatpush.bf16.msra.mxu3 %v4305_v44 }
  0xcc   :  { %818 = vmatpush.bf16.msra.mxu3 %v4326_v49 }
 0x104   :  { %v149_v31 = vpop.f32.mrf.mxu0  ;;  %v240_v32 = vpop.f32.mrf.mxu1 }
 0x105   :  { %v4360_v37 = vmul.f32 %v157_v35, %v149_v31  ;;  %v4362_v38 = vmul.f32 %v240_v32, %v157_v35 }
 0x10b   :  { %v321_v36 = vpop.f32.mrf.mxu2 }
 0x10c   :  { %v151_v33 = vpop.f32.mrf.mxu0  ;;  %v242_v34 = vpop.f32.mrf.mxu1  ;;  %v4375_v7 = vmul.f32 %v321_v36, %v157_v35 }
 0x10d   :  { %v4366_v55 = vmul.f32 %v162_v54, %v151_v33  ;;  %v4368_v56 = vmul.f32 %v242_v34, %v162_v54 }
 0x113   :  { %v323_v57 = vpop.f32.mrf.mxu2 }
 0x114   :  { %v4383_v22 = vmul.f32 %v323_v57, %v162_v54  ;;  %v651_v54 = vpop.permute.xlu0 %650 }
 0x129   :  { %v483_v40 = vpop.f32.mrf.mxu0  ;;  %v549_v41 = vpop.f32.mrf.mxu1 }
 0x12a   :  { %v488_v42 = vadd.f32 %v483_v40, %v4360_v37  ;;  %v554_v45 = vadd.f32 %v549_v41, %v4362_v38  ;;  %v637_v41 = vpop.permute.xlu2 %636 }
 0x12c   :  { %v3287_v51 = vmul.f32 -1.442695, %v488_v42  ;;  %v3298_v52 = vmul.f32 -1.442695, %v554_v45 }
 0x12e   :  { %3799 = vpow2.f32 %v3287_v51 }
 0x12f   :  { %3801 = vpow2.f32 %v3298_v52 }
 0x130   :  { %v615_v6 = vpop.f32.mrf.mxu2 }
 0x131   :  { %v485_v58 = vpop.f32.mrf.mxu0  ;;  %v551_v59 = vpop.f32.mrf.mxu1  ;;  %v620_v10 = vadd.f32 %v615_v6, %v4375_v7 }
 0x132   :  { %v489_v60 = vadd.f32 %v485_v58, %v4366_v55  ;;  %v555_v61 = vadd.f32 %v551_v59, %v4368_v56  ;;  %v658_v59 = vmul.f32 0.0, %v651_v54 }
 0x134   :  { %v3800_v62 = vpop.eup %3799  ;;  %v3288_v63 = vmul.f32 -1.442695, %v489_v60  ;;  %v3299_v4 = vmul.f32 -1.442695, %v555_v61 }
 0x135   :  { %v3802_v0 = vpop.eup %3801  ;;  %v496_v2 = vadd.f32 1.0, %v3800_v62 }
 0x136   :  { %v4372_v5 = vadd.f32 1.0, %v3802_v0  ;;  %3803 = vpow2.f32 %v3288_v63 }
 0x137   :  { %3805 = vrcp.f32 %v496_v2  ;;  %v509_v18 = vand.u32 2147483648, %v496_v2  ;;  %v507_v21 = vand.u32 2147483647, %v496_v2  ;;  %vm503_vm14 = vweird.f32 %v496_v2 }
 0x138   :  { %3807 = vpow2.f32 %v3299_v4  ;;  %v617_v19 = vpop.f32.mrf.mxu2  ;;  %vm569_vm8 = vweird.f32 %v4372_v5 }
 0x139   :  { %3809 = vrcp.f32 %v4372_v5  ;;  %v621_v26 = vadd.f32 %v617_v19, %v4383_v22  ;;  %v510_v27 = vor.u32 1.1754944e-38, %v509_v18  ;;  %vm508_vm1 = vcmp.eq.f32.partialorder %v507_v21, 8.507059e+37 }
 0x13c   :  { %v3804_v8 = vpop.eup %3803 }
 0x13d   :  { %v3806_v9 = vpop.eup %3805  ;;  %v497_v11 = vadd.f32 1.0, %v3804_v8 }
 0x13e   :  { %v499_v12 = vmul.f32 %v3806_v9, %v496_v2  ;;  %v3808_v13 = vpop.eup %3807  ;;  %vm504_vm13 = vweird.f32 %v3806_v9 }
 0x13f   :  { %3811 = vrcp.f32 %v497_v11  ;;  %v4378_v14 = vpop.eup %3809  ;;  %v4380_v15 = vadd.f32 1.0, %v3808_v13  ;;  %vm505_vm15 = vmor %vm503_vm14, %vm504_vm13  ;;  %v524_v42 = vand.u32 2147483648, %v497_v11  ;;  %v522_v52 = vand.u32 2147483647, %v497_v11  ;;  %v656_v13 = vpop.permute.xlu1 %655 }
 0x140   :  { %v500_v17 = vsub.f32 1.0, %v499_v12  ;;  %3813 = vtanh.f32 %v620_v10  ;;  %v565_v23 = vmul.f32 %v4378_v14, %v4372_v5  ;;  %vm518_vm3 = vweird.f32 %v497_v11 }
 0x141   :  { %3815 = vrcp.f32 %v4380_v15  ;;  %v525_v62 = vor.u32 1.1754944e-38, %v524_v42  ;;  %vm523_vm6 = vcmp.eq.f32.partialorder %v522_v52, 8.507059e+37  ;;  %vm570_vm7 = vweird.f32 %v4378_v14 }
 0x142   :  { %v501_v20 = vmul.f32 %v3806_v9, %v500_v17  ;;  %v566_v31 = vsub.f32 1.0, %v565_v23  ;;  %v453_v32 = vpop.f32.mrf.mxu3  ;;  %3817 = vtanh.f32 %v621_v26  ;;  %vm4397_vm9 = vmor %vm569_vm8, %vm570_vm7  ;;  %v659_v19 = vmul.f32 0.0, %v656_v13 }
 0x143   :  { %vm584_vm12 = vweird.f32 %v4380_v15 }
 0x144   :  { %v502_v24 = vadd.f32 %v3806_v9, %v501_v20  ;;  %v567_v57 = vmul.f32 %v4378_v14, %v566_v31  ;;  %v642_v20 = vpop.permute.xlu2 %641 }
 0x145   :  { %v3812_v25 = vpop.eup %3811 }
 0x146   :  { %v506_v28 = vsel %vm505_vm15, %v3806_v9, %v502_v24  ;;  %v514_v29 = vmul.f32 %v3812_v25, %v497_v11  ;;  %v3814_v30 = vpop.eup %3813  ;;  %vm519_vm2 = vweird.f32 %v3812_v25  ;;  %v568_v4 = vadd.f32 %v4378_v14, %v567_v57 }
 0x147   :  { %v511_v33 = vsel %vm508_vm1, %v510_v27, %v506_v28  ;;  %v3816_v34 = vpop.eup %3815  ;;  %vm520_vm5 = vmor %vm518_vm3, %vm519_vm2  ;;  %v575_v9 = vand.u32 2147483648, %v4372_v5  ;;  %v573_v11 = vand.u32 2147483647, %v4372_v5  ;;  %v590_v5 = vand.u32 2147483648, %v4380_v15 }
 0x148   :  { %v624_v35 = vmul.f32 %v3814_v30, %v511_v33  ;;  %v515_v36 = vsub.f32 1.0, %v514_v29  ;;  %v580_v40 = vmul.f32 %v3816_v34, %v4380_v15  ;;  %v3818_v2 = vpop.eup %3817  ;;  %v572_v21 = vsel %vm4397_vm9, %v4378_v14, %v568_v4 }
 0x149   :  { %vm585_vm10 = vweird.f32 %v3816_v34  ;;  %vm574_vm11 = vcmp.eq.f32.partialorder %v573_v11, 8.507059e+37  ;;  %v588_v27 = vand.u32 2147483647, %v4380_v15  ;;  %v591_v14 = vor.u32 1.1754944e-38, %v590_v5 }
 0x14a   :  { %v626_v45 = vadd.f32 %v624_v35, %v453_v32  ;;  %v516_v51 = vmul.f32 %v3812_v25, %v515_v36  ;;  %v581_v58 = vsub.f32 1.0, %v580_v40  ;;  %v455_v12 = vpop.f32.mrf.mxu3  ;;  %vm586_vm13 = vmor %vm584_vm12, %vm585_vm10 }
 0x14b   :  { %vm589_vm14 = vcmp.eq.f32.partialorder %v588_v27, 8.507059e+37 }
 0x14c   :  { %v662_v60 = vmul.f32 %v637_v41, %v626_v45  ;;  %v517_v61 = vadd.f32 %v3812_v25, %v516_v51  ;;  %3819 = vtanh.f32 %v626_v45  ;;  %v582_v8 = vmul.f32 %v3816_v34, %v581_v58 }
 0x14e   :  { %v4390_v63 = vadd.f32 %v662_v60, %v658_v59  ;;  %v521_v0 = vsel %vm520_vm5, %v3812_v25, %v517_v61  ;;  %v583_v23 = vadd.f32 %v3816_v34, %v582_v8  ;;  %v576_v25 = vor.u32 1.1754944e-38, %v575_v9 }
 0x14f   :  { %v526_v6 = vsel %vm523_vm6, %v525_v62, %v521_v0 }
 0x150   :  { %v625_v10 = vmul.f32 %v3818_v2, %v526_v6  ;;  %v577_v28 = vsel %vm574_vm11, %v576_v25, %v572_v21  ;;  %v587_v31 = vsel %vm586_vm13, %v3816_v34, %v583_v23 }
 0x151   :  { %v592_v33 = vsel %vm589_vm14, %v591_v14, %v587_v31 }
 0x152   :  { %v627_v18 = vadd.f32 %v625_v10, %v455_v12  ;;  %v3820_v24 = vpop.eup %3819 }
 0x153   :  { %v630_v30 = vmul.f32 %v3820_v24, %v577_v28 }
 0x154   :  { %3821 = vtanh.f32 %v627_v18  ;;  %v663_v26 = vmul.f32 %v642_v20, %v627_v18 }
 0x155   :  { %v644_v36 = vmul.f32 %v637_v41, %v630_v30 }
 0x156   :  { %v4407_v29 = vadd.f32 %v663_v26, %v659_v19 }
 0x157   :  { %v4409_v42 = vadd.f32 %v658_v59, %v644_v36 }
 0x15a   :  { %v3822_v32 = vpop.eup %3821 }
 0x15b   :  { %v631_v35 = vmul.f32 %v3822_v32, %v592_v33 }
 0x15d   :  { %v645_v40 = vmul.f32 %v642_v20, %v631_v35 }
 0x15f   :  { %v4411_v45 = vadd.f32 %v659_v19, %v645_v40 }
 0x161   :  { %v666_v15 = vpack.c.bf16 %v4411_v45, %v4409_v42 }
 0x163   :  { %3309 = vmatmul.msk.bf16.vlgmr.msrb.gmra.mxu3 %vm362_vm4, %v666_v15  ;;  %729 = vmatpush.bf16.msra.mxu0 %v666_v15 }
 0x166   :  { %3312 = vmatmul.msk.bf16.vlgmr.msra.gmra.mxu0 %vm423_vm0, %v4217_v16 }
 0x167   :  { %871 = vmatpush.bf16.msrb.mxu0 %v4312_v47 }
 0x16b   :  { %872 = vmatpush.bf16.msrb.mxu0 %v4331_v50 }
 0x16f   :  { %1025 = vmatpush.bf16.msra.mxu0 %v4300_v43 }
 0x173   :  { %1026 = vmatpush.bf16.msra.mxu0 %v4321_v48 }
 0x1e3   :  { %v731_v34 = vpop.f32.mrf.mxu0 }
 0x1e6   :  { %v679_v41 = vpop.f32.mrf.mxu3 }
 0x1e7   :  { %v680_v51 = vadd.f32 %v4343_v53, %v679_v41 }
 0x1e9   :  { %v3310_v52 = vmul.f32 -1.442695, %v680_v51 }
 0x1eb   :  { %3823 = vpow2.f32 %v3310_v52  ;;  %v733_v54 = vpop.f32.mrf.mxu0 }
 0x1ec   :  { %v753_v57 = vpack.c.bf16 %v733_v54, %v731_v34 }
 0x1ee   :  { %v681_v58 = vpop.f32.mrf.mxu3  ;;  %3314 = vmatmul.msk.bf16.vlgmr.msra.gmra.mxu2 %vm362_vm4, %v753_v57  ;;  %3317 = vmatmul.msk.bf16.vlgmr.msra.gmra.mxu3 %vm362_vm4, %v753_v57 }
 0x1ef   :  { %v682_v59 = vadd.f32 %v4343_v53, %v681_v58  ;;  %3320 = vmatmul.msk.bf16.vlgmr.msrb.gmra.mxu0 %vm362_vm4, %v753_v57 }
 0x1f1   :  { %v3824_v43 = vpop.eup %3823  ;;  %v3311_v60 = vmul.f32 -1.442695, %v682_v59 }
 0x1f2   :  { %v690_v48 = vadd.f32 1.0, %v3824_v43 }
 0x1f3   :  { %3825 = vpow2.f32 %v3311_v60 }
 0x1f4   :  { %3827 = vrcp.f32 %v690_v48  ;;  %v703_v11 = vand.u32 2147483648, %v690_v48  ;;  %vm697_vm1 = vweird.f32 %v690_v48  ;;  %v701_v13 = vand.u32 2147483647, %v690_v48 }
 0x1f6   :  { %v704_v21 = vor.u32 1.1754944e-38, %v703_v11  ;;  %vm702_vm5 = vcmp.eq.f32.partialorder %v701_v13, 8.507059e+37 }
 0x1f9   :  { %v3826_v61 = vpop.eup %3825 }
 0x1fa   :  { %v3828_v62 = vpop.eup %3827  ;;  %v691_v0 = vadd.f32 1.0, %v3826_v61 }
 0x1fb   :  { %v693_v2 = vmul.f32 %v3828_v62, %v690_v48  ;;  %vm698_vm15 = vweird.f32 %v3828_v62 }
 0x1fc   :  { %3829 = vrcp.f32 %v691_v0  ;;  %vm699_vm2 = vmor %vm697_vm1, %vm698_vm15  ;;  %v718_v17 = vand.u32 2147483648, %v691_v0  ;;  %v716_v20 = vand.u32 2147483647, %v691_v0  ;;  %vm712_vm6 = vweird.f32 %v691_v0 }
 0x1fd   :  { %v694_v4 = vsub.f32 1.0, %v693_v2 }
 0x1fe   :  { %v719_v25 = vor.u32 1.1754944e-38, %v718_v17  ;;  %vm717_vm8 = vcmp.eq.f32.partialorder %v716_v20, 8.507059e+37 }
 0x1ff   :  { %v695_v6 = vmul.f32 %v3828_v62, %v694_v4 }
 0x201   :  { %v696_v10 = vadd.f32 %v3828_v62, %v695_v6 }
 0x202   :  { %v3830_v8 = vpop.eup %3829 }
 0x203   :  { %v708_v9 = vmul.f32 %v3830_v8, %v691_v0  ;;  %v700_v18 = vsel %vm699_vm2, %v3828_v62, %v696_v10  ;;  %vm713_vm3 = vweird.f32 %v3830_v8 }
 0x204   :  { %v705_v24 = vsel %vm702_vm5, %v704_v21, %v700_v18  ;;  %vm714_vm7 = vmor %vm712_vm6, %vm713_vm3 }
 0x205   :  { %v709_v12 = vsub.f32 1.0, %v708_v9  ;;  %v736_v27 = vmul.f32 %v705_v24, %v4390_v63  ;;  %v4451_v24 = vpop.permute.xlu2 %896 }
 0x207   :  { %v710_v19 = vmul.f32 %v3830_v8, %v709_v12 }
 0x209   :  { %v711_v23 = vadd.f32 %v3830_v8, %v710_v19 }
 0x20b   :  { %v715_v26 = vsel %vm714_vm7, %v3830_v8, %v711_v23 }
 0x20c   :  { %v720_v5 = vsel %vm717_vm8, %v719_v25, %v715_v26 }
 0x20d   :  { %v737_v28 = vmul.f32 %v720_v5, %v4407_v29 }
 0x20f   :  { %v738_v30 = vpack.c.bf16 %v737_v28, %v736_v27 }
 0x211   :  { %746 = vmatpush.bf16.msra.mxu1 %v738_v30 }
 0x214   :  { %3313 = vmatmul.msk.bf16.vlgmr.msra.gmra.mxu1 %vm423_vm0, %v4217_v16 }
 0x215   :  { %938 = vmatpush.bf16.msrb.mxu1 %v4172_v1 }
 0x219   :  { %939 = vmatpush.bf16.msrb.mxu1 %v4178_v3 }
 0x21d   :  { %1079 = vmatpush.bf16.msra.mxu1 %v4305_v44 }
 0x221   :  { %1080 = vmatpush.bf16.msra.mxu1 %v4326_v49 }
 0x26c   :  { %v874_v54 = vpop.f32.mrf.mxu0 }
 0x26d   :  { %v879_v59 = vadd.f32 %v874_v54, %v4375_v7  ;;  %v916_v54 = vpop.permute.xlu2 %915 }
 0x271   :  { %v766_v31 = vpop.f32.mrf.mxu2  ;;  %v820_v14 = vpop.f32.mrf.mxu3 }
 0x272   :  { %v771_v32 = vadd.f32 %v766_v31, %v4360_v37  ;;  %v825_v33 = vadd.f32 %v820_v14, %v4362_v38 }
 0x274   :  { %v3315_v35 = vmul.f32 -1.442695, %v771_v32  ;;  %v3318_v36 = vmul.f32 -1.442695, %v825_v33  ;;  %v876_v4 = vpop.f32.mrf.mxu0 }
 0x275   :  { %v880_v12 = vadd.f32 %v876_v4, %v4383_v22 }
 0x276   :  { %3831 = vpow2.f32 %v3315_v35 }
 0x277   :  { %3833 = vpow2.f32 %v3318_v36 }
 0x279   :  { %v768_v1 = vpop.f32.mrf.mxu2  ;;  %v822_v40 = vpop.f32.mrf.mxu3 }
 0x27a   :  { %v772_v15 = vadd.f32 %v768_v1, %v4366_v55  ;;  %v826_v3 = vadd.f32 %v822_v40, %v4368_v56 }
 0x27c   :  { %v3832_v34 = vpop.eup %3831  ;;  %v3316_v44 = vmul.f32 -1.442695, %v772_v15  ;;  %v3319_v51 = vmul.f32 -1.442695, %v826_v3 }
 0x27d   :  { %v3834_v41 = vpop.eup %3833  ;;  %v779_v49 = vadd.f32 1.0, %v3832_v34 }
 0x27e   :  { %v4439_v52 = vadd.f32 1.0, %v3834_v41  ;;  %3835 = vpow2.f32 %v3316_v44 }
 0x27f   :  { %3837 = vrcp.f32 %v779_v49  ;;  %v792_v2 = vand.u32 2147483648, %v779_v49  ;;  %v790_v8 = vand.u32 2147483647, %v779_v49  ;;  %vm786_vm10 = vweird.f32 %v779_v49 }
 0x280   :  { %3839 = vpow2.f32 %v3319_v51  ;;  %v846_v44 = vand.u32 2147483648, %v4439_v52  ;;  %vm840_vm3 = vweird.f32 %v4439_v52 }
 0x281   :  { %3841 = vrcp.f32 %v4439_v52  ;;  %v793_v13 = vor.u32 1.1754944e-38, %v792_v2  ;;  %vm791_vm12 = vcmp.eq.f32.partialorder %v790_v8, 8.507059e+37 }
 0x282   :  { %v847_v2 = vor.u32 1.1754944e-38, %v846_v44 }
 0x284   :  { %v3836_v57 = vpop.eup %3835 }
 0x285   :  { %v3838_v58 = vpop.eup %3837  ;;  %v780_v43 = vadd.f32 1.0, %v3836_v57 }
 0x286   :  { %v782_v60 = vmul.f32 %v3838_v58, %v779_v49  ;;  %v3840_v48 = vpop.eup %3839  ;;  %vm787_vm9 = vweird.f32 %v3838_v58  ;;  %v844_v49 = vand.u32 2147483647, %v4439_v52 }
 0x287   :  { %3843 = vrcp.f32 %v780_v43  ;;  %v4443_v61 = vpop.eup %3841  ;;  %v4445_v62 = vadd.f32 1.0, %v3840_v48  ;;  %vm788_vm11 = vmor %vm786_vm10, %vm787_vm9  ;;  %v807_v28 = vand.u32 2147483648, %v780_v43  ;;  %v805_v14 = vand.u32 2147483647, %v780_v43 }
 0x288   :  { %v783_v0 = vsub.f32 1.0, %v782_v60  ;;  %3845 = vtanh.f32 %v879_v59  ;;  %v836_v9 = vmul.f32 %v4443_v61, %v4439_v52  ;;  %vm801_vm14 = vweird.f32 %v780_v43  ;;  %v902_v59 = vpop.permute.xlu0 %901 }
 0x289   :  { %3847 = vrcp.f32 %v4445_v62  ;;  %v808_v36 = vor.u32 1.1754944e-38, %v807_v28  ;;  %vm806_vm1 = vcmp.eq.f32.partialorder %v805_v14, 8.507059e+37  ;;  %vm841_vm2 = vweird.f32 %v4443_v61 }
 0x28a   :  { %v784_v6 = vmul.f32 %v3838_v58, %v783_v0  ;;  %v837_v20 = vsub.f32 1.0, %v836_v9  ;;  %3849 = vtanh.f32 %v880_v12  ;;  %vm4463_vm5 = vmor %vm840_vm3, %vm841_vm2  ;;  %v861_v52 = vand.u32 2147483648, %v4445_v62 }
 0x28b   :  { %vm855_vm7 = vweird.f32 %v4445_v62  ;;  %vm845_vm8 = vcmp.eq.f32.partialorder %v844_v49, 8.507059e+37 }
 0x28c   :  { %v785_v10 = vadd.f32 %v3838_v58, %v784_v6  ;;  %v838_v32 = vmul.f32 %v4443_v61, %v837_v20  ;;  %v859_v6 = vand.u32 2147483647, %v4445_v62  ;;  %v919_v20 = vmul.f32 %v916_v54, %v4411_v45 }
 0x28d   :  { %v3844_v11 = vpop.eup %3843 }
 0x28e   :  { %v789_v17 = vsel %vm788_vm11, %v3838_v58, %v785_v10  ;;  %v797_v18 = vmul.f32 %v3844_v11, %v780_v43  ;;  %v3846_v19 = vpop.eup %3845  ;;  %vm802_vm13 = vweird.f32 %v3844_v11  ;;  %v839_v3 = vadd.f32 %v4443_v61, %v838_v32 }
 0x28f   :  { %v794_v21 = vsel %vm791_vm12, %v793_v13, %v789_v17  ;;  %v3848_v23 = vpop.eup %3847  ;;  %vm803_vm15 = vmor %vm801_vm14, %vm802_vm13  ;;  %v925_v43 = vmul.f32 %v916_v54, %v4407_v29  ;;  %vm860_vm10 = vcmp.eq.f32.partialorder %v859_v6, 8.507059e+37 }
 0x290   :  { %v883_v25 = vmul.f32 %v3846_v19, %v794_v21  ;;  %v798_v26 = vsub.f32 1.0, %v797_v18  ;;  %v851_v5 = vmul.f32 %v3848_v23, %v4445_v62  ;;  %v3850_v40 = vpop.eup %3849  ;;  %v843_v60 = vsel %vm4463_vm5, %v4443_v61, %v839_v3  ;;  %v911_v18 = vpop.permute.xlu1 %910 }
 0x291   :  { %v748_v27 = vpop.f32.mrf.mxu1  ;;  %vm856_vm6 = vweird.f32 %v3848_v23  ;;  %v848_v8 = vsel %vm845_vm8, %v847_v2, %v843_v60  ;;  %v862_v61 = vor.u32 1.1754944e-38, %v861_v52  ;;  %v918_v19 = vmul.f32 %v911_v18, %v4409_v42 }
 0x292   :  { %v4454_v30 = vadd.f32 %v883_v25, %v748_v27  ;;  %v799_v31 = vmul.f32 %v3844_v11, %v798_v26  ;;  %v852_v33 = vsub.f32 1.0, %v851_v5  ;;  %vm857_vm9 = vmor %vm855_vm7, %vm856_vm6 }
 0x294   :  { %v800_v35 = vadd.f32 %v3844_v11, %v799_v31  ;;  %3851 = vtanh.f32 %v4454_v30  ;;  %v853_v15 = vmul.f32 %v3848_v23, %v852_v33  ;;  %v922_v49 = vmul.f32 %v4451_v24, %v4454_v30 }
 0x296   :  { %v804_v1 = vsel %vm803_vm15, %v3844_v11, %v800_v35  ;;  %v854_v48 = vadd.f32 %v3848_v23, %v853_v15 }
 0x297   :  { %v809_v34 = vsel %vm806_vm1, %v808_v36, %v804_v1 }
 0x298   :  { %v884_v41 = vmul.f32 %v3850_v40, %v809_v34  ;;  %v858_v10 = vsel %vm857_vm9, %v3848_v23, %v854_v48 }
 0x299   :  { %v750_v51 = vpop.f32.mrf.mxu1  ;;  %v863_v12 = vsel %vm860_vm10, %v862_v61, %v858_v10 }
 0x29a   :  { %v886_v58 = vadd.f32 %v884_v41, %v750_v51  ;;  %v3852_v0 = vpop.eup %3851 }
 0x29b   :  { %v889_v9 = vmul.f32 %v3852_v0, %v848_v8  ;;  %v3999_v8 = vld [vmem:[%s5579_s2] sm:$0xff]  ;;  %s4073_s2 = smov [#allocation2]  }
 0x29c   :  { %3853 = vtanh.f32 %v886_v58  ;;  %v923_v4 = vmul.f32 %v902_v59, %v886_v58  ;;  %s3098_s7 = sshll.u32 %s4073_s2, 4  ;;  %s3099_s7 = int_to_ptr.vmem [resolvable:$true] %s3098_s7 }
 0x29d   :  { %v904_v13 = vmul.f32 %v4451_v24, %v889_v9 }
 0x29e   :  { %v4474_v29 = vadd.f32 %v925_v43, %v923_v4  ;;  %v924_v43 = vmul.f32 %v911_v18, %v4390_v63 }
 0x29f   :  { %v4479_v62 = vadd.f32 %v918_v19, %v904_v13 }
 0x2a0   :  { %v926_v2 = vadd.f32 %v924_v43, %v922_v49 }
 0x2a2   :  { %v3854_v11 = vpop.eup %3853 }
 0x2a3   :  { %v890_v17 = vmul.f32 %v3854_v11, %v863_v12 }
 0x2a5   :  { %v905_v21 = vmul.f32 %v902_v59, %v890_v17 }
 0x2a7   :  { %v4481_v25 = vadd.f32 %v919_v20, %v905_v21 }
 0x2a9   :  { %v928_v23 = vpack.c.bf16 %v4481_v25, %v4479_v62 }
 0x2ab   :  { %3323 = vmatmul.msk.bf16.vlgmr.msrb.gmra.mxu1 %vm362_vm4, %v928_v23  ;;  %991 = vmatpush.bf16.msrb.mxu2 %v928_v23 }
 0x2ae   :  { %3326 = vmatmul.msk.bf16.vlgmr.msrb.gmra.mxu2 %vm423_vm0, %v4217_v16 }
 0x2af   :  { %1133 = vmatpush.bf16.msra.mxu2 %v4312_v47 }
 0x2b3   :  { %1134 = vmatpush.bf16.msra.mxu2 %v4331_v50 }
 0x328   :  { %v941_v42 = vpop.f32.mrf.mxu1 }
 0x329   :  { %v942_v45 = vadd.f32 %v4343_v53, %v941_v42 }
 0x32b   :  { %v3324_v26 = vmul.f32 -1.442695, %v942_v45 }
 0x32d   :  { %3855 = vpow2.f32 %v3324_v26 }
 0x330   :  { %v943_v5 = vpop.f32.mrf.mxu1 }
 0x331   :  { %v944_v27 = vadd.f32 %v4343_v53, %v943_v5  ;;  %v993_v28 = vpop.f32.mrf.mxu2 }
 0x333   :  { %v3856_v31 = vpop.eup %3855  ;;  %v3325_v14 = vmul.f32 -1.442695, %v944_v27 }
 0x334   :  { %v952_v32 = vadd.f32 1.0, %v3856_v31 }
 0x335   :  { %3857 = vpow2.f32 %v3325_v14 }
 0x336   :  { %3859 = vrcp.f32 %v952_v32  ;;  %v965_v34 = vand.u32 2147483648, %v952_v32  ;;  %vm959_vm12 = vweird.f32 %v952_v32  ;;  %v963_v41 = vand.u32 2147483647, %v952_v32 }
 0x338   :  { %v966_v59 = vor.u32 1.1754944e-38, %v965_v34  ;;  %vm964_vm15 = vcmp.eq.f32.partialorder %v963_v41, 8.507059e+37 }
 0x339   :  { %v995_v47 = vpop.f32.mrf.mxu2 }
 0x33a   :  { %v1015_v33 = vpack.c.bf16 %v995_v47, %v993_v28 }
 0x33b   :  { %v3858_v35 = vpop.eup %3857 }
 0x33c   :  { %v3860_v16 = vpop.eup %3859  ;;  %v953_v36 = vadd.f32 1.0, %v3858_v35  ;;  %3328 = vmatmul.msk.bf16.vlgmr.msra.gmra.mxu0 %vm362_vm4, %v1015_v33  ;;  %3331 = vmatmul.msk.bf16.vlgmr.msra.gmra.mxu1 %vm362_vm4, %v1015_v33 }
 0x33d   :  { %v955_v50 = vmul.f32 %v3860_v16, %v952_v32  ;;  %3334 = vmatmul.msk.bf16.vlgmr.msra.gmra.mxu2 %vm362_vm4, %v1015_v33  ;;  %vm960_vm11 = vweird.f32 %v3860_v16 }
 0x33e   :  { %3861 = vrcp.f32 %v953_v36  ;;  %vm961_vm13 = vmor %vm959_vm12, %vm960_vm11  ;;  %v980_v51 = vand.u32 2147483648, %v953_v36  ;;  %v978_v58 = vand.u32 2147483647, %v953_v36  ;;  %vm974_vm1 = vweird.f32 %v953_v36 }
 0x33f   :  { %v956_v53 = vsub.f32 1.0, %v955_v50 }
 0x340   :  { %v981_v0 = vor.u32 1.1754944e-38, %v980_v51  ;;  %vm979_vm3 = vcmp.eq.f32.partialorder %v978_v58, 8.507059e+37 }
 0x341   :  { %v957_v1 = vmul.f32 %v3860_v16, %v956_v53 }
 0x343   :  { %v958_v3 = vadd.f32 %v3860_v16, %v957_v1 }
 0x344   :  { %v3862_v40 = vpop.eup %3861 }
 0x345   :  { %v970_v15 = vmul.f32 %v3862_v40, %v953_v36  ;;  %v962_v54 = vsel %vm961_vm13, %v3860_v16, %v958_v3  ;;  %vm975_vm14 = vweird.f32 %v3862_v40 }
 0x346   :  { %v967_v48 = vsel %vm964_vm15, %v966_v59, %v962_v54  ;;  %vm976_vm2 = vmor %vm974_vm1, %vm975_vm14 }
 0x347   :  { %v971_v44 = vsub.f32 1.0, %v970_v15  ;;  %v998_v24 = vmul.f32 %v967_v48, %v926_v2  ;;  %v3735_v15 = vld [vmem:[%s5586_s9 + $0x8] sm:$0xff] }
 0x348   :  { %1232 = vmatpush.bf16.msrb.mxu0 %v3735_v15  ;;  %v4596_v15 = vld [vmem:[%s5588_s11 + $0x20] sm:$0xff] }
 0x349   :  { %v972_v57 = vmul.f32 %v3862_v40, %v971_v44 }
 0x34b   :  { %v973_v60 = vadd.f32 %v3862_v40, %v972_v57 }
 0x34d   :  { %v977_v52 = vsel %vm976_vm2, %v3862_v40, %v973_v60 }
 0x34e   :  { %v982_v4 = vsel %vm979_vm3, %v981_v0, %v977_v52 }
 0x34f   :  { %v999_v30 = vmul.f32 %v982_v4, %v4474_v29 }
 0x351   :  { %v1000_v6 = vpack.c.bf16 %v999_v30, %v998_v24 }
 0x353   :  { %1008 = vmatpush.bf16.msrb.mxu3 %v1000_v6 }
 0x356   :  { %3327 = vmatmul.msk.bf16.vlgmr.msrb.gmra.mxu3 %vm423_vm0, %v3999_v8 }
 0x3b9   :  { %v1028_v63 = vpop.f32.mrf.mxu0  ;;  %v1082_v9 = vpop.f32.mrf.mxu1 }
 0x3ba   :  { %v1033_v10 = vadd.f32 %v1028_v63, %v4360_v37  ;;  %v1087_v61 = vadd.f32 %v1082_v9, %v4362_v38  ;;  %v1159_v9 = vpop.permute.xlu0 %1158 }
 0x3bc   :  { %v3329_v11 = vmul.f32 -1.442695, %v1033_v10  ;;  %v3332_v12 = vmul.f32 -1.442695, %v1087_v61 }
 0x3be   :  { %3863 = vpow2.f32 %v3329_v11 }
 0x3bf   :  { %3865 = vpow2.f32 %v3332_v12 }
 0x3c0   :  { %v1136_v37 = vpop.f32.mrf.mxu2 }
 0x3c1   :  { %v1030_v13 = vpop.f32.mrf.mxu0  ;;  %v1084_v29 = vpop.f32.mrf.mxu1  ;;  %v1141_v5 = vadd.f32 %v1136_v37, %v4375_v7 }
 0x3c2   :  { %v1034_v17 = vadd.f32 %v1030_v13, %v4366_v55  ;;  %v1088_v18 = vadd.f32 %v1084_v29, %v4368_v56 }
 0x3c4   :  { %v3864_v19 = vpop.eup %3863  ;;  %v3330_v20 = vmul.f32 -1.442695, %v1034_v17  ;;  %v3333_v42 = vmul.f32 -1.442695, %v1088_v18 }
 0x3c5   :  { %v3866_v21 = vpop.eup %3865  ;;  %v1041_v23 = vadd.f32 1.0, %v3864_v19 }
 0x3c6   :  { %v4507_v45 = vadd.f32 1.0, %v3866_v21  ;;  %3867 = vpow2.f32 %v3330_v20 }
 0x3c7   :  { %3869 = vrcp.f32 %v1041_v23  ;;  %v1054_v32 = vand.u32 2147483648, %v1041_v23  ;;  %v1052_v35 = vand.u32 2147483647, %v1041_v23  ;;  %vm1048_vm6 = vweird.f32 %v1041_v23 }
 0x3c8   :  { %3871 = vpow2.f32 %v3333_v42  ;;  %v1138_v47 = vpop.f32.mrf.mxu2  ;;  %v1108_v8 = vand.u32 2147483648, %v4507_v45  ;;  %vm1102_vm14 = vweird.f32 %v4507_v45  ;;  %v1106_v10 = vand.u32 2147483647, %v4507_v45 }
 0x3c9   :  { %3873 = vrcp.f32 %v4507_v45  ;;  %v1142_v50 = vadd.f32 %v1138_v47, %v4383_v22  ;;  %v1055_v53 = vor.u32 1.1754944e-38, %v1054_v32  ;;  %vm1053_vm8 = vcmp.eq.f32.partialorder %v1052_v35, 8.507059e+37  ;;  %v3734_v35 = vld [vmem:[%s5586_s9] sm:$0xff] }
 0x3ca   :  { %v1109_v17 = vor.u32 1.1754944e-38, %v1108_v8  ;;  %vm1107_vm2 = vcmp.eq.f32.partialorder %v1106_v10, 8.507059e+37  ;;  %1233 = vmatpush.bf16.msrb.mxu0 %v3734_v35  ;;  %v4719_v8 = vld [vmem:[%s5588_s11 + $0x108] sm:$0xff]  ;;  %v4736_v10 = vld [vmem:[%s5588_s11 + $0xc0] sm:$0xff] }
 0x3cb   :  { %5640 = vst [vmem:[#allocation5_spill] sm:$0xff] %v4736_v10 }
 0x3cc   :  { %v3868_v38 = vpop.eup %3867 }
 0x3cd   :  { %v3870_v26 = vpop.eup %3869  ;;  %v1042_v55 = vadd.f32 1.0, %v3868_v38  ;;  %v1178_v38 = vpop.permute.xlu0 %1177 }
 0x3ce   :  { %v1044_v27 = vmul.f32 %v3870_v26, %v1041_v23  ;;  %v3872_v56 = vpop.eup %3871  ;;  %vm1049_vm5 = vweird.f32 %v3870_v26 }
 0x3cf   :  { %3875 = vrcp.f32 %v1042_v55  ;;  %v4511_v28 = vpop.eup %3873  ;;  %v4513_v31 = vadd.f32 1.0, %v3872_v56  ;;  %vm1050_vm7 = vmor %vm1048_vm6, %vm1049_vm5  ;;  %v1069_v57 = vand.u32 2147483648, %v1042_v55  ;;  %v1067_v43 = vand.u32 2147483647, %v1042_v55 }
 0x3d0   :  { %v1045_v14 = vsub.f32 1.0, %v1044_v27  ;;  %3877 = vtanh.f32 %v1141_v5  ;;  %v1098_v7 = vmul.f32 %v4511_v28, %v4507_v45  ;;  %vm1063_vm10 = vweird.f32 %v1042_v55  ;;  %v1173_v27 = vpop.permute.xlu2 %1172 }
 0x3d1   :  { %3879 = vrcp.f32 %v4513_v31  ;;  %v1070_v2 = vor.u32 1.1754944e-38, %v1069_v57  ;;  %vm1068_vm12 = vcmp.eq.f32.partialorder %v1067_v43, 8.507059e+37  ;;  %vm1103_vm13 = vweird.f32 %v4511_v28  ;;  %v4652_v57 = vld [vmem:[%s5588_s11 + $0x8] sm:$0xff] }
 0x3d2   :  { %v1046_v33 = vmul.f32 %v3870_v26, %v1045_v14  ;;  %v1099_v34 = vsub.f32 1.0, %v1098_v7  ;;  %3881 = vtanh.f32 %v1142_v50  ;;  %vm1104_vm15 = vmor %vm1102_vm14, %vm1103_vm13  ;;  %v1123_v18 = vand.u32 2147483648, %v4513_v31  ;;  %v4556_v7 = vld [vmem:[%s5588_s11 + $0x30] sm:$0xff]  ;;  %v4573_v50 = vld [vmem:[%s5588_s11 + $0x28] sm:$0xff] }
 0x3d3   :  { %vm1117_vm3 = vweird.f32 %v4513_v31  ;;  %v1121_v19 = vand.u32 2147483647, %v4513_v31  ;;  %v1181_v14 = vmul.f32 %v1178_v38, %v4481_v25  ;;  %v4550_v25 = vld [vmem:[%s5588_s11 + $0x88] sm:$0xff] }
 0x3d4   :  { %v1047_v16 = vadd.f32 %v3870_v26, %v1046_v33  ;;  %v1100_v48 = vmul.f32 %v4511_v28, %v1099_v34  ;;  %v1124_v42 = vor.u32 1.1754944e-38, %v1123_v18  ;;  %v1184_v33 = vld [vmem:[%s5585_s8] sm:$0x1]  ;;  %v4609_v34 = vld [vmem:[%s5588_s11 + $0xd0] sm:$0xff] }
 0x3d5   :  { %v3876_v36 = vpop.eup %3875  ;;  %vm1122_vm6 = vcmp.eq.f32.partialorder %v1121_v19, 8.507059e+37  ;;  %v4779_v18 = vld [vmem:[%s5588_s11 + $0xe0] sm:$0xff]  ;;  %v4790_v19 = vld [vmem:[%s5588_s11 + $0xa8] sm:$0xff] }
 0x3d6   :  { %v1051_v1 = vsel %vm1050_vm7, %v3870_v26, %v1047_v16  ;;  %v1059_v40 = vmul.f32 %v3876_v36, %v1042_v55  ;;  %v3878_v3 = vpop.eup %3877  ;;  %vm1064_vm9 = vweird.f32 %v3876_v36  ;;  %v1101_v24 = vadd.f32 %v4511_v28, %v1100_v48  ;;  %v1164_v55 = vpop.permute.xlu1 %1163  ;;  %v4562_v16 = vld [vmem:[%s5588_s11 + $0x80] sm:$0xff]  ;;  %v4670_v48 = vld [vmem:[%s5588_s11 + $0x128] sm:$0xff]  ;;  %5645 = vst [vmem:[#allocation10_spill] sm:$0xff] %v4790_v19 }
 0x3d7   :  { %v1056_v44 = vsel %vm1053_vm8, %v1055_v53, %v1051_v1  ;;  %v3880_v41 = vpop.eup %3879  ;;  %vm1065_vm11 = vmor %vm1063_vm10, %vm1064_vm9  ;;  %v4579_v53 = vld [vmem:[%s5588_s11 + $0x78] sm:$0xff]  ;;  %v4585_v1 = vld [vmem:[%s5588_s11 + $0x40] sm:$0xff]  ;;  %vm1239_vm8 = vcmask 517120  }
 0x3d8   :  { %v1145_v49 = vmul.f32 %v3878_v3, %v1056_v44  ;;  %v1060_v51 = vsub.f32 1.0, %v1059_v40  ;;  %v1113_v54 = vmul.f32 %v3880_v41, %v4513_v31  ;;  %v3882_v4 = vpop.eup %3881  ;;  %v1105_v12 = vsel %vm1104_vm15, %v4511_v28, %v1101_v24  ;;  %v4590_v40 = vld [vmem:[%s5588_s11 + $0xd8] sm:$0xff]  ;;  %v4602_v3 = vld [vmem:[%s5588_s11 + $0x70] sm:$0xff] }
 0x3d9   :  { %v1010_v22 = vpop.f32.mrf.mxu3  ;;  %vm1118_vm1 = vweird.f32 %v3880_v41  ;;  %v1110_v20 = vsel %vm1107_vm2, %v1109_v17, %v1105_v12  ;;  %v1180_v28 = vmul.f32 %v1173_v27, %v4479_v62  ;;  %v4545_v62 = vld [vmem:[%s5588_s11 + $0x38] sm:$0xff]  ;;  %v4772_v17 = vld [vmem:[%s5588_s11 + $0xb0] sm:$0xff] }
 0x3da   :  { %v1147_v58 = vadd.f32 %v1145_v49, %v1010_v22  ;;  %v1061_v59 = vmul.f32 %v3876_v36, %v1060_v51  ;;  %v1114_v60 = vsub.f32 1.0, %v1113_v54  ;;  %vm1119_vm5 = vmor %vm1117_vm3, %vm1118_vm1  ;;  %1402 = vmatpush.bf16.msrb.mxu1 %v4545_v62  ;;  %v4615_v44 = vld [vmem:[%s5588_s11 + $0x18] sm:$0xff]  ;;  %v4632_v51 = vld [vmem:[%s5588_s11 + $0xc8] sm:$0xff]  ;;  %5644 = vst [vmem:[#allocation9_spill] sm:$0xff] %v4772_v17 }
 0x3db   :  { %v4626_v49 = vld [vmem:[%s5588_s11 + $0x98] sm:$0xff]  ;;  %v4639_v54 = vld [vmem:[%s5588_s11 + $0x10] sm:$0xff]  ;;  %v4645_v22 = vld [vmem:[%s5588_s11 + $0x60] sm:$0xff] }
 0x3dc   :  { %v1062_v0 = vadd.f32 %v3876_v36, %v1061_v59  ;;  %3883 = vtanh.f32 %v1147_v58  ;;  %v1115_v6 = vmul.f32 %v3880_v41, %v1114_v60  ;;  %1508 = vmatpush.bf16.msra.mxu0 %v4626_v49  ;;  %v4658_v58 = vld [vmem:[%s5588_s11 + $0x58] sm:$0xff]  ;;  %v4664_v60 = vld [vmem:[%s5588_s11] sm:$0xff] }
 0x3dd   :  { %v4755_v12 = vld [vmem:[%s5588_s11 + $0xb8] sm:$0xff] }
 0x3de   :  { %v1066_v52 = vsel %vm1065_vm11, %v3876_v36, %v1062_v0  ;;  %v1116_v13 = vadd.f32 %v3880_v41, %v1115_v6  ;;  %v4567_v36 = vld [vmem:[%s5588_s11 + $0x48] sm:$0xff]  ;;  %1403 = vmatpush.bf16.msrb.mxu1 %v4556_v7  ;;  %v4676_v0 = vld [vmem:[%s5588_s11 + $0x50] sm:$0xff]  ;;  %5642 = vst [vmem:[#allocation7_spill] sm:$0xff] %v4755_v12 }
 0x3df   :  { %v1071_v30 = vsel %vm1068_vm12, %v1070_v2, %v1066_v52  ;;  %1421 = vmatpush.bf16.msrb.mxu2 %v4567_v36  ;;  %v4682_v2 = vld [vmem:[%s5588_s11 + $0x138] sm:$0xff]  ;;  %v4689_v52 = vld [vmem:[%s5588_s11 + $0x120] sm:$0xff]  ;;  %v4713_v6 = vld [vmem:[%s5588_s11 + $0x110] sm:$0xff] }
 0x3e0   :  { %v1146_v63 = vmul.f32 %v3882_v4, %v1071_v30  ;;  %v1120_v23 = vsel %vm1119_vm5, %v3880_v41, %v1116_v13  ;;  %v4621_v41 = vld [vmem:[%s5588_s11 + $0x68] sm:$0xff]  ;;  %v4707_v30 = vld [vmem:[%s5588_s11 + $0x118] sm:$0xff]  ;;  %v4760_v13 = vld [vmem:[%s5588_s11 + $0xf0] sm:$0xff] }
 0x3e1   :  { %v1012_v61 = vpop.f32.mrf.mxu3  ;;  %v1125_v37 = vsel %vm1122_vm6, %v1124_v42, %v1120_v23  ;;  %5643 = vst [vmem:[#allocation8_spill] sm:$0xff] %v4760_v13 }
 0x3e2   :  { %v1148_v11 = vadd.f32 %v1146_v63, %v1012_v61  ;;  %v3884_v29 = vpop.eup %3883  ;;  %1404 = vmatpush.bf16.msrb.mxu1 %v4573_v50  ;;  %v4725_v63 = vld [vmem:[%s5588_s11 + $0x100] sm:$0xff]  ;;  %v4741_v61 = vld [vmem:[%s5588_s11 + $0xf8] sm:$0xff] }
 0x3e3   :  { %v1151_v21 = vmul.f32 %v3884_v29, %v1110_v20  ;;  %1422 = vmatpush.bf16.msrb.mxu2 %v4585_v1  ;;  %5641 = vst [vmem:[#allocation6_spill] sm:$0xff] %v4741_v61  ;;  %v4766_v29 = vld [vmem:[%s5588_s11 + $0xe8] sm:$0xff]  ;;  %v4799_v20 = vld [vmem:[%s5588_s11 + $0xa0] sm:$0xff] }
 0x3e4   :  { %3885 = vtanh.f32 %v1148_v11  ;;  %v4746_v11 = vld [vmem:[%s5588_s11 + $0x130] sm:$0xff]  ;;  %5646 = vst [vmem:[#allocation11_spill] sm:$0xff] %v4799_v20 }
 0x3e5   :  { %v1166_v26 = vmul.f32 %v1159_v9, %v1151_v21  ;;  %v4731_v9 = vld [vmem:[%s5588_s11 + $0x90] sm:$0xff]  ;;  %v3789_v21 = vld [vmem:[%s5587_s10] ss:$0 sm:$0xff] }
 0x3e6   :  { %1405 = vmatpush.bf16.msrb.mxu1 %v4596_v15  ;;  %1509 = vmatpush.bf16.msra.mxu0 %v4731_v9 }
 0x3e7   :  { %v1182_v32 = vadd.f32 %v1180_v28, %v1166_v26  ;;  %1576 = vmatpush.bf16.msra.mxu2 %v4590_v40  ;;  %v1324_v28 = vld [vmem:[%s5589_s12] sm:$0xf] }
 0x3ea   :  { %v3886_v45 = vpop.eup %3885  ;;  %1406 = vmatpush.bf16.msrb.mxu1 %v4615_v44 }
 0x3eb   :  { %v1152_v5 = vmul.f32 %v3886_v45, %v1125_v37  ;;  %1577 = vmatpush.bf16.msra.mxu2 %v4609_v34 }
 0x3ed   :  { %v1167_v56 = vmul.f32 %v1164_v55, %v1152_v5 }
 0x3ee   :  { %1407 = vmatpush.bf16.msrb.mxu1 %v4639_v54 }
 0x3ef   :  { %v1183_v31 = vadd.f32 %v1181_v14, %v1167_v56  ;;  %1578 = vmatpush.bf16.msra.mxu2 %v4632_v51  ;;  %v4843_v14 = vperm.slane %v1324_v28, 1 }
 0x3f1   :  { %v1185_v47 = vpack.c.bf16 %v1183_v31, %v1182_v32  ;;  %5647 = vst [vmem:[#allocation12_spill] sm:$0xff] %v4843_v14 }
 0x3f2   :  { %1408 = vmatpush.bf16.msrb.mxu1 %v4652_v57 }
 0x3f3   :  { %1196 = vmatpush.bf16.msra.mxu3 %v1185_v47  ;;  %1579 = vmatpush.bf16.msra.mxu2 %v4736_v10  ;;  %v4846_v47 = vperm.slane %v1324_v28, 3 }
 0x3f5   :  { %5648 = vst [vmem:[#allocation13_spill] sm:$0xff] %v4846_v47 }
 0x3f6   :  { %3337 = vmatmul.msk.bf16.vlgmr.msra.gmra.mxu3 %vm423_vm0, %v1184_v33  ;;  %vm1333_vm0 = vcmp.eq.s32.totalorder %v4287_v39, 0  ;;  %1409 = vmatpush.bf16.msrb.mxu1 %v4664_v60  ;;  %v4848_v33 = vperm.slane %v1324_v28, 0 }
 0x3f7   :  { %1489 = vmatpush.bf16.msrb.mxu3 %v4550_v25  ;;  %vm4692_vm7 = vmpackc.low %vm1333_vm0, %vm1333_vm0  ;;  %1580 = vmatpush.bf16.msra.mxu2 %v4755_v12  ;;  %vm1790_vm0 = vcmask 1041408  }
 0x3f8   :  { %5649 = vst [vmem:[#allocation14_spill] sm:$0xff] %v4848_v33 }
 0x3f9   :  { %3449 = vmatmul.msk.bf16.vlgmr.msrb.gmra.mxu1 %vm4692_vm7, %v5597_v46 }
 0x3fa   :  { %1663 = vmatpush.bf16.msra.mxu1 %v4670_v48 }
 0x3fb   :  { %1490 = vmatpush.bf16.msrb.mxu3 %v4562_v16  ;;  %1581 = vmatpush.bf16.msra.mxu2 %v4772_v17 }
 0x3fe   :  { %1664 = vmatpush.bf16.msra.mxu1 %v4689_v52 }
 0x3ff   :  { %1491 = vmatpush.bf16.msrb.mxu3 %v4579_v53  ;;  %1582 = vmatpush.bf16.msra.mxu2 %v4790_v19 }
 0x402   :  { %1665 = vmatpush.bf16.msra.mxu1 %v4707_v30 }
 0x403   :  { %1492 = vmatpush.bf16.msrb.mxu3 %v4602_v3  ;;  %1583 = vmatpush.bf16.msra.mxu2 %v4799_v20 }
 0x406   :  { %1666 = vmatpush.bf16.msra.mxu1 %v4713_v6 }
 0x407   :  { %1493 = vmatpush.bf16.msrb.mxu3 %v4621_v41 }
 0x40a   :  { %1667 = vmatpush.bf16.msra.mxu1 %v4719_v8 }
 0x40b   :  { %1494 = vmatpush.bf16.msrb.mxu3 %v4645_v22 }
 0x40e   :  { %1668 = vmatpush.bf16.msra.mxu1 %v4725_v63 }
 0x40f   :  { %1495 = vmatpush.bf16.msrb.mxu3 %v4658_v58 }
 0x412   :  { %1669 = vmatpush.bf16.msra.mxu1 %v4741_v61 }
 0x413   :  { %1496 = vmatpush.bf16.msrb.mxu3 %v4676_v0 }
 0x416   :  { %3492 = vmatmul.msk.bf16.vlgmr.msrb.gmra.mxu3 %vm4692_vm7, %v5597_v46  ;;  %1670 = vmatpush.bf16.msra.mxu1 %v4760_v13 }
 0x417   :  { %1682 = vmatpush.bf16.msra.mxu3 %v4682_v2 }
 0x419   :  { %3578 = vmatmul.msk.bf16.vlgmr.msra.gmra.mxu1 %vm4692_vm7, %v5597_v46 }
 0x41a   :  { %1863 = vmatpush.bf16.msrb.mxu1 %v4626_v49 }
 0x41b   :  { %1683 = vmatpush.bf16.msra.mxu3 %v4746_v11 }
 0x41e   :  { %1864 = vmatpush.bf16.msrb.mxu1 %v4731_v9 }
 0x41f   :  { %1837 = vmatpush.bf16.msrb.mxu3 %v4567_v36 }
 0x422   :  { %1889 = vmatpush.bf16.msra.mxu1 %v4766_v29 }
 0x423   :  { %1838 = vmatpush.bf16.msrb.mxu3 %v4585_v1 }
 0x426   :  { %1890 = vmatpush.bf16.msra.mxu1 %v4779_v18 }
 0x476   :  { %v1411_v37 = vpop.f32.mrf.mxu1 }
 0x477   :  { %v1412_v4 = vadd.f32 %v1411_v37, %v4848_v33  ;;  %v4861_v37 = vld [vmem:[%s5590_s13] sm:$0xff] }
 0x479   :  { %v1198_v59 = vpop.f32.mrf.mxu3 }
 0x47a   :  { %v1202_v43 = vpack.c.bf16 %v1198_v59, %v1198_v59 }
 0x47c   :  { %3346 = vmatmul.msk.bf16.vlgmr.msrb.gmra.mxu0 %vm362_vm4, %v1202_v43 }
 0x47d   :  { %1595 = vmatpush.bf16.msrb.mxu0 %v4766_v29 }
 0x47e   :  { %v1413_v5 = vpop.f32.mrf.mxu1 }
 0x481   :  { %v1200_v24 = vpop.f32.mrf.mxu3  ;;  %1596 = vmatpush.bf16.msrb.mxu0 %v4779_v18 }
 0x496   :  { %v1672_v27 = vpop.f32.mrf.mxu1 }
 0x497   :  { %v1673_v43 = vadd.f32 %v1672_v27, %v4846_v47 }
 0x499   :  { %v1498_v26 = vpop.f32.mrf.mxu3 }
 0x49a   :  { %v1499_v32 = vadd.f32 %v1498_v26, %v4843_v14  ;;  %v4855_v26 = vld [vmem:[%s5590_s13 + $0x8] sm:$0xff] }
 0x49e   :  { %v1674_v56 = vpop.f32.mrf.mxu1 }
 0x4a1   :  { %v1500_v55 = vpop.f32.mrf.mxu3 }
 0x4f9   :  { %v1235_v23 = vpop.f32.mrf.mxu0 }
 0x4fa   :  { %v1236_v42 = vadd.f32 %v3789_v21, %v1235_v23 }
 0x4fc   :  { %1240 = vst.msk [vmem:[%s5592_s15] sm:$0x3] %vm1239_vm8, %v1236_v42  ;;  %v1337_v45 = vpack.c.bf16 %v1236_v42, %v1236_v42  ;;  %1748 = vrot.lane.b32.xlu1 %v1236_v42, %s4071_s3  ;;  %vm1331_vm8 = vcmask 1024  }
 0x4fe   :  { %3450 = vmatmul.msk.bf16.vlgmr.msrb.gmra.mxu2 %vm362_vm4, %v1337_v45  ;;  %3493 = vmatmul.msk.bf16.vlgmr.msra.gmra.mxu0 %vm362_vm4, %v1337_v45 }
 0x4ff   :  { %3579 = vmatmul.msk.bf16.vlgmr.msra.gmra.mxu3 %vm362_vm4, %v1337_v45  ;;  %1818 = vmatpush.bf16.msrb.mxu2 %v4545_v62 }
 0x500   :  { %1870 = vmatpush.bf16.msra.mxu3 %v4590_v40  ;;  %1781 = vmatpush.bf16.msra.mxu0 %v4855_v26 }
 0x501   :  { %v1237_v38 = vpop.f32.mrf.mxu0 }
 0x503   :  { %1819 = vmatpush.bf16.msrb.mxu2 %v4556_v7 }
 0x504   :  { %1871 = vmatpush.bf16.msra.mxu3 %v4609_v34  ;;  %1782 = vmatpush.bf16.msra.mxu0 %v4861_v37 }
 0x507   :  { %1820 = vmatpush.bf16.msrb.mxu2 %v4573_v50 }
 0x508   :  { %1872 = vmatpush.bf16.msra.mxu3 %v4632_v51 }
 0x50b   :  { %1821 = vmatpush.bf16.msrb.mxu2 %v4596_v15 }
 0x50c   :  { %1873 = vmatpush.bf16.msra.mxu3 %v4736_v10 }
 0x50e   :  { %3535 = vmatmul.msk.bf16.vlgmr.msra.gmra.mxu2 %vm4692_vm7, %v5597_v46  ;;  %3536 = vmatmul.msk.bf16.vlgmr.msrb.gmra.mxu0 %vm362_vm4, %v1337_v45 }
 0x50f   :  { %1822 = vmatpush.bf16.msrb.mxu2 %v4615_v44  ;;  %1844 = vmatpush.bf16.msrb.mxu0 %v4550_v25 }
 0x510   :  { %1874 = vmatpush.bf16.msra.mxu3 %v4755_v12 }
 0x513   :  { %1823 = vmatpush.bf16.msrb.mxu2 %v4639_v54  ;;  %1845 = vmatpush.bf16.msrb.mxu0 %v4562_v16 }
 0x514   :  { %1875 = vmatpush.bf16.msra.mxu3 %v4772_v17 }
 0x517   :  { %1824 = vmatpush.bf16.msrb.mxu2 %v4652_v57  ;;  %1846 = vmatpush.bf16.msrb.mxu0 %v4579_v53 }
 0x518   :  { %1876 = vmatpush.bf16.msra.mxu3 %v4790_v19 }
 0x51b   :  { %1825 = vmatpush.bf16.msrb.mxu2 %v4664_v60  ;;  %1847 = vmatpush.bf16.msrb.mxu0 %v4602_v3 }
 0x51c   :  { %1877 = vmatpush.bf16.msra.mxu3 %v4799_v20 }
 0x51f   :  { %1896 = vmatpush.bf16.msra.mxu2 %v4670_v48  ;;  %1848 = vmatpush.bf16.msrb.mxu0 %v4621_v41 }
 0x523   :  { %1897 = vmatpush.bf16.msra.mxu2 %v4689_v52  ;;  %1849 = vmatpush.bf16.msrb.mxu0 %v4645_v22 }
 0x527   :  { %1898 = vmatpush.bf16.msra.mxu2 %v4707_v30  ;;  %1850 = vmatpush.bf16.msrb.mxu0 %v4658_v58 }
 0x52b   :  { %1899 = vmatpush.bf16.msra.mxu2 %v4713_v6  ;;  %1851 = vmatpush.bf16.msrb.mxu0 %v4676_v0 }
 0x52f   :  { %1900 = vmatpush.bf16.msra.mxu2 %v4719_v8 }
 0x533   :  { %1901 = vmatpush.bf16.msra.mxu2 %v4725_v63 }
 0x537   :  { %1902 = vmatpush.bf16.msra.mxu2 %v4741_v61 }
 0x53b   :  { %1903 = vmatpush.bf16.msra.mxu2 %v4760_v13 }
 0x57b   :  { %v1511_v31 = vpop.f32.mrf.mxu0 }
 0x57c   :  { %v1512_v35 = vadd.f32 %v1511_v31, %v1499_v32 }
 0x57e   :  { %v3581_v59 = vmul.f32 -1.442695, %v1512_v35 }
 0x580   :  { %3887 = vpow2.f32 %v3581_v59 }
 0x581   :  { %v1424_v24 = vpop.f32.mrf.mxu2 }
 0x582   :  { %v1425_v21 = vadd.f32 %v1424_v24, %v1412_v4  ;;  %v1685_v23 = vpop.f32.mrf.mxu3  ;;  %v4867_v24 = vperm.slane %v1324_v28, 2 }
 0x583   :  { %v1686_v42 = vadd.f32 %v1685_v23, %v1673_v43  ;;  %v1513_v45 = vpop.f32.mrf.mxu0 }
 0x584   :  { %v3580_v38 = vmul.f32 -1.442695, %v1425_v21  ;;  %5650 = vst [vmem:[#allocation15_spill] sm:$0xff] %v4867_v24 }
 0x585   :  { %v3582_v5 = vmul.f32 -1.442695, %v1686_v42 }
 0x586   :  { %v3888_v55 = vpop.eup %3887  ;;  %3889 = vpow2.f32 %v3580_v38 }
 0x587   :  { %v1711_v27 = vadd.f32 1.0, %v3888_v55  ;;  %3891 = vpow2.f32 %v3582_v5 }
 0x589   :  { %3893 = vrcp.f32 %v1711_v27  ;;  %v1426_v56 = vpop.f32.mrf.mxu2  ;;  %v1723_v46 = vand.u32 2147483648, %v1711_v27  ;;  %vm1717_vm10 = vweird.f32 %v1711_v27  ;;  %v1721_v33 = vand.u32 2147483647, %v1711_v27 }
 0x58a   :  { %v1687_v32 = vpop.f32.mrf.mxu3 }
 0x58b   :  { %v1598_v31 = vpop.f32.mrf.mxu0  ;;  %vm1722_vm13 = vcmp.eq.f32.partialorder %v1721_v33, 8.507059e+37 }
 0x58c   :  { %v3890_v35 = vpop.eup %3889 }
 0x58d   :  { %v3892_v59 = vpop.eup %3891  ;;  %v1692_v43 = vadd.f32 1.0, %v3890_v35 }
 0x58e   :  { %v4865_v4 = vadd.f32 1.0, %v3892_v59 }
 0x58f   :  { %v3894_v21 = vpop.eup %3893  ;;  %3895 = vrcp.f32 %v1692_v43  ;;  %vm1698_vm14 = vweird.f32 %v1692_v43 }
 0x590   :  { %v1713_v23 = vmul.f32 %v3894_v21, %v1711_v27  ;;  %3897 = vrcp.f32 %v4865_v4  ;;  %vm1718_vm9 = vweird.f32 %v3894_v21  ;;  %v1743_v33 = vand.u32 2147483648, %v4865_v4 }
 0x591   :  { %v1585_v42 = vpop.f32.mrf.mxu2  ;;  %vm4875_vm11 = vmor %vm1717_vm10, %vm1718_vm9  ;;  %vm1737_vm3 = vweird.f32 %v4865_v4 }
 0x592   :  { %v1714_v45 = vsub.f32 1.0, %v1713_v23  ;;  %v1586_v38 = vadd.f32 %v1585_v42, %v4867_v24  ;;  %v1724_v24 = vor.u32 1.1754944e-38, %v1723_v46 }
 0x593   :  { %v1600_v5 = vpop.f32.mrf.mxu0 }
 0x594   :  { %v1715_v55 = vmul.f32 %v3894_v21, %v1714_v45  ;;  %v1599_v32 = vadd.f32 %v1598_v31, %v1586_v38  ;;  %v1704_v5 = vand.u32 2147483648, %v1692_v43  ;;  %v1702_v38 = vand.u32 2147483647, %v1692_v43 }
 0x595   :  { %v3896_v56 = vpop.eup %3895 }
 0x596   :  { %v3898_v35 = vpop.eup %3897  ;;  %v1716_v28 = vadd.f32 %v3894_v21, %v1715_v55  ;;  %v1694_v59 = vmul.f32 %v3896_v56, %v1692_v43  ;;  %3899 = vtanh.f32 %v1599_v32  ;;  %vm1699_vm12 = vweird.f32 %v3896_v56 }
 0x597   :  { %v1733_v47 = vmul.f32 %v3898_v35, %v4865_v4  ;;  %vm1700_vm15 = vmor %vm1698_vm14, %vm1699_vm12  ;;  %vm1703_vm1 = vcmp.eq.f32.partialorder %v1702_v38, 8.507059e+37  ;;  %vm1738_vm2 = vweird.f32 %v3898_v35  ;;  %v1741_v43 = vand.u32 2147483647, %v4865_v4  ;;  %v4924_v4 = vld [vmem:[%s5591_s14] ss:$0 sm:$0xff] }
 0x598   :  { %v1695_v23 = vsub.f32 1.0, %v1694_v59  ;;  %v1720_v55 = vsel %vm4875_vm11, %v3894_v21, %v1716_v28  ;;  %v1705_v59 = vor.u32 1.1754944e-38, %v1704_v5  ;;  %vm1739_vm5 = vmor %vm1737_vm3, %vm1738_vm2 }
 0x599   :  { %v1587_v45 = vpop.f32.mrf.mxu2  ;;  %v1734_v14 = vsub.f32 1.0, %v1733_v47  ;;  %v1725_v20 = vsel %vm1722_vm13, %v1724_v24, %v1720_v55  ;;  %vm1742_vm6 = vcmp.eq.f32.partialorder %v1741_v43, 8.507059e+37  ;;  %v4072_v43 = vmov 0.0  }
 0x59a   :  { %v1696_v31 = vmul.f32 %v3896_v56, %v1695_v23  ;;  %v1749_v45 = vpop.permute.xlu1 %1748  ;;  %1330 = vst [vmem:[#allocation2] sm:$0x3] %v4072_v43 }
 0x59b   :  { %v1735_v23 = vmul.f32 %v3898_v35, %v1734_v14  ;;  %v1751_v42 = vmul.f32 %v1749_v45, %v1725_v20  ;;  %v1744_v20 = vor.u32 1.1754944e-38, %v1743_v33  ;;  %1332 = vst.msk [vmem:[%s5594_s17] sm:$0x3] %vm1331_vm8, %v4072_v43 }
 0x59c   :  { %v1697_v27 = vadd.f32 %v3896_v56, %v1696_v31  ;;  %v3900_v32 = vpop.eup %3899 }
 0x59d   :  { %v1736_v47 = vadd.f32 %v3898_v35, %v1735_v23 }
 0x59e   :  { %v1701_v19 = vsel %vm1700_vm15, %v3896_v56, %v1697_v27 }
 0x59f   :  { %v1706_v17 = vsel %vm1703_vm1, %v1705_v59, %v1701_v19  ;;  %v1740_v19 = vsel %vm1739_vm5, %v3898_v35, %v1736_v47 }
 0x5a0   :  { %v1752_v21 = vmul.f32 %v3900_v32, %v1706_v17  ;;  %v1745_v14 = vsel %vm1742_vm6, %v1744_v20, %v1740_v19 }
 0x5a2   :  { %v4883_v46 = vadd.f32 %v1752_v21, %v1751_v42 }
 0x5a4   :  { %3901 = vtanh.f32 %v4883_v46 }
 0x5aa   :  { %v3902_v17 = vpop.eup %3901 }
 0x5ab   :  { %v1755_v24 = vmul.f32 %v3902_v17, %v1745_v14 }
 0x5ad   :  { %v4891_v56 = vpack.c.bf16 %v1755_v24, %v1755_v24 }
 0x5af   :  { %3591 = vmatmul.msk.bf16.vlgmr.msra.gmra.mxu0 %vm362_vm4, %v4891_v56  ;;  %3596 = vmatmul.msk.bf16.vlgmr.msrb.gmra.mxu3 %vm362_vm4, %v4891_v56 }
 0x5b0   :  { %3599 = vmatmul.msk.bf16.vlgmr.msrb.gmra.mxu1 %vm362_vm4, %v4891_v56  ;;  %1915 = vmatpush.bf16.msra.mxu0 %v4682_v2 }
 0x5b1   :  { %1995 = vmatpush.bf16.msrb.mxu1 %v4855_v26  ;;  %2031 = vmatpush.bf16.msrb.mxu3 %v4545_v62 }
 0x5b4   :  { %1916 = vmatpush.bf16.msra.mxu0 %v4746_v11 }
 0x5b5   :  { %1996 = vmatpush.bf16.msrb.mxu1 %v4861_v37  ;;  %2032 = vmatpush.bf16.msrb.mxu3 %v4556_v7 }
 0x5b9   :  { %2033 = vmatpush.bf16.msrb.mxu3 %v4573_v50 }
 0x5bd   :  { %2034 = vmatpush.bf16.msrb.mxu3 %v4596_v15 }
 0x5c0   :  { %3602 = vmatmul.msk.bf16.vlgmr.msra.gmra.mxu1 %vm362_vm4, %v4891_v56 }
 0x5c1   :  { %2057 = vmatpush.bf16.msra.mxu1 %v4550_v25  ;;  %2035 = vmatpush.bf16.msrb.mxu3 %v4615_v44 }
 0x5c5   :  { %2058 = vmatpush.bf16.msra.mxu1 %v4562_v16  ;;  %2036 = vmatpush.bf16.msrb.mxu3 %v4639_v54 }
 0x5c9   :  { %2059 = vmatpush.bf16.msra.mxu1 %v4579_v53  ;;  %2037 = vmatpush.bf16.msrb.mxu3 %v4652_v57 }
 0x5cd   :  { %2060 = vmatpush.bf16.msra.mxu1 %v4602_v3  ;;  %2038 = vmatpush.bf16.msrb.mxu3 %v4664_v60 }
 0x5d1   :  { %2061 = vmatpush.bf16.msra.mxu1 %v4621_v41 }
 0x5d5   :  { %2062 = vmatpush.bf16.msra.mxu1 %v4645_v22 }
 0x5d9   :  { %2063 = vmatpush.bf16.msra.mxu1 %v4658_v58 }
 0x5dd   :  { %2064 = vmatpush.bf16.msra.mxu1 %v4676_v0 }
 0x62c   :  { %v1784_v35 = vpop.f32.mrf.mxu0 }
 0x62d   :  { %v1785_v28 = vadd.f32 %v4924_v4, %v1784_v35  ;;  %v4927_v5 = vpop.f32.mrf.mxu1 }
 0x62f   :  { %1789 = vst [vmem:[#allocation2 + $0x2] sm:$0x3] %v1785_v28  ;;  %v1791_v31 = vsel %vm1790_vm0, %v1785_v28, -inf }
 0x630   :  { %1792 = vmax.xlane.f32.xlu2 %v1791_v31 }
 0x632   :  { %v4930_v38 = vpop.f32.mrf.mxu3 }
 0x634   :  { %v1786_v55 = vpop.f32.mrf.mxu0 }
 0x635   :  { %v1868_v27 = vpop.f32.mrf.mxu1 }
 0x63a   :  { %v1842_v59 = vpop.f32.mrf.mxu3 }
 0x63b   :  { %v5653_v59 = vmov 1.0|1.0  }
 0x63d   :  { %v4932_v32 = vpop.f32.mrf.mxu1 }
 0x645   :  { %v1894_v45 = vpop.f32.mrf.mxu1 }
 0x646   :  { %v5655_v45 = vld [vmem:[#allocation10_spill] sm:$0xff] }
 0x6a3   :  { %v1793_v23 = vpop.xlane.xlu2 %1792 }
 0x6a4   :  { %vm1794_vm7 = vcmp.eq.f32.partialorder %v1785_v28, %v1793_v23  ;;  %v5656_v23 = vld [vmem:[#allocation11_spill] sm:$0xff] }
 0x6a5   :  { %v1795_v42 = vsel %vm1794_vm7, %v4287_v39, 128 }
 0x6a6   :  { %v1796_v21 = vsel %vm1790_vm0, %v1795_v42, 2147483647 }
 0x6a7   :  { %v1798_v47 = vshra.s32 %v1796_v21, 16  ;;  %v1797_v19 = vand.u32 65535, %v1796_v21  ;;  %v5657_v21 = vld [vmem:[#allocation12_spill] sm:$0xff] }
 0x6a9   :  { %v1800_v33 = vcvt.s32.f32 %v1798_v47  ;;  %v1799_v17 = vcvt.s32.f32 %v1797_v19 }
 0x6ab   :  { %1801 = vmin.xlane.f32.xlu0 %v1800_v33 }
 0x71e   :  { %v1802_v20 = vpop.xlane.xlu0 %1801 }
 0x71f   :  { %vm1803_vm9 = vcmp.eq.f32.partialorder %v1800_v33, %v1802_v20  ;;  %v1808_v24 = vcvt.f32.s32 %v1802_v20  ;;  %v5658_v20 = vld [vmem:[#allocation14_spill] sm:$0xff] }
 0x720   :  { %v1804_v14 = vsel %vm1803_vm9, %v1799_v17, inf }
 0x721   :  { %1805 = vmin.xlane.f32.xlu1 %v1804_v14  ;;  %v1809_v28 = vshll.u32 %v1808_v24, 16 }
 0x794   :  { %v1806_v35 = vpop.xlane.xlu1 %1805 }
 0x795   :  { %v1807_v31 = vcvt.f32.s32 %v1806_v35 }
 0x797   :  { %v1810_v55 = vadd.s32 %v1809_v28, %v1807_v31 }
 0x799   :  { %v1811_v27 = vcvt.s32.f32 %v1810_v55  ;;  %vm1814_vm10 = vcmp.eq.s32.totalorder %v4287_v39, %v1810_v55 }
 0x79a   :  { %vm3594_vm11 = vmpackc.low %vm1814_vm10, %vm1814_vm10 }
 0x79b   :  { %3592 = vst.msk [vmem:[%s5594_s17 + $0x2] sm:$0x3] %vm1331_vm8, %v1811_v27  ;;  %3595 = vmatmul.msk.bf16.vlgmr.msrb.gmra.mxu2 %vm3594_vm11, %v5653_v59  ;;  %3598 = vmatmul.msk.bf16.vlgmr.msrb.gmra.mxu0 %vm3594_vm11, %v5653_v59 }
 0x79c   :  { %3601 = vmatmul.msk.bf16.vlgmr.msra.gmra.mxu3 %vm3594_vm11, %v5653_v59  ;;  %2050 = vmatpush.bf16.msrb.mxu0 %v4567_v36 }
 0x79d   :  { %2076 = vmatpush.bf16.msrb.mxu2 %v4626_v49  ;;  %2109 = vmatpush.bf16.msra.mxu3 %v4670_v48 }
 0x7a0   :  { %2051 = vmatpush.bf16.msrb.mxu0 %v4585_v1 }
 0x7a1   :  { %2077 = vmatpush.bf16.msrb.mxu2 %v4731_v9  ;;  %2110 = vmatpush.bf16.msra.mxu3 %v4689_v52 }
 0x7a5   :  { %2111 = vmatpush.bf16.msra.mxu3 %v4707_v30 }
 0x7a9   :  { %2112 = vmatpush.bf16.msra.mxu3 %v4713_v6 }
 0x7ab   :  { %3604 = vmatmul.msk.bf16.vlgmr.msra.gmra.mxu2 %vm3594_vm11, %v5653_v59  ;;  %3605 = vmatmul.msk.bf16.vlgmr.msra.gmra.mxu0 %vm362_vm4, %v4891_v56  ;;  %v5654_v56 = vld [vmem:[#allocation9_spill] sm:$0xff] }
 0x7ac   :  { %2102 = vmatpush.bf16.msra.mxu2 %v4766_v29  ;;  %2083 = vmatpush.bf16.msra.mxu0 %v4590_v40 }
 0x7ad   :  { %2113 = vmatpush.bf16.msra.mxu3 %v4719_v8 }
 0x7b0   :  { %2103 = vmatpush.bf16.msra.mxu2 %v4779_v18  ;;  %2084 = vmatpush.bf16.msra.mxu0 %v4609_v34 }
 0x7b1   :  { %2114 = vmatpush.bf16.msra.mxu3 %v4725_v63 }
 0x7b4   :  { %2085 = vmatpush.bf16.msra.mxu0 %v4632_v51 }
 0x7b5   :  { %2115 = vmatpush.bf16.msra.mxu3 %v4741_v61 }
 0x7b8   :  { %2086 = vmatpush.bf16.msra.mxu0 %v4736_v10 }
 0x7b9   :  { %2116 = vmatpush.bf16.msra.mxu3 %v4760_v13 }
 0x7bc   :  { %2087 = vmatpush.bf16.msra.mxu0 %v4755_v12 }
 0x7c0   :  { %2088 = vmatpush.bf16.msra.mxu0 %v5654_v56 }
 0x7c4   :  { %2089 = vmatpush.bf16.msra.mxu0 %v5655_v45 }
 0x7c8   :  { %2090 = vmatpush.bf16.msra.mxu0 %v5656_v23 }
 0x818   :  { %v1853_v42 = vpop.f32.mrf.mxu0 }
 0x819   :  { %v1854_v47 = vadd.f32 %v1853_v42, %v5657_v21 }
 0x81b   :  { %v1867_v33 = vadd.f32 %v4927_v5, %v1854_v47 }
 0x81d   :  { %v3607_v43 = vmul.f32 -1.442695, %v1867_v33 }
 0x81e   :  { %v1827_v19 = vpop.f32.mrf.mxu2 }
 0x81f   :  { %3903 = vpow2.f32 %v3607_v43  ;;  %v1828_v17 = vadd.f32 %v1827_v19, %v5658_v20  ;;  %v1879_v14 = vpop.f32.mrf.mxu3  ;;  %v5659_v43 = vld [vmem:[#allocation13_spill] sm:$0xff]  ;;  %v5660_v20 = vld [vmem:[#allocation15_spill] sm:$0xff] }
 0x820   :  { %v1855_v24 = vpop.f32.mrf.mxu0 }
 0x821   :  { %v1841_v35 = vadd.f32 %v4930_v38, %v1828_v17  ;;  %v1880_v24 = vadd.f32 %v1879_v14, %v5660_v20 }
 0x823   :  { %v3606_v28 = vmul.f32 -1.442695, %v1841_v35 }
 0x825   :  { %v3904_v31 = vpop.eup %3903  ;;  %3905 = vpow2.f32 %v3606_v28 }
 0x826   :  { %v1944_v55 = vadd.f32 1.0, %v3904_v31  ;;  %v1829_v27 = vpop.f32.mrf.mxu2 }
 0x827   :  { %v1881_v23 = vpop.f32.mrf.mxu3 }
 0x828   :  { %3907 = vrcp.f32 %v1944_v55  ;;  %v1918_v45 = vpop.f32.mrf.mxu0  ;;  %v1893_v23 = vadd.f32 %v4932_v32, %v1880_v24  ;;  %v1956_v61 = vand.u32 2147483648, %v1944_v55  ;;  %vm1950_vm14 = vweird.f32 %v1944_v55 }
 0x82b   :  { %v3906_v42 = vpop.eup %3905 }
 0x82c   :  { %v1925_v21 = vadd.f32 1.0, %v3906_v42 }
 0x82e   :  { %v3908_v5 = vpop.eup %3907  ;;  %3909 = vrcp.f32 %v1925_v21  ;;  %v1905_v47 = vpop.f32.mrf.mxu2  ;;  %v1937_v13 = vand.u32 2147483648, %v1925_v21  ;;  %v1935_v14 = vand.u32 2147483647, %v1925_v21  ;;  %vm1931_vm1 = vweird.f32 %v1925_v21 }
 0x82f   :  { %v1946_v33 = vmul.f32 %v3908_v5, %v1944_v55  ;;  %v1906_v19 = vadd.f32 %v1905_v47, %v5659_v43  ;;  %vm1951_vm12 = vweird.f32 %v3908_v5 }
 0x830   :  { %v1920_v56 = vpop.f32.mrf.mxu0  ;;  %vm1952_vm15 = vmor %vm1950_vm14, %vm1951_vm12  ;;  %v1938_v32 = vor.u32 1.1754944e-38, %v1937_v13  ;;  %vm1936_vm3 = vcmp.eq.f32.partialorder %v1935_v14, 8.507059e+37 }
 0x831   :  { %v1947_v38 = vsub.f32 1.0, %v1946_v33  ;;  %v1919_v17 = vadd.f32 %v1918_v45, %v1906_v19  ;;  %v1954_v56 = vand.u32 2147483647, %v1944_v55 }
 0x833   :  { %v3608_v35 = vmul.f32 -1.442695, %v1919_v17  ;;  %v1948_v31 = vmul.f32 %v3908_v5, %v1947_v38  ;;  %vm1955_vm5 = vcmp.eq.f32.partialorder %v1954_v56, 8.507059e+37 }
 0x834   :  { %v3910_v28 = vpop.eup %3909 }
 0x835   :  { %v1927_v27 = vmul.f32 %v3910_v28, %v1925_v21  ;;  %3911 = vpow2.f32 %v3608_v35  ;;  %v1949_v10 = vadd.f32 %v3908_v5, %v1948_v31  ;;  %vm1932_vm13 = vweird.f32 %v3910_v28 }
 0x836   :  { %v1907_v12 = vpop.f32.mrf.mxu2  ;;  %3913 = vtanh.f32 %v1893_v23  ;;  %vm1933_vm2 = vmor %vm1931_vm1, %vm1932_vm13 }
 0x837   :  { %v1928_v42 = vsub.f32 1.0, %v1927_v27  ;;  %v1953_v19 = vsel %vm1952_vm15, %v3908_v5, %v1949_v10  ;;  %v1957_v12 = vor.u32 1.1754944e-38, %v1956_v61 }
 0x839   :  { %v1929_v47 = vmul.f32 %v3910_v28, %v1928_v42  ;;  %v1958_v31 = vsel %vm1955_vm5, %v1957_v12, %v1953_v19 }
 0x83a   :  { %v1980_v27 = vmul.f32 %v1958_v31, %v4883_v46 }
 0x83b   :  { %v3912_v45 = vpop.eup %3911  ;;  %v1930_v33 = vadd.f32 %v3910_v28, %v1929_v47 }
 0x83c   :  { %v1964_v24 = vadd.f32 1.0, %v3912_v45  ;;  %v3914_v17 = vpop.eup %3913 }
 0x83d   :  { %v1934_v38 = vsel %vm1933_vm2, %v3910_v28, %v1930_v33 }
 0x83e   :  { %v1939_v35 = vsel %vm1936_vm3, %v1938_v32, %v1934_v38  ;;  %3915 = vrcp.f32 %v1964_v24  ;;  %v1976_v10 = vand.u32 2147483648, %v1964_v24  ;;  %v1974_v61 = vand.u32 2147483647, %v1964_v24 }
 0x83f   :  { %v1981_v23 = vmul.f32 %v3914_v17, %v1939_v35  ;;  %vm1970_vm7 = vweird.f32 %v1964_v24 }
 0x840   :  { %v1977_v28 = vor.u32 1.1754944e-38, %v1976_v10  ;;  %vm1975_vm10 = vcmp.eq.f32.partialorder %v1974_v61, 8.507059e+37 }
 0x841   :  { %v4981_v42 = vadd.f32 %v1981_v23, %v1980_v27 }
 0x843   :  { %3917 = vtanh.f32 %v4981_v42 }
 0x844   :  { %v3916_v55 = vpop.eup %3915 }
 0x845   :  { %v1966_v47 = vmul.f32 %v3916_v55, %v1964_v24  ;;  %vm1971_vm6 = vweird.f32 %v3916_v55 }
 0x846   :  { %vm1972_vm9 = vmor %vm1970_vm7, %vm1971_vm6 }
 0x847   :  { %v1967_v21 = vsub.f32 1.0, %v1966_v47 }
 0x849   :  { %v1968_v13 = vmul.f32 %v3916_v55, %v1967_v21  ;;  %v3918_v56 = vpop.eup %3917 }
 0x84b   :  { %v1969_v5 = vadd.f32 %v3916_v55, %v1968_v13 }
 0x84d   :  { %v1973_v14 = vsel %vm1972_vm9, %v3916_v55, %v1969_v5 }
 0x84e   :  { %v1978_v45 = vsel %vm1975_vm10, %v1977_v28, %v1973_v14 }
 0x84f   :  { %v1984_v46 = vmul.f32 %v3918_v56, %v1978_v45 }
 0x851   :  { %v4984_v33 = vpack.c.bf16 %v1984_v46, %v1984_v46 }
 0x853   :  { %3609 = vmatmul.msk.bf16.vlgmr.msrb.gmra.mxu1 %vm362_vm4, %v4984_v33  ;;  %3614 = vmatmul.msk.bf16.vlgmr.msrb.gmra.mxu0 %vm362_vm4, %v4984_v33 }
 0x854   :  { %3617 = vmatmul.msk.bf16.vlgmr.msrb.gmra.mxu2 %vm362_vm4, %v4984_v33  ;;  %2128 = vmatpush.bf16.msrb.mxu1 %v4682_v2 }
 0x855   :  { %2208 = vmatpush.bf16.msrb.mxu2 %v4855_v26  ;;  %2244 = vmatpush.bf16.msrb.mxu0 %v4545_v62 }
 0x858   :  { %2129 = vmatpush.bf16.msrb.mxu1 %v4746_v11 }
 0x859   :  { %2209 = vmatpush.bf16.msrb.mxu2 %v4861_v37  ;;  %2245 = vmatpush.bf16.msrb.mxu0 %v4556_v7 }
 0x85d   :  { %2246 = vmatpush.bf16.msrb.mxu0 %v4573_v50 }
 0x861   :  { %2247 = vmatpush.bf16.msrb.mxu0 %v4596_v15 }
 0x864   :  { %3620 = vmatmul.msk.bf16.vlgmr.msra.gmra.mxu2 %vm362_vm4, %v4984_v33 }
 0x865   :  { %2270 = vmatpush.bf16.msra.mxu2 %v4550_v25  ;;  %2248 = vmatpush.bf16.msrb.mxu0 %v4615_v44 }
 0x869   :  { %2271 = vmatpush.bf16.msra.mxu2 %v4562_v16  ;;  %2249 = vmatpush.bf16.msrb.mxu0 %v4639_v54 }
 0x86d   :  { %2272 = vmatpush.bf16.msra.mxu2 %v4579_v53  ;;  %2250 = vmatpush.bf16.msrb.mxu0 %v4652_v57 }
 0x871   :  { %2273 = vmatpush.bf16.msra.mxu2 %v4602_v3  ;;  %2251 = vmatpush.bf16.msrb.mxu0 %v4664_v60 }
 0x875   :  { %2274 = vmatpush.bf16.msra.mxu2 %v4621_v41 }
 0x879   :  { %2275 = vmatpush.bf16.msra.mxu2 %v4645_v22 }
 0x87d   :  { %2276 = vmatpush.bf16.msra.mxu2 %v4658_v58 }
 0x881   :  { %2277 = vmatpush.bf16.msra.mxu2 %v4676_v0 }
 0x8d0   :  { %v1998_v62 = vpop.f32.mrf.mxu1  ;;  %v5014_v25 = vpop.f32.mrf.mxu0 }
 0x8d1   :  { %v1999_v7 = vadd.f32 %v4924_v4, %v1998_v62 }
 0x8d3   :  { %2003 = vst [vmem:[#allocation2 + $0x4] sm:$0x3] %v1999_v7  ;;  %v2004_v16 = vsel %vm1790_vm0, %v1999_v7, -inf }
 0x8d4   :  { %2005 = vmax.xlane.f32.xlu2 %v2004_v16 }
 0x8d7   :  { %v2079_v50 = vpop.f32.mrf.mxu2 }
 0x8d8   :  { %v2000_v53 = vpop.f32.mrf.mxu1  ;;  %v2055_v15 = vpop.f32.mrf.mxu0 }
 0x8df   :  { %v2081_v3 = vpop.f32.mrf.mxu2 }
 0x8e7   :  { %v5018_v44 = vpop.f32.mrf.mxu2 }
 0x8ef   :  { %v2107_v41 = vpop.f32.mrf.mxu2 }
 0x947   :  { %v2006_v54 = vpop.xlane.xlu2 %2005 }
 0x948   :  { %vm2007_vm11 = vcmp.eq.f32.partialorder %v1999_v7, %v2006_v54 }
 0x949   :  { %v2008_v22 = vsel %vm2007_vm11, %v4287_v39, 128 }
 0x94a   :  { %v2009_v57 = vsel %vm1790_vm0, %v2008_v22, 2147483647 }
 0x94b   :  { %v2011_v58 = vshra.s32 %v2009_v57, 16  ;;  %v2010_v0 = vand.u32 65535, %v2009_v57 }
 0x94d   :  { %v2013_v60 = vcvt.s32.f32 %v2011_v58  ;;  %v2012_v11 = vcvt.s32.f32 %v2010_v0 }
 0x94f   :  { %2014 = vmin.xlane.f32.xlu2 %v2013_v60 }
 0x9c2   :  { %v2015_v2 = vpop.xlane.xlu2 %2014 }
 0x9c3   :  { %vm2016_vm12 = vcmp.eq.f32.partialorder %v2013_v60, %v2015_v2  ;;  %v2021_v19 = vcvt.f32.s32 %v2015_v2 }
 0x9c4   :  { %v2017_v32 = vsel %vm2016_vm12, %v2012_v11, inf }
 0x9c5   :  { %2018 = vmin.xlane.f32.xlu0 %v2017_v32  ;;  %v2022_v12 = vshll.u32 %v2021_v19, 16 }
 0xa38   :  { %v2019_v24 = vpop.xlane.xlu0 %2018 }
 0xa39   :  { %v2020_v38 = vcvt.f32.s32 %v2019_v24 }
 0xa3b   :  { %v2023_v17 = vadd.s32 %v2022_v12, %v2020_v38 }
 0xa3d   :  { %v2024_v35 = vcvt.s32.f32 %v2023_v17  ;;  %vm2027_vm13 = vcmp.eq.s32.totalorder %v4287_v39, %v2023_v17 }
 0xa3e   :  { %vm3612_vm14 = vmpackc.low %vm2027_vm13, %vm2027_vm13 }
 0xa3f   :  { %3610 = vst.msk [vmem:[%s5594_s17 + $0x4] sm:$0x3] %vm1331_vm8, %v2024_v35  ;;  %3613 = vmatmul.msk.bf16.vlgmr.msrb.gmra.mxu3 %vm3612_vm14, %v5653_v59  ;;  %3616 = vmatmul.msk.bf16.vlgmr.msra.gmra.mxu1 %vm3612_vm14, %v5653_v59 }
 0xa40   :  { %3619 = vmatmul.msk.bf16.vlgmr.msra.gmra.mxu0 %vm3612_vm14, %v5653_v59  ;;  %2263 = vmatpush.bf16.msra.mxu1 %v4567_v36  ;;  %v5661_v36 = vld [vmem:[#allocation6_spill] sm:$0xff] }
 0xa41   :  { %2289 = vmatpush.bf16.msrb.mxu3 %v4626_v49  ;;  %2322 = vmatpush.bf16.msra.mxu0 %v4670_v48  ;;  %v5663_v49 = vld [vmem:[#allocation8_spill] sm:$0xff]  ;;  %v5664_v48 = vld [vmem:[#allocation7_spill] sm:$0xff] }
 0xa44   :  { %2264 = vmatpush.bf16.msra.mxu1 %v4585_v1  ;;  %v5662_v1 = vld [vmem:[#allocation5_spill] sm:$0xff] }
 0xa45   :  { %2290 = vmatpush.bf16.msrb.mxu3 %v4731_v9  ;;  %2323 = vmatpush.bf16.msra.mxu0 %v4689_v52  ;;  %v5665_v52 = vld [vmem:[#allocation9_spill] sm:$0xff] }
 0xa49   :  { %2324 = vmatpush.bf16.msra.mxu0 %v4707_v30  ;;  %v5667_v30 = vld [vmem:[#allocation11_spill] sm:$0xff] }
 0xa4d   :  { %2325 = vmatpush.bf16.msra.mxu0 %v4713_v6 }
 0xa4f   :  { %3622 = vmatmul.msk.bf16.vlgmr.msra.gmra.mxu3 %vm3612_vm14, %v5653_v59  ;;  %3623 = vmatmul.msk.bf16.vlgmr.msrb.gmra.mxu1 %vm362_vm4, %v4984_v33 }
 0xa50   :  { %2315 = vmatpush.bf16.msra.mxu3 %v4766_v29  ;;  %2296 = vmatpush.bf16.msrb.mxu1 %v4590_v40  ;;  %v5666_v40 = vld [vmem:[#allocation10_spill] sm:$0xff] }
 0xa51   :  { %2326 = vmatpush.bf16.msra.mxu0 %v4719_v8 }
 0xa54   :  { %2316 = vmatpush.bf16.msra.mxu3 %v4779_v18  ;;  %2297 = vmatpush.bf16.msrb.mxu1 %v4609_v34  ;;  %v5668_v34 = vld [vmem:[#allocation12_spill] sm:$0xff]  ;;  %v5669_v18 = vld [vmem:[#allocation14_spill] sm:$0xff] }
 0xa55   :  { %2327 = vmatpush.bf16.msra.mxu0 %v4725_v63 }
 0xa58   :  { %2298 = vmatpush.bf16.msrb.mxu1 %v4632_v51 }
 0xa59   :  { %2328 = vmatpush.bf16.msra.mxu0 %v5661_v36 }
 0xa5c   :  { %2299 = vmatpush.bf16.msrb.mxu1 %v5662_v1 }
 0xa5d   :  { %2329 = vmatpush.bf16.msra.mxu0 %v5663_v49 }
 0xa60   :  { %2300 = vmatpush.bf16.msrb.mxu1 %v5664_v48 }
 0xa64   :  { %2301 = vmatpush.bf16.msrb.mxu1 %v5665_v52 }
 0xa68   :  { %2302 = vmatpush.bf16.msrb.mxu1 %v5666_v40 }
 0xa6c   :  { %2303 = vmatpush.bf16.msrb.mxu1 %v5667_v30 }
 0xabc   :  { %v2066_v6 = vpop.f32.mrf.mxu1 }
 0xabd   :  { %v2067_v8 = vadd.f32 %v2066_v6, %v5668_v34  ;;  %v2092_v63 = vpop.f32.mrf.mxu0 }
 0xabe   :  { %v2093_v33 = vadd.f32 %v2092_v63, %v5660_v20 }
 0xabf   :  { %v2080_v9 = vadd.f32 %v2079_v50, %v2067_v8 }
 0xac0   :  { %v2106_v15 = vadd.f32 %v5018_v44, %v2093_v33  ;;  %v5164_v33 = vld [vmem:[%s5588_s11 + $0x68] sm:$0xff] }
 0xac1   :  { %v3625_v51 = vmul.f32 -1.442695, %v2080_v9 }
 0xac2   :  { %v2040_v29 = vpop.f32.mrf.mxu3 }
 0xac3   :  { %3919 = vpow2.f32 %v3625_v51  ;;  %v2041_v31 = vadd.f32 %v2040_v29, %v5669_v18 }
 0xac4   :  { %v2068_v23 = vpop.f32.mrf.mxu1 }
 0xac5   :  { %v2054_v27 = vadd.f32 %v5014_v25, %v2041_v31  ;;  %v2094_v55 = vpop.f32.mrf.mxu0 }
 0xac6   :  { %v5076_v55 = vld [vmem:[%s5588_s11 + $0x138] sm:$0xff] }
 0xac7   :  { %v3624_v47 = vmul.f32 -1.442695, %v2054_v27 }
 0xac9   :  { %v3920_v21 = vpop.eup %3919  ;;  %3921 = vpow2.f32 %v3624_v47  ;;  %v5083_v47 = vld [vmem:[%s5588_s11 + $0x38] sm:$0xff] }
 0xaca   :  { %v2157_v10 = vadd.f32 1.0, %v3920_v21  ;;  %v2042_v13 = vpop.f32.mrf.mxu3  ;;  %v5089_v21 = vld [vmem:[%s5588_s11 + $0x130] sm:$0xff] }
 0xacb   :  { %v5108_v13 = vld [vmem:[%s5588_s11 + $0x20] sm:$0xff] }
 0xacc   :  { %3923 = vrcp.f32 %v2157_v10  ;;  %v2131_v61 = vpop.f32.mrf.mxu1  ;;  %v2169_v58 = vand.u32 2147483648, %v2157_v10  ;;  %vm2163_vm2 = vweird.f32 %v2157_v10  ;;  %v2167_v2 = vand.u32 2147483647, %v2157_v10 }
 0xace   :  { %v2170_v12 = vor.u32 1.1754944e-38, %v2169_v58  ;;  %vm2168_vm9 = vcmp.eq.f32.partialorder %v2167_v2, 8.507059e+37 }
 0xacf   :  { %v3922_v5 = vpop.eup %3921 }
 0xad0   :  { %v2138_v28 = vadd.f32 1.0, %v3922_v5  ;;  %v5128_v5 = vld [vmem:[%s5588_s11 + $0x80] sm:$0xff] }
 0xad2   :  { %v3924_v14 = vpop.eup %3923  ;;  %3925 = vrcp.f32 %v2138_v28  ;;  %v2118_v56 = vpop.f32.mrf.mxu3  ;;  %v2150_v57 = vand.u32 2147483648, %v2138_v28  ;;  %v2148_v0 = vand.u32 2147483647, %v2138_v28  ;;  %vm2144_vm5 = vweird.f32 %v2138_v28 }
 0xad3   :  { %v2159_v45 = vmul.f32 %v3924_v14, %v2157_v10  ;;  %v2119_v46 = vadd.f32 %v2118_v56, %v5659_v43  ;;  %vm2164_vm15 = vweird.f32 %v3924_v14  ;;  %v5102_v10 = vld [vmem:[%s5588_s11 + $0x28] sm:$0xff] }
 0xad4   :  { %v2133_v62 = vpop.f32.mrf.mxu1  ;;  %vm2165_vm3 = vmor %vm2163_vm2, %vm2164_vm15  ;;  %v2151_v44 = vor.u32 1.1754944e-38, %v2150_v57  ;;  %vm2149_vm7 = vcmp.eq.f32.partialorder %v2148_v0, 8.507059e+37  ;;  %v5146_v56 = vld [vmem:[%s5588_s11 + $0x8] sm:$0xff] }
 0xad5   :  { %v2160_v25 = vsub.f32 1.0, %v2159_v45  ;;  %v2132_v7 = vadd.f32 %v2131_v61, %v2119_v46  ;;  %v5122_v61 = vld [vmem:[%s5588_s11 + $0x18] sm:$0xff]  ;;  %v5152_v45 = vld [vmem:[%s5588_s11 + $0x70] sm:$0xff]  ;;  %v5158_v46 = vld [vmem:[%s5588_s11] sm:$0xff] }
 0xad6   :  { %v5170_v62 = vld [vmem:[%s5588_s11 + $0x60] sm:$0xff] }
 0xad7   :  { %v3626_v16 = vmul.f32 -1.442695, %v2132_v7  ;;  %v2161_v53 = vmul.f32 %v3924_v14, %v2160_v25  ;;  %v5176_v25 = vld [vmem:[%s5588_s11 + $0x58] sm:$0xff]  ;;  %v5182_v7 = vld [vmem:[%s5588_s11 + $0x50] sm:$0xff] }
 0xad8   :  { %v3926_v50 = vpop.eup %3925 }
 0xad9   :  { %v2140_v3 = vmul.f32 %v3926_v50, %v2138_v28  ;;  %3927 = vpow2.f32 %v3626_v16  ;;  %v2162_v22 = vadd.f32 %v3924_v14, %v2161_v53  ;;  %vm2145_vm1 = vweird.f32 %v3926_v50  ;;  %v5134_v28 = vld [vmem:[%s5588_s11 + $0x10] sm:$0xff] }
 0xada   :  { %v2120_v41 = vpop.f32.mrf.mxu3  ;;  %3929 = vtanh.f32 %v2106_v15  ;;  %vm2146_vm6 = vmor %vm2144_vm5, %vm2145_vm1 }
 0xadb   :  { %v2141_v54 = vsub.f32 1.0, %v2140_v3  ;;  %v2166_v19 = vsel %vm2165_vm3, %v3924_v14, %v2162_v22  ;;  %v5140_v14 = vld [vmem:[%s5588_s11 + $0x78] sm:$0xff] }
 0xadc   :  { %v2171_v36 = vsel %vm2168_vm9, %v2170_v12, %v2166_v19 }
 0xadd   :  { %v2142_v60 = vmul.f32 %v3926_v50, %v2141_v54  ;;  %v2193_v49 = vmul.f32 %v2171_v36, %v4981_v42 }
 0xadf   :  { %v3928_v11 = vpop.eup %3927  ;;  %v2143_v32 = vadd.f32 %v3926_v50, %v2142_v60 }
 0xae0   :  { %v2177_v24 = vadd.f32 1.0, %v3928_v11  ;;  %v3930_v17 = vpop.eup %3929 }
 0xae1   :  { %v2147_v38 = vsel %vm2146_vm6, %v3926_v50, %v2143_v32 }
 0xae2   :  { %v2152_v35 = vsel %vm2149_vm7, %v2151_v44, %v2147_v38  ;;  %3931 = vrcp.f32 %v2177_v24  ;;  %v2189_v6 = vand.u32 2147483648, %v2177_v24  ;;  %v2187_v63 = vand.u32 2147483647, %v2177_v24 }
 0xae3   :  { %v2194_v1 = vmul.f32 %v3930_v17, %v2152_v35  ;;  %vm2183_vm11 = vweird.f32 %v2177_v24 }
 0xae4   :  { %v2190_v51 = vor.u32 1.1754944e-38, %v2189_v6  ;;  %vm2188_vm13 = vcmp.eq.f32.partialorder %v2187_v63, 8.507059e+37  ;;  %v5234_v6 = vld [vmem:[%s5588_s11 + $0x40] sm:$0xff] }
 0xae5   :  { %v5062_v52 = vadd.f32 %v2194_v1, %v2193_v49  ;;  %v5246_v63 = vld [vmem:[%s5588_s11 + $0x120] sm:$0xff] }
 0xae7   :  { %3933 = vtanh.f32 %v5062_v52 }
 0xae8   :  { %v3932_v48 = vpop.eup %3931 }
 0xae9   :  { %v2179_v40 = vmul.f32 %v3932_v48, %v2177_v24  ;;  %vm2184_vm10 = vweird.f32 %v3932_v48 }
 0xaea   :  { %vm2185_vm12 = vmor %vm2183_vm11, %vm2184_vm10 }
 0xaeb   :  { %v2180_v30 = vsub.f32 1.0, %v2179_v40  ;;  %v5222_v40 = vld [vmem:[%s5588_s11 + $0x98] sm:$0xff] }
 0xaed   :  { %v2181_v8 = vmul.f32 %v3932_v48, %v2180_v30  ;;  %v3934_v31 = vpop.eup %3933  ;;  %v5228_v30 = vld [vmem:[%s5588_s11 + $0x128] sm:$0xff] }
 0xaef   :  { %v2182_v9 = vadd.f32 %v3932_v48, %v2181_v8  ;;  %v5240_v8 = vld [vmem:[%s5588_s11 + $0x90] sm:$0xff] }
 0xaf1   :  { %v2186_v29 = vsel %vm2185_vm12, %v3932_v48, %v2182_v9  ;;  %v5216_v48 = vld [vmem:[%s5588_s11 + $0x48] sm:$0xff]  ;;  %v5252_v9 = vld [vmem:[%s5588_s11 + $0x118] sm:$0xff] }
 0xaf2   :  { %v2191_v23 = vsel %vm2188_vm13, %v2190_v51, %v2186_v29  ;;  %v5258_v51 = vld [vmem:[%s5588_s11 + $0x110] sm:$0xff]  ;;  %v5269_v29 = vld [vmem:[%s5588_s11 + $0xe8] sm:$0xff] }
 0xaf3   :  { %v2197_v42 = vmul.f32 %v3934_v31, %v2191_v23  ;;  %v5275_v31 = vld [vmem:[%s5588_s11 + $0xd8] sm:$0xff]  ;;  %v5281_v23 = vld [vmem:[%s5588_s11 + $0x108] sm:$0xff] }
 0xaf5   :  { %v5065_v27 = vpack.c.bf16 %v2197_v42, %v2197_v42  ;;  %v5287_v42 = vld [vmem:[%s5588_s11 + $0xe0] sm:$0xff] }
 0xaf7   :  { %3627 = vmatmul.msk.bf16.vlgmr.msrb.gmra.mxu2 %vm362_vm4, %v5065_v27  ;;  %3632 = vmatmul.msk.bf16.vlgmr.msra.gmra.mxu1 %vm362_vm4, %v5065_v27 }
 0xaf8   :  { %3635 = vmatmul.msk.bf16.vlgmr.msrb.gmra.mxu3 %vm362_vm4, %v5065_v27  ;;  %2341 = vmatpush.bf16.msrb.mxu2 %v5076_v55 }
 0xaf9   :  { %2421 = vmatpush.bf16.msrb.mxu3 %v4855_v26  ;;  %2457 = vmatpush.bf16.msra.mxu1 %v5083_v47  ;;  %v5096_v26 = vld [vmem:[%s5588_s11 + $0x30] sm:$0xff] }
 0xafc   :  { %2342 = vmatpush.bf16.msrb.mxu2 %v5089_v21 }
 0xafd   :  { %2422 = vmatpush.bf16.msrb.mxu3 %v4861_v37  ;;  %2458 = vmatpush.bf16.msra.mxu1 %v5096_v26  ;;  %v5116_v37 = vld [vmem:[%s5588_s11 + $0x88] sm:$0xff] }
 0xb01   :  { %2459 = vmatpush.bf16.msra.mxu1 %v5102_v10 }
 0xb05   :  { %2460 = vmatpush.bf16.msra.mxu1 %v5108_v13 }
 0xb08   :  { %3638 = vmatmul.msk.bf16.vlgmr.msra.gmra.mxu3 %vm362_vm4, %v5065_v27 }
 0xb09   :  { %2483 = vmatpush.bf16.msra.mxu3 %v5116_v37  ;;  %2461 = vmatpush.bf16.msra.mxu1 %v5122_v61 }
 0xb0d   :  { %2484 = vmatpush.bf16.msra.mxu3 %v5128_v5  ;;  %2462 = vmatpush.bf16.msra.mxu1 %v5134_v28 }
 0xb11   :  { %2485 = vmatpush.bf16.msra.mxu3 %v5140_v14  ;;  %2463 = vmatpush.bf16.msra.mxu1 %v5146_v56 }
 0xb15   :  { %2486 = vmatpush.bf16.msra.mxu3 %v5152_v45  ;;  %2464 = vmatpush.bf16.msra.mxu1 %v5158_v46 }
 0xb19   :  { %2487 = vmatpush.bf16.msra.mxu3 %v5164_v33 }
 0xb1d   :  { %2488 = vmatpush.bf16.msra.mxu3 %v5170_v62 }
 0xb21   :  { %2489 = vmatpush.bf16.msra.mxu3 %v5176_v25 }
 0xb25   :  { %2490 = vmatpush.bf16.msra.mxu3 %v5182_v7 }
 0xb74   :  { %v5185_v16 = vpop.f32.mrf.mxu1 }
 0xb7a   :  { %v2211_v50 = vpop.f32.mrf.mxu2 }
 0xb7b   :  { %v2212_v53 = vadd.f32 %v4924_v4, %v2211_v50  ;;  %v5188_v15 = vpop.f32.mrf.mxu3  ;;  %v5299_v50 = vld [vmem:[%s5588_s11 + $0x100] sm:$0xff] }
 0xb7c   :  { %v2268_v3 = vpop.f32.mrf.mxu1 }
 0xb7d   :  { %2216 = vst [vmem:[#allocation2 + $0x6] sm:$0x3] %v2212_v53  ;;  %v2217_v41 = vsel %vm1790_vm0, %v2212_v53, -inf  ;;  %v5311_v3 = vld [vmem:[%s5588_s11 + $0xf8] sm:$0xff] }
 0xb7e   :  { %2218 = vmax.xlane.f32.xlu1 %v2217_v41  ;;  %v5317_v41 = vld [vmem:[%s5588_s11 + $0xc0] sm:$0xff] }
 0xb7f   :  { %5672 = vst [vmem:[#allocation6_spill] sm:$0xff] %v5317_v41 }
 0xb82   :  { %v2213_v54 = vpop.f32.mrf.mxu2 }
 0xb83   :  { %v2294_v22 = vpop.f32.mrf.mxu3  ;;  %v5323_v54 = vld [vmem:[%s5588_s11 + $0xf0] sm:$0xff] }
 0xb84   :  { %5673 = vst [vmem:[#allocation5_spill] sm:$0xff] %v5323_v54  ;;  %v5329_v22 = vld [vmem:[%s5588_s11 + $0xb8] sm:$0xff] }
 0xb85   :  { %5674 = vst [vmem:[#allocation8_spill] sm:$0xff] %v5329_v22 }
 0xb8b   :  { %v5191_v57 = vpop.f32.mrf.mxu3 }
 0xb93   :  { %v2320_v58 = vpop.f32.mrf.mxu3 }
 0xb94   :  { %v5335_v58 = vld [vmem:[%s5588_s11 + $0xb0] sm:$0xff] }
 0xb95   :  { %5675 = vst [vmem:[#allocation7_spill] sm:$0xff] %v5335_v58 }
 0xbf1   :  { %v2219_v60 = vpop.xlane.xlu1 %2218 }
 0xbf2   :  { %vm2220_vm14 = vcmp.eq.f32.partialorder %v2212_v53, %v2219_v60  ;;  %v5305_v53 = vld [vmem:[%s5588_s11 + $0xc8] sm:$0xff] }
 0xbf3   :  { %v2221_v0 = vsel %vm2220_vm14, %v4287_v39, 128  ;;  %v5341_v60 = vld [vmem:[%s5588_s11 + $0xa8] sm:$0xff] }
 0xbf4   :  { %v2222_v2 = vsel %vm1790_vm0, %v2221_v0, 2147483647  ;;  %5676 = vst [vmem:[#allocation9_spill] sm:$0xff] %v5341_v60  ;;  %v5347_v0 = vld [vmem:[%s5588_s11 + $0xa0] sm:$0xff] }
 0xbf5   :  { %v2224_v11 = vshra.s32 %v2222_v2, 16  ;;  %v2223_v32 = vand.u32 65535, %v2222_v2  ;;  %5677 = vst [vmem:[#allocation10_spill] sm:$0xff] %v5347_v0 }
 0xbf7   :  { %v2226_v4 = vcvt.s32.f32 %v2224_v11  ;;  %v2225_v44 = vcvt.s32.f32 %v2223_v32 }
 0xbf9   :  { %2227 = vmin.xlane.f32.xlu2 %v2226_v4 }
 0xc6c   :  { %v2228_v19 = vpop.xlane.xlu2 %2227 }
 0xc6d   :  { %vm2229_vm15 = vcmp.eq.f32.partialorder %v2226_v4, %v2228_v19  ;;  %v2234_v12 = vcvt.f32.s32 %v2228_v19 }
 0xc6e   :  { %v2230_v24 = vsel %vm2229_vm15, %v2225_v44, inf }
 0xc6f   :  { %2231 = vmin.xlane.f32.xlu0 %v2230_v24  ;;  %v2235_v17 = vshll.u32 %v2234_v12, 16 }
 0xce2   :  { %v2232_v38 = vpop.xlane.xlu0 %2231 }
 0xce3   :  { %v2233_v35 = vcvt.f32.s32 %v2232_v38 }
 0xce5   :  { %v2236_v36 = vadd.s32 %v2235_v17, %v2233_v35 }
 0xce7   :  { %v2237_v1 = vcvt.s32.f32 %v2236_v36  ;;  %vm2240_vm1 = vcmp.eq.s32.totalorder %v4287_v39, %v2236_v36 }
 0xce8   :  { %vm5196_vm2 = vmpackc.low %vm2240_vm1, %vm2240_vm1 }
 0xce9   :  { %3628 = vst.msk [vmem:[%s5594_s17 + $0x6] sm:$0x3] %vm1331_vm8, %v2237_v1  ;;  %3631 = vmatmul.msk.bf16.vlgmr.msrb.gmra.mxu0 %vm5196_vm2, %v5653_v59  ;;  %3634 = vmatmul.msk.bf16.vlgmr.msra.gmra.mxu2 %vm5196_vm2, %v5653_v59 }
 0xcea   :  { %3637 = vmatmul.msk.bf16.vlgmr.msrb.gmra.mxu1 %vm5196_vm2, %v5653_v59  ;;  %2476 = vmatpush.bf16.msra.mxu2 %v5216_v48 }
 0xceb   :  { %2502 = vmatpush.bf16.msrb.mxu0 %v5222_v40  ;;  %2535 = vmatpush.bf16.msrb.mxu1 %v5228_v30 }
 0xcee   :  { %2477 = vmatpush.bf16.msra.mxu2 %v5234_v6 }
 0xcef   :  { %2503 = vmatpush.bf16.msrb.mxu0 %v5240_v8  ;;  %2536 = vmatpush.bf16.msrb.mxu1 %v5246_v63 }
 0xcf3   :  { %2537 = vmatpush.bf16.msrb.mxu1 %v5252_v9 }
 0xcf7   :  { %2538 = vmatpush.bf16.msrb.mxu1 %v5258_v51 }
 0xcf9   :  { %3640 = vmatmul.msk.bf16.vlgmr.msra.gmra.mxu0 %vm5196_vm2, %v5653_v59  ;;  %3641 = vmatmul.msk.bf16.vlgmr.msrb.gmra.mxu2 %vm362_vm4, %v5065_v27  ;;  %v5293_v27 = vld [vmem:[%s5588_s11 + $0xd0] sm:$0xff] }
 0xcfa   :  { %2528 = vmatpush.bf16.msra.mxu0 %v5269_v29  ;;  %2509 = vmatpush.bf16.msrb.mxu2 %v5275_v31 }
 0xcfb   :  { %2539 = vmatpush.bf16.msrb.mxu1 %v5281_v23 }
 0xcfe   :  { %2529 = vmatpush.bf16.msra.mxu0 %v5287_v42  ;;  %2510 = vmatpush.bf16.msrb.mxu2 %v5293_v27 }
 0xcff   :  { %2540 = vmatpush.bf16.msrb.mxu1 %v5299_v50 }
 0xd02   :  { %2511 = vmatpush.bf16.msrb.mxu2 %v5305_v53 }
 0xd03   :  { %2541 = vmatpush.bf16.msrb.mxu1 %v5311_v3 }
 0xd06   :  { %2512 = vmatpush.bf16.msrb.mxu2 %v5317_v41 }
 0xd07   :  { %2542 = vmatpush.bf16.msrb.mxu1 %v5323_v54 }
 0xd0a   :  { %2513 = vmatpush.bf16.msrb.mxu2 %v5329_v22 }
 0xd0e   :  { %2514 = vmatpush.bf16.msrb.mxu2 %v5335_v58 }
 0xd12   :  { %2515 = vmatpush.bf16.msrb.mxu2 %v5341_v60 }
 0xd16   :  { %2516 = vmatpush.bf16.msrb.mxu2 %v5347_v0 }
 0xd66   :  { %v2253_v2 = vpop.f32.mrf.mxu0 }
 0xd67   :  { %v2254_v11 = vadd.f32 %v2253_v2, %v5669_v18  ;;  %v2305_v4 = vpop.f32.mrf.mxu1 }
 0xd69   :  { %v2267_v32 = vadd.f32 %v5185_v16, %v2254_v11 }
 0xd6b   :  { %v3642_v19 = vmul.f32 -1.442695, %v2267_v32 }
 0xd6c   :  { %v2279_v44 = vpop.f32.mrf.mxu2 }
 0xd6d   :  { %3935 = vpow2.f32 %v3642_v19  ;;  %v2280_v24 = vadd.f32 %v2279_v44, %v5668_v34 }
 0xd6e   :  { %v2255_v12 = vpop.f32.mrf.mxu0 }
 0xd6f   :  { %v2293_v38 = vadd.f32 %v5188_v15, %v2280_v24  ;;  %v2307_v17 = vpop.f32.mrf.mxu1  ;;  %v2306_v15 = vadd.f32 %v2305_v4, %v5660_v20 }
 0xd71   :  { %v3643_v35 = vmul.f32 -1.442695, %v2293_v38 }
 0xd73   :  { %v3936_v36 = vpop.eup %3935  ;;  %3937 = vpow2.f32 %v3643_v35  ;;  %v2319_v35 = vadd.f32 %v5191_v57, %v2306_v15 }
 0xd74   :  { %v2351_v1 = vadd.f32 1.0, %v3936_v36  ;;  %v2281_v49 = vpop.f32.mrf.mxu2 }
 0xd76   :  { %3939 = vrcp.f32 %v2351_v1  ;;  %v2331_v0 = vpop.f32.mrf.mxu0  ;;  %vm2357_vm5 = vweird.f32 %v2351_v1  ;;  %v2361_v60 = vand.u32 2147483647, %v2351_v1 }
 0xd77   :  { %v2332_v16 = vadd.f32 %v2331_v0, %v5659_v43  ;;  %v2363_v0 = vand.u32 2147483648, %v2351_v1 }
 0xd78   :  { %vm2362_vm10 = vcmp.eq.f32.partialorder %v2361_v60, 8.507059e+37 }
 0xd79   :  { %v3938_v2 = vpop.eup %3937 }
 0xd7a   :  { %v2370_v18 = vadd.f32 1.0, %v3938_v2 }
 0xd7c   :  { %v3940_v11 = vpop.eup %3939  ;;  %3941 = vrcp.f32 %v2370_v18  ;;  %v2344_v32 = vpop.f32.mrf.mxu2  ;;  %v2382_v58 = vand.u32 2147483648, %v2370_v18  ;;  %v2380_v4 = vand.u32 2147483647, %v2370_v18  ;;  %vm2376_vm9 = vweird.f32 %v2370_v18 }
 0xd7d   :  { %v2353_v19 = vmul.f32 %v3940_v11, %v2351_v1  ;;  %v2345_v44 = vadd.f32 %v2344_v32, %v2332_v16  ;;  %vm2358_vm3 = vweird.f32 %v3940_v11 }
 0xd7e   :  { %v2333_v12 = vpop.f32.mrf.mxu0  ;;  %vm2359_vm6 = vmor %vm2357_vm5, %vm2358_vm3  ;;  %v2383_v57 = vor.u32 1.1754944e-38, %v2382_v58  ;;  %vm2381_vm12 = vcmp.eq.f32.partialorder %v2380_v4, 8.507059e+37 }
 0xd7f   :  { %v2354_v34 = vsub.f32 1.0, %v2353_v19  ;;  %v3644_v24 = vmul.f32 -1.442695, %v2345_v44  ;;  %v2364_v44 = vor.u32 1.1754944e-38, %v2363_v0 }
 0xd81   :  { %v2355_v38 = vmul.f32 %v3940_v11, %v2354_v34  ;;  %3943 = vpow2.f32 %v3644_v24 }
 0xd82   :  { %v3942_v17 = vpop.eup %3941  ;;  %3945 = vtanh.f32 %v2319_v35 }
 0xd83   :  { %v2372_v36 = vmul.f32 %v3942_v17, %v2370_v18  ;;  %v2356_v49 = vadd.f32 %v3940_v11, %v2355_v38  ;;  %vm2377_vm7 = vweird.f32 %v3942_v17 }
 0xd84   :  { %v2346_v2 = vpop.f32.mrf.mxu2  ;;  %vm2378_vm11 = vmor %vm2376_vm9, %vm2377_vm7 }
 0xd85   :  { %v2373_v43 = vsub.f32 1.0, %v2372_v36  ;;  %v2360_v34 = vsel %vm2359_vm6, %v3940_v11, %v2356_v49 }
 0xd86   :  { %v2365_v15 = vsel %vm2362_vm10, %v2364_v44, %v2360_v34  ;;  %v5381_v44 = vld [vmem:[%s5590_s13] sm:$0xff] }
 0xd87   :  { %v3944_v16 = vpop.eup %3943  ;;  %v2374_v32 = vmul.f32 %v3942_v17, %v2373_v43 }
 0xd88   :  { %v2390_v19 = vadd.f32 1.0, %v3944_v16  ;;  %v3946_v38 = vpop.eup %3945 }
 0xd89   :  { %v2375_v12 = vadd.f32 %v3942_v17, %v2374_v32  ;;  %v2407_v35 = vmul.f32 %v3946_v38, %v2365_v15 }
 0xd8a   :  { %3947 = vrcp.f32 %v2390_v19  ;;  %v2402_v0 = vand.u32 2147483648, %v2390_v19  ;;  %v2400_v58 = vand.u32 2147483647, %v2390_v19  ;;  %vm2396_vm14 = vweird.f32 %v2390_v19 }
 0xd8b   :  { %v2379_v24 = vsel %vm2378_vm11, %v3942_v17, %v2375_v12 }
 0xd8c   :  { %v2384_v1 = vsel %vm2381_vm12, %v2383_v57, %v2379_v24  ;;  %v2403_v17 = vor.u32 1.1754944e-38, %v2402_v0  ;;  %vm2401_vm1 = vcmp.eq.f32.partialorder %v2400_v58, 8.507059e+37  ;;  %v5406_v24 = vld [vmem:[%s5591_s14] ss:$0 sm:$0xff] }
 0xd8d   :  { %v2406_v36 = vmul.f32 %v2384_v1, %v5062_v52 }
 0xd8f   :  { %v5358_v2 = vadd.f32 %v2407_v35, %v2406_v36 }
 0xd90   :  { %v3948_v43 = vpop.eup %3947 }
 0xd91   :  { %v2392_v11 = vmul.f32 %v3948_v43, %v2390_v19  ;;  %3949 = vtanh.f32 %v5358_v2  ;;  %vm2397_vm13 = vweird.f32 %v3948_v43  ;;  %v5373_v19 = vld [vmem:[%s5590_s13 + $0x8] sm:$0xff] }
 0xd92   :  { %vm2398_vm15 = vmor %vm2396_vm14, %vm2397_vm13 }
 0xd93   :  { %v2393_v49 = vsub.f32 1.0, %v2392_v11 }
 0xd95   :  { %v2394_v18 = vmul.f32 %v3948_v43, %v2393_v49 }
 0xd97   :  { %v2395_v60 = vadd.f32 %v3948_v43, %v2394_v18  ;;  %v3950_v32 = vpop.eup %3949 }
 0xd99   :  { %v2399_v16 = vsel %vm2398_vm15, %v3948_v43, %v2395_v60 }
 0xd9a   :  { %v2404_v52 = vsel %vm2401_vm1, %v2403_v17, %v2399_v16 }
 0xd9b   :  { %v2410_v4 = vmul.f32 %v3950_v32, %v2404_v52 }
 0xd9d   :  { %v5361_v34 = vpack.c.bf16 %v2410_v4, %v2410_v4 }
 0xd9f   :  { %3645 = vmatmul.msk.bf16.vlgmr.msrb.gmra.mxu3 %vm362_vm4, %v5361_v34  ;;  %3650 = vmatmul.msk.bf16.vlgmr.msra.gmra.mxu2 %vm362_vm4, %v5361_v34 }
 0xda0   :  { %3653 = vmatmul.msk.bf16.vlgmr.msrb.gmra.mxu0 %vm362_vm4, %v5361_v34  ;;  %2554 = vmatpush.bf16.msrb.mxu3 %v5076_v55 }
 0xda1   :  { %2634 = vmatpush.bf16.msrb.mxu0 %v5373_v19  ;;  %2670 = vmatpush.bf16.msra.mxu2 %v5083_v47 }
 0xda4   :  { %2555 = vmatpush.bf16.msrb.mxu3 %v5089_v21 }
 0xda5   :  { %2635 = vmatpush.bf16.msrb.mxu0 %v5381_v44  ;;  %2671 = vmatpush.bf16.msra.mxu2 %v5096_v26 }
 0xda9   :  { %2672 = vmatpush.bf16.msra.mxu2 %v5102_v10 }
 0xdad   :  { %2673 = vmatpush.bf16.msra.mxu2 %v5108_v13 }
 0xdb0   :  { %3656 = vmatmul.msk.bf16.vlgmr.msra.gmra.mxu0 %vm362_vm4, %v5361_v34 }
 0xdb1   :  { %2696 = vmatpush.bf16.msra.mxu0 %v5116_v37  ;;  %2674 = vmatpush.bf16.msra.mxu2 %v5122_v61 }
 0xdb5   :  { %2697 = vmatpush.bf16.msra.mxu0 %v5128_v5  ;;  %2675 = vmatpush.bf16.msra.mxu2 %v5134_v28 }
 0xdb9   :  { %2698 = vmatpush.bf16.msra.mxu0 %v5140_v14  ;;  %2676 = vmatpush.bf16.msra.mxu2 %v5146_v56 }
 0xdbd   :  { %2699 = vmatpush.bf16.msra.mxu0 %v5152_v45  ;;  %2677 = vmatpush.bf16.msra.mxu2 %v5158_v46 }
 0xdc1   :  { %2700 = vmatpush.bf16.msra.mxu0 %v5164_v33 }
 0xdc5   :  { %2701 = vmatpush.bf16.msra.mxu0 %v5170_v62 }
 0xdc9   :  { %2702 = vmatpush.bf16.msra.mxu0 %v5176_v25 }
 0xdcd   :  { %2703 = vmatpush.bf16.msra.mxu0 %v5182_v7 }
 0xe1d   :  { %v5401_v12 = vpop.f32.mrf.mxu0 }
 0xe22   :  { %v2424_v57 = vpop.f32.mrf.mxu3  ;;  %v2479_v15 = vpop.f32.mrf.mxu2 }
 0xe23   :  { %v2425_v1 = vadd.f32 %v5406_v24, %v2424_v57 }
 0xe25   :  { %2429 = vst [vmem:[#allocation2 + $0x8] sm:$0x3] %v2425_v1  ;;  %v2507_v38 = vpop.f32.mrf.mxu0  ;;  %v2430_v36 = vsel %vm1790_vm0, %v2425_v1, -inf }
 0xe26   :  { %2431 = vmax.xlane.f32.xlu1 %v2430_v36 }
 0xe2a   :  { %v2426_v35 = vpop.f32.mrf.mxu3  ;;  %v2481_v43 = vpop.f32.mrf.mxu2 }
 0xe2d   :  { %v5410_v11 = vpop.f32.mrf.mxu0 }
 0xe35   :  { %v2533_v49 = vpop.f32.mrf.mxu0 }
 0xe99   :  { %v2432_v0 = vpop.xlane.xlu1 %2431 }
 0xe9a   :  { %vm2433_vm2 = vcmp.eq.f32.partialorder %v2425_v1, %v2432_v0  ;;  %v5679_v1 = vld [vmem:[#allocation9_spill] sm:$0xff]  ;;  %v5680_v0 = vld [vmem:[#allocation10_spill] sm:$0xff] }
 0xe9b   :  { %v2434_v18 = vsel %vm2433_vm2, %v4287_v39, 128 }
 0xe9c   :  { %v2435_v58 = vsel %vm1790_vm0, %v2434_v18, 2147483647 }
 0xe9d   :  { %v2437_v60 = vshra.s32 %v2435_v58, 16  ;;  %v2436_v16 = vand.u32 65535, %v2435_v58  ;;  %v5681_v58 = vld [vmem:[#allocation14_spill] sm:$0xff] }
 0xe9f   :  { %v2439_v17 = vcvt.s32.f32 %v2437_v60  ;;  %v2438_v52 = vcvt.s32.f32 %v2436_v16 }
 0xea1   :  { %2440 = vmin.xlane.f32.xlu2 %v2439_v17 }
 0xf14   :  { %v2441_v32 = vpop.xlane.xlu2 %2440 }
 0xf15   :  { %vm2442_vm3 = vcmp.eq.f32.partialorder %v2439_v17, %v2441_v32  ;;  %v2447_v57 = vcvt.f32.s32 %v2441_v32 }
 0xf16   :  { %v2443_v4 = vsel %vm2442_vm3, %v2438_v52, inf  ;;  %v5682_v52 = vld [vmem:[#allocation12_spill] sm:$0xff] }
 0xf17   :  { %2444 = vmin.xlane.f32.xlu0 %v2443_v4  ;;  %v2448_v36 = vshll.u32 %v2447_v57, 16 }
 0xf8a   :  { %v2445_v38 = vpop.xlane.xlu0 %2444 }
 0xf8b   :  { %v2446_v35 = vcvt.f32.s32 %v2445_v38 }
 0xf8d   :  { %v2449_v43 = vadd.s32 %v2448_v36, %v2446_v35 }
 0xf8f   :  { %v2450_v49 = vcvt.s32.f32 %v2449_v43  ;;  %vm2453_vm5 = vcmp.eq.s32.totalorder %v4287_v39, %v2449_v43 }
 0xf90   :  { %vm3648_vm6 = vmpackc.low %vm2453_vm5, %vm2453_vm5 }
 0xf91   :  { %3646 = vst.msk [vmem:[%s5594_s17 + $0x8] sm:$0x3] %vm1331_vm8, %v2450_v49  ;;  %3649 = vmatmul.msk.bf16.vlgmr.msra.gmra.mxu1 %vm3648_vm6, %v5653_v59  ;;  %3652 = vmatmul.msk.bf16.vlgmr.msra.gmra.mxu3 %vm3648_vm6, %v5653_v59 }
 0xf92   :  { %3655 = vmatmul.msk.bf16.vlgmr.msrb.gmra.mxu2 %vm3648_vm6, %v5653_v59  ;;  %2689 = vmatpush.bf16.msra.mxu3 %v5216_v48 }
 0xf93   :  { %2715 = vmatpush.bf16.msra.mxu1 %v5222_v40  ;;  %2748 = vmatpush.bf16.msrb.mxu2 %v5228_v30 }
 0xf96   :  { %2690 = vmatpush.bf16.msra.mxu3 %v5234_v6 }
 0xf97   :  { %2716 = vmatpush.bf16.msra.mxu1 %v5240_v8  ;;  %2749 = vmatpush.bf16.msrb.mxu2 %v5246_v63 }
 0xf9b   :  { %2750 = vmatpush.bf16.msrb.mxu2 %v5252_v9 }
 0xf9f   :  { %2751 = vmatpush.bf16.msrb.mxu2 %v5258_v51 }
 0xfa1   :  { %3658 = vmatmul.msk.bf16.vlgmr.msrb.gmra.mxu1 %vm3648_vm6, %v5653_v59  ;;  %3659 = vmatmul.msk.bf16.vlgmr.msrb.gmra.mxu3 %vm362_vm4, %v5361_v34  ;;  %v5678_v34 = vld [vmem:[#allocation7_spill] sm:$0xff] }
 0xfa2   :  { %2741 = vmatpush.bf16.msrb.mxu1 %v5269_v29  ;;  %2722 = vmatpush.bf16.msrb.mxu3 %v5275_v31 }
 0xfa3   :  { %2752 = vmatpush.bf16.msrb.mxu2 %v5281_v23 }
 0xfa6   :  { %2742 = vmatpush.bf16.msrb.mxu1 %v5287_v42  ;;  %2723 = vmatpush.bf16.msrb.mxu3 %v5293_v27 }
 0xfa7   :  { %2753 = vmatpush.bf16.msrb.mxu2 %v5299_v50 }
 0xfaa   :  { %2724 = vmatpush.bf16.msrb.mxu3 %v5305_v53 }
 0xfab   :  { %2754 = vmatpush.bf16.msrb.mxu2 %v5311_v3 }
 0xfae   :  { %2725 = vmatpush.bf16.msrb.mxu3 %v5317_v41 }
 0xfaf   :  { %2755 = vmatpush.bf16.msrb.mxu2 %v5323_v54 }
 0xfb2   :  { %2726 = vmatpush.bf16.msrb.mxu3 %v5329_v22 }
 0xfb6   :  { %2727 = vmatpush.bf16.msrb.mxu3 %v5678_v34 }
 0xfba   :  { %2728 = vmatpush.bf16.msrb.mxu3 %v5679_v1 }
 0xfbe   :  { %2729 = vmatpush.bf16.msrb.mxu3 %v5680_v0 }
0x100e   :  { %v2466_v18 = vpop.f32.mrf.mxu1 }
0x100f   :  { %v2467_v60 = vadd.f32 %v2466_v18, %v5681_v58 }
0x1011   :  { %v2480_v17 = vadd.f32 %v2479_v15, %v2467_v60  ;;  %v5683_v15 = vld [vmem:[#allocation13_spill] sm:$0xff] }
0x1013   :  { %v3660_v16 = vmul.f32 -1.442695, %v2480_v17 }
0x1014   :  { %v2492_v32 = vpop.f32.mrf.mxu3 }
0x1015   :  { %3951 = vpow2.f32 %v3660_v16  ;;  %v2493_v4 = vadd.f32 %v2492_v32, %v5682_v52  ;;  %v2518_v57 = vpop.f32.mrf.mxu2 }
0x1016   :  { %v2468_v38 = vpop.f32.mrf.mxu1 }
0x1017   :  { %v2506_v36 = vadd.f32 %v5401_v12, %v2493_v4  ;;  %v2519_v12 = vadd.f32 %v2518_v57, %v5660_v20 }
0x1019   :  { %v3661_v35 = vmul.f32 -1.442695, %v2506_v36 }
0x101b   :  { %v3952_v43 = vpop.eup %3951  ;;  %3953 = vpow2.f32 %v3661_v35  ;;  %v2532_v35 = vadd.f32 %v5410_v11, %v2519_v12 }
0x101c   :  { %v2564_v49 = vadd.f32 1.0, %v3952_v43  ;;  %v2494_v1 = vpop.f32.mrf.mxu3 }
0x101d   :  { %v2520_v34 = vpop.f32.mrf.mxu2 }
0x101e   :  { %3955 = vrcp.f32 %v2564_v49  ;;  %v2544_v0 = vpop.f32.mrf.mxu1  ;;  %vm2570_vm9 = vweird.f32 %v2564_v49  ;;  %v2574_v41 = vand.u32 2147483647, %v2564_v49 }
0x101f   :  { %v2545_v60 = vadd.f32 %v2544_v0, %v5683_v15  ;;  %v2576_v15 = vand.u32 2147483648, %v2564_v49 }
0x1020   :  { %vm2575_vm14 = vcmp.eq.f32.partialorder %v2574_v41, 8.507059e+37 }
0x1021   :  { %v3954_v22 = vpop.eup %3953 }
0x1022   :  { %v2583_v18 = vadd.f32 1.0, %v3954_v22 }
0x1024   :  { %v3956_v17 = vpop.eup %3955  ;;  %3957 = vrcp.f32 %v2583_v18  ;;  %v2557_v16 = vpop.f32.mrf.mxu3  ;;  %v2595_v54 = vand.u32 2147483648, %v2583_v18  ;;  %v2593_v57 = vand.u32 2147483647, %v2583_v18  ;;  %vm2589_vm12 = vweird.f32 %v2583_v18 }
0x1025   :  { %v2566_v32 = vmul.f32 %v3956_v17, %v2564_v49  ;;  %v2558_v58 = vadd.f32 %v2557_v16, %v2545_v60  ;;  %vm2571_vm7 = vweird.f32 %v3956_v17 }
0x1026   :  { %v2546_v38 = vpop.f32.mrf.mxu1  ;;  %vm2572_vm11 = vmor %vm2570_vm9, %vm2571_vm7  ;;  %v2596_v11 = vor.u32 1.1754944e-38, %v2595_v54  ;;  %vm2594_vm15 = vcmp.eq.f32.partialorder %v2593_v57, 8.507059e+37 }
0x1027   :  { %v2567_v52 = vsub.f32 1.0, %v2566_v32  ;;  %v3662_v4 = vmul.f32 -1.442695, %v2558_v58  ;;  %v2577_v32 = vor.u32 1.1754944e-38, %v2576_v15 }
0x1029   :  { %v2568_v36 = vmul.f32 %v3956_v17, %v2567_v52  ;;  %3959 = vpow2.f32 %v3662_v4 }
0x102a   :  { %v3958_v1 = vpop.eup %3957  ;;  %3961 = vtanh.f32 %v2532_v35 }
0x102b   :  { %v2585_v34 = vmul.f32 %v3958_v1, %v2583_v18  ;;  %v2569_v43 = vadd.f32 %v3956_v17, %v2568_v36  ;;  %vm2590_vm10 = vweird.f32 %v3958_v1 }
0x102c   :  { %v2559_v22 = vpop.f32.mrf.mxu3  ;;  %vm2591_vm13 = vmor %vm2589_vm12, %vm2590_vm10 }
0x102d   :  { %v2586_v0 = vsub.f32 1.0, %v2585_v34  ;;  %v2573_v58 = vsel %vm2572_vm11, %v3956_v17, %v2569_v43 }
0x102e   :  { %v2578_v12 = vsel %vm2575_vm14, %v2577_v32, %v2573_v58 }
0x102f   :  { %v3960_v60 = vpop.eup %3959  ;;  %v2587_v16 = vmul.f32 %v3958_v1, %v2586_v0 }
0x1030   :  { %v2603_v52 = vadd.f32 1.0, %v3960_v60  ;;  %v3962_v49 = vpop.eup %3961 }
0x1031   :  { %v2588_v38 = vadd.f32 %v3958_v1, %v2587_v16  ;;  %v2620_v22 = vmul.f32 %v3962_v49, %v2578_v12 }
0x1032   :  { %3963 = vrcp.f32 %v2603_v52  ;;  %v2615_v18 = vand.u32 2147483648, %v2603_v52  ;;  %v2613_v41 = vand.u32 2147483647, %v2603_v52  ;;  %vm2609_vm2 = vweird.f32 %v2603_v52 }
0x1033   :  { %v2592_v4 = vsel %vm2591_vm13, %v3958_v1, %v2588_v38 }
0x1034   :  { %v2597_v36 = vsel %vm2594_vm15, %v2596_v11, %v2592_v4  ;;  %v2616_v1 = vor.u32 1.1754944e-38, %v2615_v18  ;;  %vm2614_vm5 = vcmp.eq.f32.partialorder %v2613_v41, 8.507059e+37 }
0x1035   :  { %v2619_v34 = vmul.f32 %v2597_v36, %v5358_v2 }
0x1037   :  { %v5454_v20 = vadd.f32 %v2620_v22, %v2619_v34 }
0x1038   :  { %v3964_v0 = vpop.eup %3963 }
0x1039   :  { %v2605_v17 = vmul.f32 %v3964_v0, %v2603_v52  ;;  %3965 = vtanh.f32 %v5454_v20  ;;  %vm2610_vm1 = vweird.f32 %v3964_v0 }
0x103a   :  { %vm2611_vm3 = vmor %vm2609_vm2, %vm2610_vm1 }
0x103b   :  { %v2606_v35 = vsub.f32 1.0, %v2605_v17 }
0x103d   :  { %v2607_v15 = vmul.f32 %v3964_v0, %v2606_v35 }
0x103f   :  { %v2608_v54 = vadd.f32 %v3964_v0, %v2607_v15  ;;  %v3966_v60 = vpop.eup %3965 }
0x1041   :  { %v2612_v43 = vsel %vm2611_vm3, %v3964_v0, %v2608_v54 }
0x1042   :  { %v2617_v2 = vsel %vm2614_vm5, %v2616_v1, %v2612_v43 }
0x1043   :  { %v2623_v16 = vmul.f32 %v3966_v60, %v2617_v2  ;;  %v5692_v2 = vld [vmem:[#allocation13_spill] sm:$0xff] }
0x1045   :  { %v5457_v57 = vpack.c.bf16 %v2623_v16, %v2623_v16 }
0x1047   :  { %3663 = vmatmul.msk.bf16.vlgmr.msrb.gmra.mxu0 %vm362_vm4, %v5457_v57  ;;  %3668 = vmatmul.msk.bf16.vlgmr.msra.gmra.mxu3 %vm362_vm4, %v5457_v57 }
0x1048   :  { %3671 = vmatmul.msk.bf16.vlgmr.msra.gmra.mxu1 %vm362_vm4, %v5457_v57  ;;  %2767 = vmatpush.bf16.msrb.mxu0 %v5076_v55 }
0x1049   :  { %2847 = vmatpush.bf16.msra.mxu1 %v5373_v19  ;;  %2883 = vmatpush.bf16.msra.mxu3 %v5083_v47 }
0x104c   :  { %2768 = vmatpush.bf16.msrb.mxu0 %v5089_v21 }
0x104d   :  { %2848 = vmatpush.bf16.msra.mxu1 %v5381_v44  ;;  %2884 = vmatpush.bf16.msra.mxu3 %v5096_v26 }
0x1051   :  { %2885 = vmatpush.bf16.msra.mxu3 %v5102_v10 }
0x1055   :  { %2886 = vmatpush.bf16.msra.mxu3 %v5108_v13 }
0x1058   :  { %3674 = vmatmul.msk.bf16.vlgmr.msrb.gmra.mxu1 %vm362_vm4, %v5457_v57 }
0x1059   :  { %2909 = vmatpush.bf16.msrb.mxu1 %v5116_v37  ;;  %2887 = vmatpush.bf16.msra.mxu3 %v5122_v61 }
0x105d   :  { %2910 = vmatpush.bf16.msrb.mxu1 %v5128_v5  ;;  %2888 = vmatpush.bf16.msra.mxu3 %v5134_v28 }
0x1061   :  { %2911 = vmatpush.bf16.msrb.mxu1 %v5140_v14  ;;  %2889 = vmatpush.bf16.msra.mxu3 %v5146_v56 }
0x1065   :  { %2912 = vmatpush.bf16.msrb.mxu1 %v5152_v45  ;;  %2890 = vmatpush.bf16.msra.mxu3 %v5158_v46 }
0x1069   :  { %2913 = vmatpush.bf16.msrb.mxu1 %v5164_v33 }
0x106d   :  { %2914 = vmatpush.bf16.msrb.mxu1 %v5170_v62 }
0x1071   :  { %2915 = vmatpush.bf16.msrb.mxu1 %v5176_v25 }
0x1075   :  { %2916 = vmatpush.bf16.msrb.mxu1 %v5182_v7 }
0x10c4   :  { %v2637_v47 = vpop.f32.mrf.mxu0 }
0x10c5   :  { %v2638_v26 = vadd.f32 %v5406_v24, %v2637_v47  ;;  %v2718_v10 = vpop.f32.mrf.mxu1 }
0x10c7   :  { %2642 = vst [vmem:[#allocation2 + $0xa] sm:$0x3] %v2638_v26  ;;  %v2643_v13 = vsel %vm1790_vm0, %v2638_v26, -inf }
0x10c8   :  { %2644 = vmax.xlane.f32.xlu1 %v2643_v13 }
0x10ca   :  { %v5489_v37 = vpop.f32.mrf.mxu3 }
0x10cc   :  { %v2639_v61 = vpop.f32.mrf.mxu0 }
0x10cd   :  { %v2720_v5 = vpop.f32.mrf.mxu1 }
0x10d2   :  { %v2694_v28 = vpop.f32.mrf.mxu3 }
0x10d5   :  { %v5491_v14 = vpop.f32.mrf.mxu1 }
0x10dd   :  { %v2746_v56 = vpop.f32.mrf.mxu1 }
0x113b   :  { %v2645_v45 = vpop.xlane.xlu1 %2644 }
0x113c   :  { %vm2646_vm6 = vcmp.eq.f32.partialorder %v2638_v26, %v2645_v45 }
0x113d   :  { %v2647_v46 = vsel %vm2646_vm6, %v4287_v39, 128 }
0x113e   :  { %v2648_v33 = vsel %vm1790_vm0, %v2647_v46, 2147483647 }
0x113f   :  { %v2650_v62 = vshra.s32 %v2648_v33, 16  ;;  %v2649_v7 = vand.u32 65535, %v2648_v33 }
0x1141   :  { %v2652_v25 = vcvt.s32.f32 %v2650_v62  ;;  %v2651_v52 = vcvt.s32.f32 %v2649_v7 }
0x1143   :  { %2653 = vmin.xlane.f32.xlu2 %v2652_v25 }
0x11b6   :  { %v2654_v58 = vpop.xlane.xlu2 %2653 }
0x11b7   :  { %vm2655_vm7 = vcmp.eq.f32.partialorder %v2652_v25, %v2654_v58  ;;  %v2660_v38 = vcvt.f32.s32 %v2654_v58 }
0x11b8   :  { %v2656_v32 = vsel %vm2655_vm7, %v2651_v52, inf }
0x11b9   :  { %2657 = vmin.xlane.f32.xlu0 %v2656_v32  ;;  %v2661_v12 = vshll.u32 %v2660_v38, 16 }
0x122c   :  { %v2658_v11 = vpop.xlane.xlu0 %2657 }
0x122d   :  { %v2659_v4 = vcvt.f32.s32 %v2658_v11 }
0x122f   :  { %v2662_v36 = vadd.s32 %v2661_v12, %v2659_v4 }
0x1231   :  { %v2663_v49 = vcvt.s32.f32 %v2662_v36  ;;  %vm2666_vm9 = vcmp.eq.s32.totalorder %v4287_v39, %v2662_v36 }
0x1232   :  { %vm3666_vm10 = vmpackc.low %vm2666_vm9, %vm2666_vm9 }
0x1233   :  { %3664 = vst.msk [vmem:[%s5594_s17 + $0xa] sm:$0x3] %vm1331_vm8, %v2663_v49  ;;  %3667 = vmatmul.msk.bf16.vlgmr.msra.gmra.mxu2 %vm3666_vm10, %v5653_v59  ;;  %3670 = vmatmul.msk.bf16.vlgmr.msra.gmra.mxu0 %vm3666_vm10, %v5653_v59 }
0x1234   :  { %3673 = vmatmul.msk.bf16.vlgmr.msrb.gmra.mxu3 %vm3666_vm10, %v5653_v59  ;;  %2902 = vmatpush.bf16.msra.mxu0 %v5216_v48  ;;  %v5684_v48 = vld [vmem:[#allocation6_spill] sm:$0xff] }
0x1235   :  { %2928 = vmatpush.bf16.msra.mxu2 %v5222_v40  ;;  %2961 = vmatpush.bf16.msrb.mxu3 %v5228_v30  ;;  %v5685_v40 = vld [vmem:[#allocation5_spill] sm:$0xff]  ;;  %v5686_v30 = vld [vmem:[#allocation8_spill] sm:$0xff] }
0x1238   :  { %2903 = vmatpush.bf16.msra.mxu0 %v5234_v6  ;;  %v5687_v6 = vld [vmem:[#allocation7_spill] sm:$0xff] }
0x1239   :  { %2929 = vmatpush.bf16.msra.mxu2 %v5240_v8  ;;  %2962 = vmatpush.bf16.msrb.mxu3 %v5246_v63  ;;  %v5688_v8 = vld [vmem:[#allocation9_spill] sm:$0xff]  ;;  %v5689_v63 = vld [vmem:[#allocation10_spill] sm:$0xff] }
0x123d   :  { %2963 = vmatpush.bf16.msrb.mxu3 %v5252_v9 }
0x1241   :  { %2964 = vmatpush.bf16.msrb.mxu3 %v5258_v51  ;;  %v5690_v51 = vld [vmem:[#allocation12_spill] sm:$0xff] }
0x1243   :  { %3676 = vmatmul.msk.bf16.vlgmr.msrb.gmra.mxu2 %vm3666_vm10, %v5653_v59  ;;  %3677 = vmatmul.msk.bf16.vlgmr.msrb.gmra.mxu0 %vm362_vm4, %v5457_v57  ;;  %v5693_v57 = vld [vmem:[#allocation15_spill] sm:$0xff] }
0x1244   :  { %2954 = vmatpush.bf16.msrb.mxu2 %v5269_v29  ;;  %2935 = vmatpush.bf16.msrb.mxu0 %v5275_v31 }
0x1245   :  { %2965 = vmatpush.bf16.msrb.mxu3 %v5281_v23 }
0x1248   :  { %2955 = vmatpush.bf16.msrb.mxu2 %v5287_v42  ;;  %2936 = vmatpush.bf16.msrb.mxu0 %v5293_v27  ;;  %v5691_v27 = vld [vmem:[#allocation14_spill] sm:$0xff] }
0x1249   :  { %2966 = vmatpush.bf16.msrb.mxu3 %v5299_v50 }
0x124c   :  { %2937 = vmatpush.bf16.msrb.mxu0 %v5305_v53 }
0x124d   :  { %2967 = vmatpush.bf16.msrb.mxu3 %v5311_v3 }
0x1250   :  { %2938 = vmatpush.bf16.msrb.mxu0 %v5684_v48 }
0x1251   :  { %2968 = vmatpush.bf16.msrb.mxu3 %v5685_v40 }
0x1254   :  { %2939 = vmatpush.bf16.msrb.mxu0 %v5686_v30 }
0x1258   :  { %2940 = vmatpush.bf16.msrb.mxu0 %v5687_v6 }
0x125c   :  { %2941 = vmatpush.bf16.msrb.mxu0 %v5688_v8 }
0x1260   :  { %2942 = vmatpush.bf16.msrb.mxu0 %v5689_v63 }
0x12b0   :  { %v2705_v9 = vpop.f32.mrf.mxu0 }
0x12b1   :  { %v2706_v29 = vadd.f32 %v2705_v9, %v5690_v51 }
0x12b3   :  { %v2719_v31 = vadd.f32 %v2718_v10, %v2706_v29 }
0x12b5   :  { %v3679_v23 = vmul.f32 -1.442695, %v2719_v31 }
0x12b6   :  { %v2679_v42 = vpop.f32.mrf.mxu2 }
0x12b7   :  { %3967 = vpow2.f32 %v3679_v23  ;;  %v2680_v50 = vadd.f32 %v2679_v42, %v5691_v27  ;;  %v2731_v53 = vpop.f32.mrf.mxu3 }
0x12b8   :  { %v2707_v3 = vpop.f32.mrf.mxu0  ;;  %v2732_v47 = vadd.f32 %v2731_v53, %v5693_v57 }
0x12b9   :  { %v2693_v34 = vadd.f32 %v5489_v37, %v2680_v50 }
0x12ba   :  { %v2745_v28 = vadd.f32 %v5491_v14, %v2732_v47 }
0x12bb   :  { %v3678_v22 = vmul.f32 -1.442695, %v2693_v34 }
0x12bd   :  { %v3968_v0 = vpop.eup %3967  ;;  %3969 = vpow2.f32 %v3678_v22 }
0x12be   :  { %v2796_v17 = vadd.f32 1.0, %v3968_v0  ;;  %v2681_v35 = vpop.f32.mrf.mxu2 }
0x12bf   :  { %v2733_v18 = vpop.f32.mrf.mxu3 }
0x12c0   :  { %3971 = vrcp.f32 %v2796_v17  ;;  %v2770_v15 = vpop.f32.mrf.mxu0  ;;  %v2808_v25 = vand.u32 2147483648, %v2796_v17  ;;  %vm2802_vm13 = vweird.f32 %v2796_v17  ;;  %v2806_v52 = vand.u32 2147483647, %v2796_v17 }
0x12c2   :  { %v2809_v4 = vor.u32 1.1754944e-38, %v2808_v25  ;;  %vm2807_vm3 = vcmp.eq.f32.partialorder %v2806_v52, 8.507059e+37 }
0x12c3   :  { %v3970_v41 = vpop.eup %3969 }
0x12c4   :  { %v2777_v54 = vadd.f32 1.0, %v3970_v41 }
0x12c6   :  { %v3972_v1 = vpop.eup %3971  ;;  %3973 = vrcp.f32 %v2777_v54  ;;  %v2757_v43 = vpop.f32.mrf.mxu2  ;;  %v2789_v33 = vand.u32 2147483648, %v2777_v54  ;;  %v2787_v58 = vand.u32 2147483647, %v2777_v54  ;;  %vm2783_vm15 = vweird.f32 %v2777_v54 }
0x12c7   :  { %v2798_v60 = vmul.f32 %v3972_v1, %v2796_v17  ;;  %v2758_v16 = vadd.f32 %v2757_v43, %v5692_v2  ;;  %vm2803_vm11 = vweird.f32 %v3972_v1 }
0x12c8   :  { %v2772_v26 = vpop.f32.mrf.mxu0  ;;  %vm2804_vm14 = vmor %vm2802_vm13, %vm2803_vm11  ;;  %v2790_v14 = vor.u32 1.1754944e-38, %v2789_v33  ;;  %vm2788_vm2 = vcmp.eq.f32.partialorder %v2787_v58, 8.507059e+37 }
0x12c9   :  { %v2799_v10 = vsub.f32 1.0, %v2798_v60  ;;  %v2771_v13 = vadd.f32 %v2770_v15, %v2758_v16 }
0x12cb   :  { %v3680_v37 = vmul.f32 -1.442695, %v2771_v13  ;;  %v2800_v5 = vmul.f32 %v3972_v1, %v2799_v10 }
0x12cc   :  { %v3974_v61 = vpop.eup %3973 }
0x12cd   :  { %v2779_v56 = vmul.f32 %v3974_v61, %v2777_v54  ;;  %3975 = vpow2.f32 %v3680_v37  ;;  %v2801_v62 = vadd.f32 %v3972_v1, %v2800_v5  ;;  %vm2784_vm12 = vweird.f32 %v3974_v61 }
0x12ce   :  { %v2759_v45 = vpop.f32.mrf.mxu2  ;;  %3977 = vtanh.f32 %v2745_v28  ;;  %vm2785_vm1 = vmor %vm2783_vm15, %vm2784_vm12 }
0x12cf   :  { %v2780_v46 = vsub.f32 1.0, %v2779_v56  ;;  %v2805_v11 = vsel %vm2804_vm14, %v3972_v1, %v2801_v62 }
0x12d0   :  { %v2810_v40 = vsel %vm2807_vm3, %v2809_v4, %v2805_v11 }
0x12d1   :  { %v2781_v7 = vmul.f32 %v3974_v61, %v2780_v46  ;;  %v2832_v6 = vmul.f32 %v2810_v40, %v5454_v20 }
0x12d3   :  { %v3976_v32 = vpop.eup %3975  ;;  %v2782_v38 = vadd.f32 %v3974_v61, %v2781_v7 }
0x12d4   :  { %v2816_v12 = vadd.f32 1.0, %v3976_v32  ;;  %v3978_v49 = vpop.eup %3977 }
0x12d5   :  { %v2786_v36 = vsel %vm2785_vm1, %v3974_v61, %v2782_v38 }
0x12d6   :  { %v2791_v48 = vsel %vm2788_vm2, %v2790_v14, %v2786_v36  ;;  %3979 = vrcp.f32 %v2816_v12  ;;  %v2828_v31 = vand.u32 2147483648, %v2816_v12  ;;  %v2826_v42 = vand.u32 2147483647, %v2816_v12 }
0x12d7   :  { %v2833_v30 = vmul.f32 %v3978_v49, %v2791_v48  ;;  %vm2822_vm6 = vweird.f32 %v2816_v12 }
0x12d8   :  { %v2829_v53 = vor.u32 1.1754944e-38, %v2828_v31  ;;  %vm2827_vm9 = vcmp.eq.f32.partialorder %v2826_v42, 8.507059e+37 }
0x12d9   :  { %v5535_v63 = vadd.f32 %v2833_v30, %v2832_v6 }
0x12db   :  { %3981 = vtanh.f32 %v5535_v63 }
0x12dc   :  { %v3980_v8 = vpop.eup %3979 }
0x12dd   :  { %v2818_v9 = vmul.f32 %v3980_v8, %v2816_v12  ;;  %vm2823_vm5 = vweird.f32 %v3980_v8 }
0x12de   :  { %vm2824_vm7 = vmor %vm2822_vm6, %vm2823_vm5 }
0x12df   :  { %v2819_v29 = vsub.f32 1.0, %v2818_v9 }
0x12e1   :  { %v2820_v23 = vmul.f32 %v3980_v8, %v2819_v29  ;;  %v3982_v34 = vpop.eup %3981 }
0x12e3   :  { %v2821_v50 = vadd.f32 %v3980_v8, %v2820_v23 }
0x12e5   :  { %v2825_v3 = vsel %vm2824_vm7, %v3980_v8, %v2821_v50 }
0x12e6   :  { %v2830_v22 = vsel %vm2827_vm9, %v2829_v53, %v2825_v3 }
0x12e7   :  { %v2836_v20 = vmul.f32 %v3982_v34, %v2830_v22 }
0x12e9   :  { %v2837_v0 = vpack.c.bf16 %v2836_v20, %v2836_v20 }
0x12eb   :  { %3681 = vmatmul.msk.bf16.vlgmr.msra.gmra.mxu1 %vm362_vm4, %v2837_v0  ;;  %3686 = vmatmul.msk.bf16.vlgmr.msra.gmra.mxu0 %vm362_vm4, %v2837_v0 }
0x12ec   :  { %3689 = vmatmul.msk.bf16.vlgmr.msra.gmra.mxu2 %vm362_vm4, %v2837_v0  ;;  %2980 = vmatpush.bf16.msra.mxu1 %v5076_v55 }
0x12ed   :  { %3060 = vmatpush.bf16.msra.mxu2 %v5373_v19 }
0x12f0   :  { %2981 = vmatpush.bf16.msra.mxu1 %v5089_v21 }
0x12f1   :  { %3061 = vmatpush.bf16.msra.mxu2 %v5381_v44 }
0x12fc   :  { %3692 = vmatmul.msk.bf16.vlgmr.msrb.gmra.mxu2 %vm362_vm4, %v2837_v0 }
0x1368   :  { %v2850_v17 = vpop.f32.mrf.mxu1  ;;  %v2905_v35 = vpop.f32.mrf.mxu0 }
0x1369   :  { %v2851_v18 = vadd.f32 %v5406_v24, %v2850_v17 }
0x136b   :  { %2855 = vst [vmem:[#allocation2 + $0xc] sm:$0x3] %v2851_v18  ;;  %v2856_v15 = vsel %vm1790_vm0, %v2851_v18, -inf }
0x136c   :  { %2857 = vmax.xlane.f32.xlu1 %v2856_v15 }
0x136f   :  { %v2931_v41 = vpop.f32.mrf.mxu2 }
0x1370   :  { %v2852_v54 = vpop.f32.mrf.mxu1  ;;  %v2907_v1 = vpop.f32.mrf.mxu0 }
0x1377   :  { %v2933_v55 = vpop.f32.mrf.mxu2 }
0x137f   :  { %v2957_v43 = vpop.f32.mrf.mxu2 }
0x1387   :  { %v2959_v19 = vpop.f32.mrf.mxu2 }
0x13df   :  { %v2858_v60 = vpop.xlane.xlu1 %2857 }
0x13e0   :  { %vm2859_vm10 = vcmp.eq.f32.partialorder %v2851_v18, %v2858_v60 }
0x13e1   :  { %v2860_v21 = vsel %vm2859_vm10, %v4287_v39, 128 }
0x13e2   :  { %v2861_v44 = vsel %vm1790_vm0, %v2860_v21, 2147483647 }
0x13e3   :  { %v2863_v16 = vshra.s32 %v2861_v44, 16  ;;  %v2862_v26 = vand.u32 65535, %v2861_v44 }
0x13e5   :  { %v2865_v47 = vcvt.s32.f32 %v2863_v16  ;;  %v2864_v13 = vcvt.s32.f32 %v2862_v26 }
0x13e7   :  { %2866 = vmin.xlane.f32.xlu2 %v2865_v47 }
0x145a   :  { %v2867_v10 = vpop.xlane.xlu2 %2866 }
0x145b   :  { %vm2868_vm11 = vcmp.eq.f32.partialorder %v2865_v47, %v2867_v10  ;;  %v2873_v61 = vcvt.f32.s32 %v2867_v10 }
0x145c   :  { %v2869_v37 = vsel %vm2868_vm11, %v2864_v13, inf }
0x145d   :  { %2870 = vmin.xlane.f32.xlu0 %v2869_v37  ;;  %v2874_v28 = vshll.u32 %v2873_v61, 16 }
0x14d0   :  { %v2871_v5 = vpop.xlane.xlu0 %2870 }
0x14d1   :  { %v2872_v56 = vcvt.f32.s32 %v2871_v5 }
0x14d3   :  { %v2875_v45 = vadd.s32 %v2874_v28, %v2872_v56 }
0x14d5   :  { %v2876_v46 = vcvt.s32.f32 %v2875_v45  ;;  %vm2879_vm12 = vcmp.eq.s32.totalorder %v4287_v39, %v2875_v45 }
0x14d6   :  { %vm3684_vm13 = vmpackc.low %vm2879_vm12, %vm2879_vm12 }
0x14d7   :  { %3682 = vst.msk [vmem:[%s5594_s17 + $0xc] sm:$0x3] %vm1331_vm8, %v2876_v46  ;;  %3685 = vmatmul.msk.bf16.vlgmr.msra.gmra.mxu3 %vm3684_vm13, %v5653_v59  ;;  %3688 = vmatmul.msk.bf16.vlgmr.msrb.gmra.mxu1 %vm3684_vm13, %v5653_v59 }
0x14d8   :  { %3691 = vmatmul.msk.bf16.vlgmr.msrb.gmra.mxu0 %vm3684_vm13, %v5653_v59 }
0x14e7   :  { %3694 = vmatmul.msk.bf16.vlgmr.msrb.gmra.mxu3 %vm3684_vm13, %v5653_v59  ;;  %3695 = vmatmul.msk.bf16.vlgmr.msra.gmra.mxu1 %vm362_vm4, %v2837_v0 }
0x1554   :  { %v2918_v33 = vpop.f32.mrf.mxu1 }
0x1555   :  { %v2919_v62 = vadd.f32 %v2918_v33, %v5690_v51  ;;  %v2944_v25 = vpop.f32.mrf.mxu0 }
0x1557   :  { %v2932_v7 = vadd.f32 %v2931_v41, %v2919_v62 }
0x1559   :  { %v3697_v58 = vmul.f32 -1.442695, %v2932_v7 }
0x155a   :  { %v2892_v52 = vpop.f32.mrf.mxu3 }
0x155b   :  { %3983 = vpow2.f32 %v3697_v58  ;;  %v2893_v32 = vadd.f32 %v2892_v52, %v5691_v27  ;;  %v2945_v27 = vadd.f32 %v2944_v25, %v5693_v57 }
0x155c   :  { %v2920_v38 = vpop.f32.mrf.mxu1 }
0x155d   :  { %v2906_v14 = vadd.f32 %v2905_v35, %v2893_v32  ;;  %v2946_v11 = vpop.f32.mrf.mxu0  ;;  %v2958_v53 = vadd.f32 %v2957_v43, %v2945_v27 }
0x155f   :  { %v3696_v12 = vmul.f32 -1.442695, %v2906_v14 }
0x1561   :  { %v3984_v4 = vpop.eup %3983  ;;  %3985 = vpow2.f32 %v3696_v12 }
0x1562   :  { %v3009_v36 = vadd.f32 1.0, %v3984_v4  ;;  %v2894_v59 = vpop.f32.mrf.mxu3 }
0x1564   :  { %3987 = vrcp.f32 %v3009_v36  ;;  %v2983_v49 = vpop.f32.mrf.mxu1  ;;  %v3021_v17 = vand.u32 2147483648, %v3009_v36  ;;  %vm3015_vm1 = vweird.f32 %v3009_v36  ;;  %v3019_v57 = vand.u32 2147483647, %v3009_v36 }
0x1566   :  { %v3022_v55 = vor.u32 1.1754944e-38, %v3021_v17  ;;  %vm3020_vm7 = vcmp.eq.f32.partialorder %v3019_v57, 8.507059e+37 }
0x1567   :  { %v3986_v48 = vpop.eup %3985 }
0x1568   :  { %v2990_v40 = vadd.f32 1.0, %v3986_v48 }
0x156a   :  { %v3988_v51 = vpop.eup %3987  ;;  %3989 = vrcp.f32 %v2990_v40  ;;  %v2970_v30 = vpop.f32.mrf.mxu3  ;;  %v3002_v0 = vand.u32 2147483648, %v2990_v40  ;;  %vm2996_vm3 = vweird.f32 %v2990_v40 }
0x156b   :  { %v3011_v6 = vmul.f32 %v3988_v51, %v3009_v36  ;;  %v2971_v8 = vadd.f32 %v2970_v30, %v5692_v2  ;;  %vm3016_vm14 = vweird.f32 %v3988_v51  ;;  %v3000_v2 = vand.u32 2147483647, %v2990_v40 }
0x156c   :  { %v2985_v9 = vpop.f32.mrf.mxu1  ;;  %vm3017_vm2 = vmor %vm3015_vm1, %vm3016_vm14  ;;  %v3003_v54 = vor.u32 1.1754944e-38, %v3002_v0 }
0x156d   :  { %v3012_v29 = vsub.f32 1.0, %v3011_v6  ;;  %v2984_v31 = vadd.f32 %v2983_v49, %v2971_v8  ;;  %vm3001_vm6 = vcmp.eq.f32.partialorder %v3000_v2, 8.507059e+37 }
0x156f   :  { %v3698_v23 = vmul.f32 -1.442695, %v2984_v31  ;;  %v3013_v50 = vmul.f32 %v3988_v51, %v3012_v29 }
0x1570   :  { %v3990_v42 = vpop.eup %3989 }
0x1571   :  { %v2992_v3 = vmul.f32 %v3990_v42, %v2990_v40  ;;  %3991 = vpow2.f32 %v3698_v23  ;;  %v3014_v20 = vadd.f32 %v3988_v51, %v3013_v50  ;;  %vm2997_vm15 = vweird.f32 %v3990_v42 }
0x1572   :  { %v2972_v34 = vpop.f32.mrf.mxu3  ;;  %3993 = vtanh.f32 %v2958_v53  ;;  %vm2998_vm5 = vmor %vm2996_vm3, %vm2997_vm15 }
0x1573   :  { %v2993_v22 = vsub.f32 1.0, %v2992_v3  ;;  %v3018_v41 = vsel %vm3017_vm2, %v3988_v51, %v3014_v20 }
0x1574   :  { %v3023_v21 = vsel %vm3020_vm7, %v3022_v55, %v3018_v41 }
0x1575   :  { %v2994_v35 = vmul.f32 %v3990_v42, %v2993_v22  ;;  %v3045_v16 = vmul.f32 %v3023_v21, %v5535_v63 }
0x1577   :  { %v3992_v18 = vpop.eup %3991  ;;  %v2995_v15 = vadd.f32 %v3990_v42, %v2994_v35 }
0x1578   :  { %v3029_v1 = vadd.f32 1.0, %v3992_v18  ;;  %v3994_v19 = vpop.eup %3993 }
0x1579   :  { %v2999_v43 = vsel %vm2998_vm5, %v3990_v42, %v2995_v15 }
0x157a   :  { %v3004_v60 = vsel %vm3001_vm6, %v3003_v54, %v2999_v43  ;;  %3995 = vrcp.f32 %v3029_v1  ;;  %v3041_v37 = vand.u32 2147483648, %v3029_v1  ;;  %v3039_v5 = vand.u32 2147483647, %v3029_v1 }
0x157b   :  { %v3046_v44 = vmul.f32 %v3994_v19, %v3004_v60  ;;  %vm3035_vm10 = vweird.f32 %v3029_v1 }
0x157c   :  { %v3042_v56 = vor.u32 1.1754944e-38, %v3041_v37  ;;  %vm3040_vm12 = vcmp.eq.f32.partialorder %v3039_v5, 8.507059e+37 }
0x157d   :  { %v3047_v26 = vadd.f32 %v3046_v44, %v3045_v16 }
0x157f   :  { %3997 = vtanh.f32 %v3047_v26 }
0x1580   :  { %v3996_v47 = vpop.eup %3995 }
0x1581   :  { %v3031_v10 = vmul.f32 %v3996_v47, %v3029_v1  ;;  %vm3036_vm9 = vweird.f32 %v3996_v47 }
0x1582   :  { %vm3037_vm11 = vmor %vm3035_vm10, %vm3036_vm9 }
0x1583   :  { %v3032_v13 = vsub.f32 1.0, %v3031_v10 }
0x1585   :  { %v3033_v61 = vmul.f32 %v3996_v47, %v3032_v13  ;;  %v3998_v46 = vpop.eup %3997 }
0x1587   :  { %v3034_v28 = vadd.f32 %v3996_v47, %v3033_v61 }
0x1589   :  { %v3038_v45 = vsel %vm3037_vm11, %v3996_v47, %v3034_v28 }
0x158a   :  { %v3043_v33 = vsel %vm3040_vm12, %v3042_v56, %v3038_v45 }
0x158b   :  { %v3049_v62 = vmul.f32 %v3998_v46, %v3043_v33 }
0x158d   :  { %v3050_v25 = vpack.c.bf16 %v3049_v62, %v3049_v62 }
0x158f   :  { %3699 = vmatmul.msk.bf16.vlgmr.msra.gmra.mxu2 %vm362_vm4, %v3050_v25 }
0x1612   :  { %v3063_v63 = vpop.f32.mrf.mxu2 }
0x1613   :  { %v3064_v7 = vadd.f32 %v5406_v24, %v3063_v63 }
0x1615   :  { %3068 = vst [vmem:[#allocation2 + $0xe] sm:$0x3] %v3064_v7  ;;  %v3069_v58 = vsel %vm1790_vm0, %v3064_v7, -inf }
0x1616   :  { %3070 = vmax.xlane.f32.xlu1 %v3069_v58  ;;  %3106 = dma.vmem_to_hbm [thread:$0]  %s3099_s7, 256, %s3101_s5, [#allocation3], %s4074_s18, %s4074_s18, %s4075_s19  }
0x161a   :  { %v3065_v52 = vpop.f32.mrf.mxu2 }
0x1689   :  { %v3071_v32 = vpop.xlane.xlu1 %3070 }
0x168a   :  { %vm3072_vm13 = vcmp.eq.f32.partialorder %v3064_v7, %v3071_v32 }
0x168b   :  { %v3073_v38 = vsel %vm3072_vm13, %v4287_v39, 128 }
0x168c   :  { %v3074_v14 = vsel %vm1790_vm0, %v3073_v38, 2147483647 }
0x168d   :  { %v3076_v11 = vshra.s32 %v3074_v14, 16  ;;  %v3075_v4 = vand.u32 65535, %v3074_v14 }
0x168f   :  { %v3078_v12 = vcvt.s32.f32 %v3076_v11  ;;  %v3077_v36 = vcvt.s32.f32 %v3075_v4 }
0x1691   :  { %3079 = vmin.xlane.f32.xlu2 %v3078_v12 }
0x1704   :  { %v3080_v24 = vpop.xlane.xlu2 %3079 }
0x1705   :  { %vm3081_vm4 = vcmp.eq.f32.partialorder %v3078_v12, %v3080_v24  ;;  %v3086_v59 = vcvt.f32.s32 %v3080_v24 }
0x1706   :  { %v3082_v39 = vsel %vm3081_vm4, %v3077_v36, inf }
0x1707   :  { %3083 = vmin.xlane.f32.xlu0 %v3082_v39  ;;  %v3087_v48 = vshll.u32 %v3086_v59, 16 }
0x177a   :  { %v3084_v49 = vpop.xlane.xlu0 %3083 }
0x177b   :  { %v3085_v40 = vcvt.f32.s32 %v3084_v49 }
0x177d   :  { %v3088_v51 = vadd.s32 %v3087_v48, %v3085_v40 }
0x177f   :  { %v3089_v30 = vcvt.s32.f32 %v3088_v51 }
0x1781   :  { %3700 = vst.msk [vmem:[%s5594_s17 + $0xe] sm:$0x3] %vm1331_vm8, %v3089_v30 }
0x1782   :  { %4067 = dma.done.wait [#allocation3], 256  }
0x1783   :  { %4068 = vsyncadd [#allocation3], 4294967040 }
0x1784   :  { %3117 = vsyncpa [#allocation3], 1 }

</bundles_post_ra>
